<compile_context>
chip_gen: v5e
topology: v5e:2x2
jax: 0.10.0
libtpu: 0.0.40
codegen_flags: <defaults>
</compile_context>

<pallas_src>
import jax
import jax.numpy as jnp
from jax.experimental import pallas as pl
from jax.experimental.pallas import tpu as pltpu

HIDDEN = 750        # logical hidden width (fixed by the PyTorch module)
HIDDEN_PAD = 768    # padded to 6*128 lanes / multiple of 8 sublanes
BATCH_TILE = 256    # per-grid-step batch tile for large batches (use 128 on v5e)


def _round_up(x, m):
    return ((x + m - 1) // m) * m


# ------------------------------- kernel ------------------------------------ #

def _generator_kernel(state_ref, action_ref, noise_ref,
                      w_state_ref, w_az_ref, w_hidden_ref, w_heads_ref,
                      bias_ref, out_ref):
    f32, bf16 = jnp.float32, jnp.bfloat16
    Bt = state_ref.shape[0]
    A = action_ref.shape[1]
    L = noise_ref.shape[1]
    AZ = w_az_ref.shape[1]
    out_w = out_ref.shape[1]

    biases = bias_ref[...]          # (8, HIDDEN_PAD) f32
    heads = w_heads_ref[...]        # (HIDDEN_PAD, 2L + A) bf16

    def mm(x_bf, w_bf):
        # bf16 x bf16 MXU matmul with f32 accumulation.
        return jnp.dot(x_bf, w_bf, preferred_element_type=f32)

    # Hoisted activation casts (reused by encoder e1 and decoder d1).
    state_bf = state_ref[...].astype(bf16)
    action_bf = action_ref[...].astype(bf16)
    if A < AZ:  # pad action lanes up to the shared stacked-weight row count
        action_bf = jnp.concatenate(
            [action_bf, jnp.zeros((Bt, AZ - A), bf16)], axis=1)

    # ---- encoder: z = relu(e2(relu(e1([state, action])))) ----
    h = mm(state_bf, w_state_ref[0]) + mm(action_bf, w_az_ref[0]) + biases[0:1]
    h = jnp.maximum(h, 0.0).astype(bf16)
    h = mm(h, w_hidden_ref[0]) + biases[1:2]
    h = jnp.maximum(h, 0.0).astype(bf16)

    # merged mean / log_std heads in one dot (columns 0 : 2L of the head pack)
    ml = mm(h, heads[:, :2 * L]) + biases[4:5, :2 * L]
    mean = ml[:, :L]
    log_std = jnp.clip(ml[:, L:], -4.0, 15.0)
    std = jnp.exp(log_std)

    # ---- reparameterized sample ----
    z_bf = (mean + std * noise_ref[...]).astype(bf16)
    if L < AZ:
        z_bf = jnp.concatenate([z_bf, jnp.zeros((Bt, AZ - L), bf16)], axis=1)

    # ---- decoder: u = d3(relu(d2(relu(d1([state, z]))))) (no tanh, as in spec)
    a = mm(state_bf, w_state_ref[1]) + mm(z_bf, w_az_ref[1]) + biases[2:3]
    a = jnp.maximum(a, 0.0).astype(bf16)
    a = mm(a, w_hidden_ref[1]) + biases[3:4]
    a = jnp.maximum(a, 0.0).astype(bf16)
    u = mm(a, heads[:, 2 * L:]) + biases[5:6, :A]

    # ---- single lane-dense store: [ u | mean | std | zero pad ] ----
    out_ref[...] = jnp.concatenate(
        [u, mean, std, jnp.zeros((Bt, out_w - (A + 2 * L)), f32)], axis=1)


# ------------------------------- wrapper ------------------------------------ #

def _const_spec(arr):
    nd = arr.ndim
    return pl.BlockSpec(arr.shape, lambda i, _nd=nd: (0,) * _nd)


def _cost_estimate(Bp, I, A, L, AZ, HP, params, out_w):
    flops = 2 * Bp * (2 * (I + AZ) * HP + 2 * HP * HP + HP * (2 * L + A))
    transcendentals = Bp * L
    weight_bytes = sum(int(v.size) * v.dtype.itemsize for v in params.values())
    io_bytes = 4 * Bp * (I + A + L + out_w)
    return pl.CostEstimate(flops=flops, transcendentals=transcendentals,
                           bytes_accessed=weight_bytes + io_bytes)


@jax.jit
def generator_forward(params, state, action, noise):
    """Equivalent of Generator.forward: returns (u, mean, std)."""
    B, I = state.shape
    A = action.shape[1]
    L = noise.shape[1]
    AZ = params["w_az"].shape[1]
    HP = params["w_hidden"].shape[1]
    out_w = max(128, _round_up(A + 2 * L, 128))

    # Batch tiling: single grid point for small batches, BATCH_TILE-row tiles
    # (weights VMEM-resident, "parallel" grid axis) for production batches.
    B8 = _round_up(B, 8)
    if B8 <= BATCH_TILE:
        tile, B_pad = B8, B8
    else:
        tile = BATCH_TILE
        B_pad = _round_up(B, tile)
    if B_pad != B:
        pad = ((0, B_pad - B), (0, 0))
        state_p = jnp.pad(state, pad)
        action_p = jnp.pad(action, pad)
        noise_p = jnp.pad(noise, pad)
    else:
        state_p, action_p, noise_p = state, action, noise

    grid = (B_pad // tile,)

    out = pl.pallas_call(
        _generator_kernel,
        out_shape=jax.ShapeDtypeStruct((B_pad, out_w), jnp.float32),
        grid_spec=pltpu.PrefetchScalarGridSpec(
            num_scalar_prefetch=0,
            grid=grid,
            in_specs=[
                pl.BlockSpec((tile, I), lambda i: (i, 0)),
                pl.BlockSpec((tile, A), lambda i: (i, 0)),
                pl.BlockSpec((tile, L), lambda i: (i, 0)),
                _const_spec(params["w_state"]),
                _const_spec(params["w_az"]),
                _const_spec(params["w_hidden"]),
                _const_spec(params["w_heads"]),
                _const_spec(params["biases"]),
            ],
            out_specs=pl.BlockSpec((tile, out_w), lambda i: (i, 0)),
        ),
        compiler_params=pltpu.CompilerParams(
            dimension_semantics=("parallel",)),
        cost_estimate=_cost_estimate(B_pad, I, A, L, AZ, HP, params, out_w),
    )(state_p, action_p, noise_p,
      params["w_state"], params["w_az"], params["w_hidden"],
      params["w_heads"], params["biases"])

    u = out[:B, :A]
    mean = out[:B, A:A + L]
    std = out[:B, A + L:A + 2 * L]
    return u, mean, std


# --------------------------- deterministic init ----------------------------- #

def _linear_params(key, fan_in, fan_out):
    # PyTorch-style uniform(-1/sqrt(fan_in), 1/sqrt(fan_in)); weight is (in, out).
    kw, kb = jax.random.split(key)
    bound = 1.0 / jnp.sqrt(jnp.float32(fan_in))
    w = jax.random.uniform(kw, (fan_in, fan_out), jnp.float32, -bound, bound)
    b = jax.random.uniform(kb, (1, fan_out), jnp.float32, -bound, bound)
    return w, b


def _pad_to(x, shape):
    return jnp.pad(x, [(0, t - s) for s, t in zip(x.shape, shape)])


def init_generator_params(key, input_dim, action_dim, latent_dim):
    """Returns (packed_params, raw_params).

    packed_params is the kernel-ready layout: first-layer weights split/stacked
    (concat folded away), hidden 768x768 pair stacked, heads packed, all weight
    matrices bf16, biases packed into one (8, 768) f32 array, hidden width
    zero-padded 750 -> 768.  raw_params keeps the original f32 tensors for the
    exact reference."""
    keys = jax.random.split(key, 7)
    w1, b1 = _linear_params(keys[0], input_dim + action_dim, HIDDEN)
    w2, b2 = _linear_params(keys[1], HIDDEN, HIDDEN)
    wm, bm = _linear_params(keys[2], HIDDEN, latent_dim)
    wl, bl = _linear_params(keys[3], HIDDEN, latent_dim)
    wd1, bd1 = _linear_params(keys[4], input_dim + latent_dim, HIDDEN)
    wd2, bd2 = _linear_params(keys[5], HIDDEN, HIDDEN)
    wd3, bd3 = _linear_params(keys[6], HIDDEN, action_dim)

    raw = dict(w1=w1, b1=b1, w2=w2, b2=b2, wm=wm, bm=bm, wl=wl, bl=bl,
               wd1=wd1, bd1=bd1, wd2=wd2, bd2=bd2, wd3=wd3, bd3=bd3)

    bf16 = jnp.bfloat16
    HP = HIDDEN_PAD
    AZ = max(action_dim, latent_dim)

    w1s, w1a = w1[:input_dim], w1[input_dim:]
    wd1s, wd1z = wd1[:input_dim], wd1[input_dim:]

    p = {}
    p["w_state"] = jnp.stack([_pad_to(w1s, (input_dim, HP)),
                              _pad_to(wd1s, (input_dim, HP))]).astype(bf16)
    p["w_az"] = jnp.stack([_pad_to(w1a, (AZ, HP)),
                           _pad_to(wd1z, (AZ, HP))]).astype(bf16)
    p["w_hidden"] = jnp.stack([_pad_to(w2, (HP, HP)),
                               _pad_to(wd2, (HP, HP))]).astype(bf16)
    p["w_heads"] = _pad_to(
        jnp.concatenate([wm, wl, wd3], axis=1),
        (HP, 2 * latent_dim + action_dim)).astype(bf16)

    biases = jnp.zeros((8, HP), jnp.float32)
    biases = biases.at[0, :HIDDEN].set(b1[0])
    biases = biases.at[1, :HIDDEN].set(b2[0])
    biases = biases.at[2, :HIDDEN].set(bd1[0])
    biases = biases.at[3, :HIDDEN].set(bd2[0])
    biases = biases.at[4, :2 * latent_dim].set(
        jnp.concatenate([bm, bl], axis=1)[0])
    biases = biases.at[5, :action_dim].set(bd3[0])
    p["biases"] = biases
    return p, raw


# ---------------------------- pure-JAX references ---------------------------- #

def _reference_packed(params, state, action, noise):
    """Same math as the kernel (bf16 weight/activation casts, split dots)."""
    bf16, f32 = jnp.bfloat16, jnp.float32
    A, L = action.shape[1], noise.shape[1]
    AZ = params["w_az"].shape[1]
    b = params["biases"]
    heads = params["w_heads"]

    def mm(x, w):
        return jnp.dot(x.astype(bf16), w, preferred_element_type=f32)

    action_p = jnp.pad(action, ((0, 0), (0, AZ - A)))
    h = jnp.maximum(mm(state, params["w_state"][0])
                    + mm(action_p, params["w_az"][0]) + b[0:1], 0.0)
    h = jnp.maximum(mm(h, params["w_hidden"][0]) + b[1:2], 0.0)
    ml = mm(h, heads[:, :2 * L]) + b[4:5, :2 * L]
    mean = ml[:, :L]
    std = jnp.exp(jnp.clip(ml[:, L:], -4.0, 15.0))
    z = mean + std * noise
    z_p = jnp.pad(z, ((0, 0), (0, AZ - L)))
    a = jnp.maximum(mm(state, params["w_state"][1])
                    + mm(z_p, params["w_az"][1]) + b[2:3], 0.0)
    a = jnp.maximum(mm(a, params["w_hidden"][1]) + b[3:4], 0.0)
    u = mm(a, heads[:, 2 * L:]) + b[5:6, :A]
    return u, mean, std


def _reference_f32(raw, state, action, noise):
    """True f32 replica of the original PyTorch Generator.forward."""
    relu = lambda x: jnp.maximum(x, 0.0)
    h = relu(jnp.concatenate([state, action], 1) @ raw["w1"] + raw["b1"])
    h = relu(h @ raw["w2"] + raw["b2"])
    mean = h @ raw["wm"] + raw["bm"]
    std = jnp.exp(jnp.clip(h @ raw["wl"] + raw["bl"], -4.0, 15.0))
    z = mean + std * noise
    a = relu(jnp.concatenate([state, z], 1) @ raw["wd1"] + raw["bd1"])
    a = relu(a @ raw["wd2"] + raw["bd2"])
    u = a @ raw["wd3"] + raw["bd3"]
    return u, mean, std


# ---------------------------------- main ------------------------------------ #

if __name__ == "__main__":
    B = 8
    input_dim, action_dim = 16, 4
    latent_dim = 2 * action_dim  # BCQ convention

    root = jax.random.PRNGKey(0)
    k_params, k_state, k_action, k_noise = jax.random.split(root, 4)

    params, raw = init_generator_params(k_params, input_dim, action_dim, latent_dim)
    state = jax.random.normal(k_state, (B, input_dim), jnp.float32)
    action = jax.random.normal(k_action, (B, action_dim), jnp.float32)
    # torch.distributions.Normal(0,1).sample() equivalent, drawn deterministically.
    noise = jax.random.normal(k_noise, (B, latent_dim), jnp.float32)

    u, mean, std = generator_forward(params, state, action, noise)
    jax.block_until_ready((u, mean, std))

    # shape / sanity checks
    assert u.shape == (B, action_dim)
    assert mean.shape == (B, latent_dim)
    assert std.shape == (B, latent_dim)
    assert bool(jnp.all(std > 0.0))
    assert bool(jnp.all(jnp.isfinite(u)))

    # self-consistency vs a pure-JAX replica of the same bf16 math
    u_r, mean_r, std_r = _reference_packed(params, state, action, noise)
    assert bool(jnp.allclose(mean, mean_r, rtol=2e-2, atol=2e-2))
    assert bool(jnp.allclose(std, std_r, rtol=2e-2, atol=2e-2))
    assert bool(jnp.allclose(u, u_r, rtol=2e-2, atol=2e-2))

    # fidelity spot-check vs the true f32 PyTorch-equivalent math
    u_f, mean_f, std_f = _reference_f32(raw, state, action, noise)
    assert bool(jnp.allclose(mean, mean_f, rtol=5e-2, atol=5e-2))
    assert bool(jnp.allclose(std, std_f, rtol=5e-2, atol=5e-2))
    assert bool(jnp.allclose(u, u_f, rtol=5e-2, atol=5e-2))

    print("KERNEL_OK")
</pallas_src>

<mosaic_0001>
module attributes {stable_mosaic.version = 11 : i64} {
  func.func @_generator_kernel(%arg0: i32, %arg1: memref<8x16xf32, #tpu.memory_space<vmem>>, %arg2: memref<8x4xf32, #tpu.memory_space<vmem>>, %arg3: memref<8x8xf32, #tpu.memory_space<vmem>>, %arg4: memref<2x16x768xbf16, #tpu.memory_space<vmem>>, %arg5: memref<2x8x768xbf16, #tpu.memory_space<vmem>>, %arg6: memref<2x768x768xbf16, #tpu.memory_space<vmem>>, %arg7: memref<768x20xbf16, #tpu.memory_space<vmem>>, %arg8: memref<8x768xf32, #tpu.memory_space<vmem>>, %arg9: memref<8x128xf32, #tpu.memory_space<vmem>>) attributes {dimension_semantics = [#tpu.dimension_semantics<parallel>], iteration_bounds = array<i64: 1>, scalar_prefetch = 0 : i64, scratch_operands = 0 : i64, tpu.core_type = #tpu.core_type<tc>, window_params = [{transform_indices = @transform_0, window_bounds = array<i64: 8, 16>}, {transform_indices = @transform_1, window_bounds = array<i64: 8, 4>}, {transform_indices = @transform_2, window_bounds = array<i64: 8, 8>}, {pipeline_mode = #tpu.pipeline_mode<synchronous>, transform_indices = @transform_3, window_bounds = array<i64: 2, 16, 768>}, {pipeline_mode = #tpu.pipeline_mode<synchronous>, transform_indices = @transform_4, window_bounds = array<i64: 2, 8, 768>}, {pipeline_mode = #tpu.pipeline_mode<synchronous>, transform_indices = @transform_5, window_bounds = array<i64: 2, 768, 768>}, {pipeline_mode = #tpu.pipeline_mode<synchronous>, transform_indices = @transform_6, window_bounds = array<i64: 768, 20>}, {pipeline_mode = #tpu.pipeline_mode<synchronous>, transform_indices = @transform_7, window_bounds = array<i64: 8, 768>}, {transform_indices = @transform_8, window_bounds = array<i64: 8, 128>}]} {
    %c0 = arith.constant 0 : index
    %c0_0 = arith.constant 0 : index
    %0 = vector.load %arg8[%c0, %c0_0] : memref<8x768xf32, #tpu.memory_space<vmem>>, vector<8x768xf32>
    %c0_1 = arith.constant 0 : index
    %c0_2 = arith.constant 0 : index
    %1 = vector.load %arg7[%c0_1, %c0_2] : memref<768x20xbf16, #tpu.memory_space<vmem>>, vector<768x20xbf16>
    %c0_3 = arith.constant 0 : index
    %c0_4 = arith.constant 0 : index
    %2 = vector.load %arg1[%c0_3, %c0_4] : memref<8x16xf32, #tpu.memory_space<vmem>>, vector<8x16xf32>
    %3 = arith.truncf %2 : vector<8x16xf32> to vector<8x16xbf16>
    %c0_5 = arith.constant 0 : index
    %c0_6 = arith.constant 0 : index
    %4 = vector.load %arg2[%c0_5, %c0_6] : memref<8x4xf32, #tpu.memory_space<vmem>>, vector<8x4xf32>
    %5 = arith.truncf %4 : vector<8x4xf32> to vector<8x4xbf16>
    %cst = arith.constant 0.000000e+00 : bf16
    %6 = vector.broadcast %cst : bf16 to vector<8x4xbf16>
    %7 = tpu.concatenate %5, %6 in 1 : vector<8x4xbf16>, vector<8x4xbf16> -> vector<8x8xbf16>
    %c0_7 = arith.constant 0 : index
    %c0_8 = arith.constant 0 : index
    %c0_9 = arith.constant 0 : index
    %8 = vector.load %arg4[%c0_7, %c0_8, %c0_9] : memref<2x16x768xbf16, #tpu.memory_space<vmem>>, vector<1x16x768xbf16>
    %9 = vector.shape_cast %8 : vector<1x16x768xbf16> to vector<16x768xbf16>
    %cst_10 = arith.constant dense<0.000000e+00> : vector<8x768xf32>
    %10 = tpu.matmul %3, %9, %cst_10 {dimension_numbers = #tpu.dot_dimension_numbers<[1], [0], [0], [1], [0, 0, 1, 1], [], []>} : vector<8x16xbf16>, vector<16x768xbf16>, vector<8x768xf32> -> vector<8x768xf32>
    %c0_11 = arith.constant 0 : index
    %c0_12 = arith.constant 0 : index
    %c0_13 = arith.constant 0 : index
    %11 = vector.load %arg5[%c0_11, %c0_12, %c0_13] : memref<2x8x768xbf16, #tpu.memory_space<vmem>>, vector<1x8x768xbf16>
    %12 = vector.shape_cast %11 : vector<1x8x768xbf16> to vector<8x768xbf16>
    %cst_14 = arith.constant dense<0.000000e+00> : vector<8x768xf32>
    %13 = tpu.matmul %7, %12, %cst_14 {dimension_numbers = #tpu.dot_dimension_numbers<[1], [0], [0], [1], [0, 0, 1, 1], [], []>} : vector<8x8xbf16>, vector<8x768xbf16>, vector<8x768xf32> -> vector<8x768xf32>
    %14 = arith.addf %10, %13 : vector<8x768xf32>
    %15 = vector.extract_strided_slice %0 {offsets = [0, 0], sizes = [1, 768], strides = [1, 1]} : vector<8x768xf32> to vector<1x768xf32>
    %16 = vector.broadcast %15 : vector<1x768xf32> to vector<8x768xf32>
    %17 = arith.addf %14, %16 : vector<8x768xf32>
    %cst_15 = arith.constant 0.000000e+00 : f32
    %18 = vector.broadcast %cst_15 : f32 to vector<8x768xf32>
    %19 = arith.maximumf %17, %18 : vector<8x768xf32>
    %20 = arith.truncf %19 : vector<8x768xf32> to vector<8x768xbf16>
    %c0_16 = arith.constant 0 : index
    %c0_17 = arith.constant 0 : index
    %c0_18 = arith.constant 0 : index
    %21 = vector.load %arg6[%c0_16, %c0_17, %c0_18] : memref<2x768x768xbf16, #tpu.memory_space<vmem>>, vector<1x768x768xbf16>
    %22 = vector.shape_cast %21 : vector<1x768x768xbf16> to vector<768x768xbf16>
    %cst_19 = arith.constant dense<0.000000e+00> : vector<8x768xf32>
    %23 = tpu.matmul %20, %22, %cst_19 {dimension_numbers = #tpu.dot_dimension_numbers<[1], [0], [0], [1], [0, 0, 1, 1], [], []>} : vector<8x768xbf16>, vector<768x768xbf16>, vector<8x768xf32> -> vector<8x768xf32>
    %24 = vector.extract_strided_slice %0 {offsets = [1, 0], sizes = [1, 768], strides = [1, 1]} : vector<8x768xf32> to vector<1x768xf32>
    %25 = vector.broadcast %24 : vector<1x768xf32> to vector<8x768xf32>
    %26 = arith.addf %23, %25 : vector<8x768xf32>
    %cst_20 = arith.constant 0.000000e+00 : f32
    %27 = vector.broadcast %cst_20 : f32 to vector<8x768xf32>
    %28 = arith.maximumf %26, %27 : vector<8x768xf32>
    %29 = arith.truncf %28 : vector<8x768xf32> to vector<8x768xbf16>
    %30 = vector.extract_strided_slice %1 {offsets = [0, 0], sizes = [768, 16], strides = [1, 1]} : vector<768x20xbf16> to vector<768x16xbf16>
    %cst_21 = arith.constant dense<0.000000e+00> : vector<8x16xf32>
    %31 = tpu.matmul %29, %30, %cst_21 {dimension_numbers = #tpu.dot_dimension_numbers<[1], [0], [0], [1], [0, 0, 1, 1], [], []>} : vector<8x768xbf16>, vector<768x16xbf16>, vector<8x16xf32> -> vector<8x16xf32>
    %32 = vector.extract_strided_slice %0 {offsets = [4, 0], sizes = [1, 16], strides = [1, 1]} : vector<8x768xf32> to vector<1x16xf32>
    %33 = vector.broadcast %32 : vector<1x16xf32> to vector<8x16xf32>
    %34 = arith.addf %31, %33 : vector<8x16xf32>
    %35 = vector.extract_strided_slice %34 {offsets = [0, 0], sizes = [8, 8], strides = [1, 1]} : vector<8x16xf32> to vector<8x8xf32>
    %36 = vector.extract_strided_slice %34 {offsets = [0, 8], sizes = [8, 8], strides = [1, 1]} : vector<8x16xf32> to vector<8x8xf32>
    %cst_22 = arith.constant -4.000000e+00 : f32
    %cst_23 = arith.constant 1.500000e+01 : f32
    %37 = vector.broadcast %cst_22 : f32 to vector<8x8xf32>
    %38 = arith.maximumf %37, %36 : vector<8x8xf32>
    %39 = vector.broadcast %cst_23 : f32 to vector<8x8xf32>
    %40 = arith.minimumf %39, %38 : vector<8x8xf32>
    %41 = math.exp %40 : vector<8x8xf32>
    %c0_24 = arith.constant 0 : index
    %c0_25 = arith.constant 0 : index
    %42 = vector.load %arg3[%c0_24, %c0_25] : memref<8x8xf32, #tpu.memory_space<vmem>>, vector<8x8xf32>
    %43 = arith.mulf %41, %42 : vector<8x8xf32>
    %44 = arith.addf %35, %43 : vector<8x8xf32>
    %45 = arith.truncf %44 : vector<8x8xf32> to vector<8x8xbf16>
    %c1 = arith.constant 1 : index
    %c0_26 = arith.constant 0 : index
    %c0_27 = arith.constant 0 : index
    %46 = vector.load %arg4[%c1, %c0_26, %c0_27] : memref<2x16x768xbf16, #tpu.memory_space<vmem>>, vector<1x16x768xbf16>
    %47 = vector.shape_cast %46 : vector<1x16x768xbf16> to vector<16x768xbf16>
    %cst_28 = arith.constant dense<0.000000e+00> : vector<8x768xf32>
    %48 = tpu.matmul %3, %47, %cst_28 {dimension_numbers = #tpu.dot_dimension_numbers<[1], [0], [0], [1], [0, 0, 1, 1], [], []>} : vector<8x16xbf16>, vector<16x768xbf16>, vector<8x768xf32> -> vector<8x768xf32>
    %c1_29 = arith.constant 1 : index
    %c0_30 = arith.constant 0 : index
    %c0_31 = arith.constant 0 : index
    %49 = vector.load %arg5[%c1_29, %c0_30, %c0_31] : memref<2x8x768xbf16, #tpu.memory_space<vmem>>, vector<1x8x768xbf16>
    %50 = vector.shape_cast %49 : vector<1x8x768xbf16> to vector<8x768xbf16>
    %cst_32 = arith.constant dense<0.000000e+00> : vector<8x768xf32>
    %51 = tpu.matmul %45, %50, %cst_32 {dimension_numbers = #tpu.dot_dimension_numbers<[1], [0], [0], [1], [0, 0, 1, 1], [], []>} : vector<8x8xbf16>, vector<8x768xbf16>, vector<8x768xf32> -> vector<8x768xf32>
    %52 = arith.addf %48, %51 : vector<8x768xf32>
    %53 = vector.extract_strided_slice %0 {offsets = [2, 0], sizes = [1, 768], strides = [1, 1]} : vector<8x768xf32> to vector<1x768xf32>
    %54 = vector.broadcast %53 : vector<1x768xf32> to vector<8x768xf32>
    %55 = arith.addf %52, %54 : vector<8x768xf32>
    %cst_33 = arith.constant 0.000000e+00 : f32
    %56 = vector.broadcast %cst_33 : f32 to vector<8x768xf32>
    %57 = arith.maximumf %55, %56 : vector<8x768xf32>
    %58 = arith.truncf %57 : vector<8x768xf32> to vector<8x768xbf16>
    %c1_34 = arith.constant 1 : index
    %c0_35 = arith.constant 0 : index
    %c0_36 = arith.constant 0 : index
    %59 = vector.load %arg6[%c1_34, %c0_35, %c0_36] : memref<2x768x768xbf16, #tpu.memory_space<vmem>>, vector<1x768x768xbf16>
    %60 = vector.shape_cast %59 : vector<1x768x768xbf16> to vector<768x768xbf16>
    %cst_37 = arith.constant dense<0.000000e+00> : vector<8x768xf32>
    %61 = tpu.matmul %58, %60, %cst_37 {dimension_numbers = #tpu.dot_dimension_numbers<[1], [0], [0], [1], [0, 0, 1, 1], [], []>} : vector<8x768xbf16>, vector<768x768xbf16>, vector<8x768xf32> -> vector<8x768xf32>
    %62 = vector.extract_strided_slice %0 {offsets = [3, 0], sizes = [1, 768], strides = [1, 1]} : vector<8x768xf32> to vector<1x768xf32>
    %63 = vector.broadcast %62 : vector<1x768xf32> to vector<8x768xf32>
    %64 = arith.addf %61, %63 : vector<8x768xf32>
    %cst_38 = arith.constant 0.000000e+00 : f32
    %65 = vector.broadcast %cst_38 : f32 to vector<8x768xf32>
    %66 = arith.maximumf %64, %65 : vector<8x768xf32>
    %67 = arith.truncf %66 : vector<8x768xf32> to vector<8x768xbf16>
    %68 = vector.extract_strided_slice %1 {offsets = [0, 16], sizes = [768, 4], strides = [1, 1]} : vector<768x20xbf16> to vector<768x4xbf16>
    %cst_39 = arith.constant dense<0.000000e+00> : vector<8x4xf32>
    %69 = tpu.matmul %67, %68, %cst_39 {dimension_numbers = #tpu.dot_dimension_numbers<[1], [0], [0], [1], [0, 0, 1, 1], [], []>} : vector<8x768xbf16>, vector<768x4xbf16>, vector<8x4xf32> -> vector<8x4xf32>
    %70 = vector.extract_strided_slice %0 {offsets = [5, 0], sizes = [1, 4], strides = [1, 1]} : vector<8x768xf32> to vector<1x4xf32>
    %71 = vector.broadcast %70 : vector<1x4xf32> to vector<8x4xf32>
    %72 = arith.addf %69, %71 : vector<8x4xf32>
    %cst_40 = arith.constant 0.000000e+00 : f32
    %73 = vector.broadcast %cst_40 : f32 to vector<8x108xf32>
    %74 = tpu.concatenate %72, %35, %41, %73 in 1 : vector<8x4xf32>, vector<8x8xf32>, vector<8x8xf32>, vector<8x108xf32> -> vector<8x128xf32>
    %c0_41 = arith.constant 0 : index
    %c0_42 = arith.constant 0 : index
    %75 = vector.load %arg9[%c0_41, %c0_42] : memref<8x128xf32, #tpu.memory_space<vmem>>, vector<8x128xf32>
    tpu.vector_store %arg9[%c0_41, %c0_42], %74 {strides = array<i32>} : memref<8x128xf32, #tpu.memory_space<vmem>>, vector<8x128xf32>,
    return
  }
  func.func @transform_0(%arg0: i32) -> (i32, i32) {
    %c0_i32 = arith.constant 0 : i32
    %c0_i32_0 = arith.constant 0 : i32
    return %arg0, %c0_i32 : i32, i32
  }
  func.func @transform_1(%arg0: i32) -> (i32, i32) {
    %c0_i32 = arith.constant 0 : i32
    %c0_i32_0 = arith.constant 0 : i32
    return %arg0, %c0_i32 : i32, i32
  }
  func.func @transform_2(%arg0: i32) -> (i32, i32) {
    %c0_i32 = arith.constant 0 : i32
    %c0_i32_0 = arith.constant 0 : i32
    return %arg0, %c0_i32 : i32, i32
  }
  func.func @transform_3(%arg0: i32) -> (i32, i32, i32) {
    %c0_i32 = arith.constant 0 : i32
    %c0_i32_0 = arith.constant 0 : i32
    %c0_i32_1 = arith.constant 0 : i32
    %c0_i32_2 = arith.constant 0 : i32
    return %c0_i32, %c0_i32_0, %c0_i32_1 : i32, i32, i32
  }
  func.func @transform_4(%arg0: i32) -> (i32, i32, i32) {
    %c0_i32 = arith.constant 0 : i32
    %c0_i32_0 = arith.constant 0 : i32
    %c0_i32_1 = arith.constant 0 : i32
    %c0_i32_2 = arith.constant 0 : i32
    return %c0_i32, %c0_i32_0, %c0_i32_1 : i32, i32, i32
  }
  func.func @transform_5(%arg0: i32) -> (i32, i32, i32) {
    %c0_i32 = arith.constant 0 : i32
    %c0_i32_0 = arith.constant 0 : i32
    %c0_i32_1 = arith.constant 0 : i32
    %c0_i32_2 = arith.constant 0 : i32
    return %c0_i32, %c0_i32_0, %c0_i32_1 : i32, i32, i32
  }
  func.func @transform_6(%arg0: i32) -> (i32, i32) {
    %c0_i32 = arith.constant 0 : i32
    %c0_i32_0 = arith.constant 0 : i32
    %c0_i32_1 = arith.constant 0 : i32
    return %c0_i32, %c0_i32_0 : i32, i32
  }
  func.func @transform_7(%arg0: i32) -> (i32, i32) {
    %c0_i32 = arith.constant 0 : i32
    %c0_i32_0 = arith.constant 0 : i32
    %c0_i32_1 = arith.constant 0 : i32
    return %c0_i32, %c0_i32_0 : i32, i32
  }
  func.func @transform_8(%arg0: i32) -> (i32, i32) {
    %c0_i32 = arith.constant 0 : i32
    %c0_i32_0 = arith.constant 0 : i32
    return %arg0, %c0_i32 : i32, i32
  }
}

</mosaic_0001>

<bundles_post_ra>
// kernel: generator_forward.1
= control target key start
LH: loop header
LB: loop body
LE: loop exit
PB: predicated region body
PF: predicated region fallthrough
CT: control target
= control target key end

     0   :  { %13 = vsyncpa [#allocation3], 0  ;;  %s9971_s0 = inlined_call_operand.hbm [shape: f32[8,16], index: 0, kind: input, shape index: {}]   ;;  %s9972_s1 = inlined_call_operand.vmem [shape: f32[8,4], index: 1, kind: input, shape index: {}]   ;;  %s9973_s2 = inlined_call_operand.hbm [shape: f32[8,8], index: 2, kind: input, shape index: {}]   ;;  %s9974_s3 = inlined_call_operand.hbm [shape: bf16[2,16,768], index: 3, kind: input, shape index: {}]   ;;  %s9975_s4 = inlined_call_operand.hbm [shape: bf16[2,8,768], index: 4, kind: input, shape index: {}]   ;;  %s9976_s5 = inlined_call_operand.hbm [shape: bf16[2,768,768], index: 5, kind: input, shape index: {}]   ;;  %s9977_s6 = inlined_call_operand.vmem [shape: bf16[768,20], index: 6, kind: input, shape index: {}]   ;;  %s9978_s7 = inlined_call_operand.hbm [shape: f32[8,768], index: 7, kind: input, shape index: {}]   ;;  %s9979_s8 = inlined_call_operand.vmem [shape: f32[8,128], index: 8, kind: output, shape index: {}]  }
   0x1   :  { %14 = vsyncpa [#allocation5], 0 }
   0x2   :  { %15 = vsyncpa [#allocation8], 0  ;;  %s35_s29 = sshll.u32 %s9973_s2, 4  ;;  %s36_s29 = int_to_ptr.hbm [resolvable:$true] %s35_s29 }
   0x3   :  { %16 = vsyncpa [#allocation11], 0  ;;  %s9189_s30 = smov [#allocation4]   ;;  %s58_s12 = sshll.u32 %s9975_s4, 4  ;;  %s59_s12 = int_to_ptr.hbm [resolvable:$true] %s58_s12 }
   0x4   :  { %s37_s9 = sshll.u32 %s9189_s30, 4  ;;  %s9190_s13 = smov [#allocation7]   ;;  %s38_s9 = int_to_ptr.vmem [resolvable:$true] %s37_s9 }
   0x5   :  { %40 = dma.hbm_to_vmem [thread:$0]  %s36_s29, 128, %s38_s9, [#allocation5]  }
   0x6   :  { %s60_s14 = sshll.u32 %s9190_s13, 4  ;;  %s22_s17 = sshll.u32 %s9971_s0, 4  ;;  %s61_s14 = int_to_ptr.vmem [resolvable:$true] %s60_s14  ;;  %s23_s17 = int_to_ptr.hbm [resolvable:$true] %s22_s17 }
   0x7   :  { %s9191_s2 = smov 384   ;;  %s9192_s18 = smov 24  }
   0x8   :  { %66 = dma.hbm_to_vmem [thread:$0]  %s59_s12, 768, %s61_s14, [#allocation8], %s9191_s2, %s9191_s2, %s9192_s18  }
   0x9   :  { %s45_s21 = sshll.u32 %s9974_s3, 4  ;;  %s9193_s22 = smov [#allocation2]   ;;  %s46_s21 = int_to_ptr.hbm [resolvable:$true] %s45_s21 }
   0xa   :  { %s24_s23 = sshll.u32 %s9193_s22, 4  ;;  %s9194_s4 = smov [#allocation6]   ;;  %s25_s23 = int_to_ptr.vmem [resolvable:$true] %s24_s23 }
   0xb   :  { %27 = dma.hbm_to_vmem [thread:$0]  %s23_s17, 128, %s25_s23, [#allocation3]  }
   0xc   :  { %s47_s24 = sshll.u32 %s9194_s4, 4  ;;  %s71_s0 = sshll.u32 %s9976_s5, 4  ;;  %s48_s24 = int_to_ptr.vmem [resolvable:$true] %s47_s24  ;;  %s72_s0 = int_to_ptr.hbm [resolvable:$true] %s71_s0 }
   0xd   :  { %53 = dma.hbm_to_vmem [thread:$0]  %s46_s21, 1536, %s48_s24, [#allocation5], %s9191_s2, %s9191_s2, %s9192_s18  }
   0xe   :  { %s87_s29 = sshll.u32 %s9978_s7, 4  ;;  %s9195_s30 = smov [#allocation9]   ;;  %s88_s29 = int_to_ptr.hbm [resolvable:$true] %s87_s29 }
   0xf   :  { %s73_s3 = sshll.u32 %s9195_s30, 4  ;;  %s9196_s9 = smov [#allocation10]   ;;  %s74_s3 = int_to_ptr.vmem [resolvable:$true] %s73_s3 }
  0x10   :  { %79 = dma.hbm_to_vmem [thread:$0]  %s72_s0, 73728, %s74_s3, [#allocation8], %s9191_s2, %s9191_s2, %s9192_s18  }
  0x11   :  { %s89_s10 = sshll.u32 %s9196_s9, 4  ;;  %s90_s10 = int_to_ptr.vmem [resolvable:$true] %s89_s10 }
  0x12   :  { %92 = dma.hbm_to_vmem [thread:$0]  %s88_s29, 768, %s90_s10, [#allocation11]  }
  0x13   :  { %9181 = dma.done.wait [#allocation3], 128  }
  0x14   :  { %9182 = vsyncadd [#allocation3], 4294967168 }
  0x15   :  { %9183 = dma.done.wait [#allocation5], 1664  }
  0x16   :  { %9184 = vsyncadd [#allocation5], 4294965632 }
  0x17   :  { %9185 = dma.done.wait [#allocation8], 74496  }
  0x18   :  { %9186 = vsyncadd [#allocation8], 4294892800 }
  0x19   :  { %9187 = dma.done.wait [#allocation11], 768  }
  0x1a   :  { %9188 = vsyncadd [#allocation11], 4294966528  ;;  %v234_v0 = vld [vmem:[#allocation7] sm:$0xff]  ;;  %vm255_vm0 = vcmask 1043456   ;;  %v222_v1 = vld [vmem:[%s9972_s1] sm:$0xff]  ;;  %vm224_vm1 = vcmask 31744  }
  0x1b   :  { %v236_v2 = vld [vmem:[#allocation7 + $0x10] sm:$0xff]  ;;  %v240_v3 = vunpack.c.l.b16 %v234_v0  ;;  %v241_v4 = vunpack.c.h.b16 %v234_v0  ;;  %v235_v6 = vld [vmem:[#allocation7 + $0x8] sm:$0xff]  ;;  %v223_v7 = vpack.c.bf16 %v222_v1, %v222_v1  ;;  %v8422_v15 = vld [vmem:[#allocation6 + $0x1c] sm:$0xf0]  ;;  %vm252_vm2 = vcmask 64512   ;;  %s9197_s4 = smov 112  }
  0x1c   :  { %v244_v5 = vunpack.c.l.b16 %v236_v2  ;;  %v245_v8 = vunpack.c.h.b16 %v236_v2  ;;  %v242_v9 = vunpack.c.l.b16 %v235_v6  ;;  %v243_v10 = vunpack.c.h.b16 %v235_v6  ;;  %v5818_v11 = vld [vmem:[#allocation6 + $0x8] sm:$0xf]  ;;  %v8419_v16 = vld [vmem:[#allocation6 + $0xc] sm:$0xf]  ;;  %v5820_v17 = vld [vmem:[#allocation6 + $0x20] sm:$0xf0] }
  0x1d   :  { %v246_v12 = vpack.c.b16 %v240_v3, %v240_v3  ;;  %v247_v13 = vpack.c.b16 %v241_v4, %v241_v4  ;;  %v5810_v21 = vld [vmem:[#allocation6] sm:$0xf]  ;;  %v8421_v22 = vld [vmem:[#allocation6 + $0x14] sm:$0xf0]  ;;  %v8418_v23 = vld [vmem:[#allocation6 + $0x4] sm:$0xf]  ;;  %v5819_v32 = vor.u32 %v8422_v15, %v5818_v11  ;;  %v5823_v33 = vor.u32 %v8419_v16, %v5820_v17 }
  0x1e   :  { %v250_v14 = vpack.c.b16 %v244_v5, %v244_v5  ;;  %v251_v18 = vpack.c.b16 %v245_v8, %v245_v8  ;;  %v248_v19 = vpack.c.b16 %v242_v9, %v242_v9  ;;  %v249_v20 = vpack.c.b16 %v243_v10, %v243_v10  ;;  %v5812_v27 = vld [vmem:[#allocation6 + $0x18] sm:$0xf0]  ;;  %v220_v36 = vld [vmem:[#allocation2] sm:$0xff]  ;;  %v8423_v38 = vld [vmem:[#allocation6 + $0x24] sm:$0xf0]  ;;  %s9199_s20 = smov 4  }
  0x1f   :  { %v257_v24 = vsel %vm255_vm0, %v246_v12, 0  ;;  %v260_v25 = vsel %vm255_vm0, %v247_v13, 0  ;;  %v227_v28 = vsel %vm224_vm1, %v223_v7, 0  ;;  %v5811_v34 = vor.u32 %v8421_v22, %v5810_v21  ;;  %v5826_v37 = vld [vmem:[#allocation6 + $0x10] sm:$0xf]  ;;  %s9200_s21 = smov 120  }
  0x20   :  { %v269_v26 = vsel %vm255_vm0, %v250_v14, 0  ;;  %281 = vmatpush.bf16.msra.mxu2 %v257_v24  ;;  %294 = vmatpush.bf16.msra.mxu3 %v260_v25  ;;  %v272_v29 = vsel %vm255_vm0, %v251_v18, 0  ;;  %v263_v30 = vsel %vm255_vm0, %v248_v19, 0  ;;  %v266_v31 = vsel %vm255_vm0, %v249_v20, 0  ;;  %v8420_v39 = vld [vmem:[#allocation6 + $0x14] sm:$0xf] }
  0x21   :  { %333 = vmatpush.bf16.msra.mxu0 %v269_v26  ;;  %346 = vmatpush.bf16.msra.mxu1 %v272_v29  ;;  %v5815_v35 = vor.u32 %v8418_v23, %v5812_v27  ;;  %v5828_v40 = vld [vmem:[#allocation6 + $0x28] sm:$0xf0]  ;;  %v9278_v41 = vpack.c.bf16 %v220_v36, %v220_v36  ;;  %vm382_vm3 = vcmask 130048   ;;  %v5827_v42 = vor.u32 %v8423_v38, %v5826_v37  ;;  %v6008_v44 = vld [vmem:[#allocation9 + $0x150] sm:$0xf] }
  0x22   :  { %v5831_v43 = vor.u32 %v8420_v39, %v5828_v40  ;;  %v8469_v45 = vld [vmem:[#allocation9 + $0x164] sm:$0xf0]  ;;  %v6200_v47 = vld [vmem:[#allocation9 + $0x2d0] sm:$0xf]  ;;  %v5984_v50 = vld [vmem:[#allocation9 + $0x120] sm:$0xf] }
  0x23   :  { %5802 = vmatmul.msk.bf16.vlgmr.msra.gmra.mxu2 %vm252_vm2, %v227_v28  ;;  %5803 = vmatmul.msk.bf16.vlgmr.msra.gmra.mxu3 %vm252_vm2, %v227_v28  ;;  %v6009_v46 = vor.u32 %v8469_v45, %v6008_v44  ;;  %v8517_v48 = vld [vmem:[#allocation9 + $0x2e4] sm:$0xf0]  ;;  %v8463_v51 = vld [vmem:[#allocation9 + $0x134] sm:$0xf0]  ;;  %v6176_v52 = vld [vmem:[#allocation9 + $0x2a0] sm:$0xf] }
  0x24   :  { %307 = vmatpush.bf16.msrb.mxu2 %v263_v30  ;;  %320 = vmatpush.bf16.msrb.mxu3 %v266_v31  ;;  %v6201_v49 = vor.u32 %v8517_v48, %v6200_v47  ;;  %v6392_v53 = vld [vmem:[#allocation9 + $0x450] sm:$0xf]  ;;  %v8565_v54 = vld [vmem:[#allocation9 + $0x464] sm:$0xf0]  ;;  %v5985_v55 = vor.u32 %v8463_v51, %v5984_v50  ;;  %v8511_v56 = vld [vmem:[#allocation9 + $0x2b4] sm:$0xf0] }
  0x25   :  { %5806 = vmatmul.msk.bf16.vlgmr.msra.gmra.mxu0 %vm252_vm2, %v227_v28  ;;  %5807 = vmatmul.msk.bf16.vlgmr.msra.gmra.mxu1 %vm252_vm2, %v227_v28  ;;  %v6584_v57 = vld [vmem:[#allocation9 + $0x5d0] sm:$0xf]  ;;  %v8613_v58 = vld [vmem:[#allocation9 + $0x5e4] sm:$0xf0]  ;;  %v6177_v59 = vor.u32 %v8511_v56, %v6176_v52  ;;  %v6393_v0 = vor.u32 %v8565_v54, %v6392_v53  ;;  %v6368_v2 = vld [vmem:[#allocation9 + $0x420] sm:$0xf] }
  0x26   :  { %419 = vmatpush.bf16.msrb.mxu0 %v5819_v32  ;;  %432 = vmatpush.bf16.msrb.mxu1 %v5823_v33  ;;  %v5960_v60 = vld [vmem:[#allocation9 + $0xf0] sm:$0xf]  ;;  %v8457_v61 = vld [vmem:[#allocation9 + $0x104] sm:$0xf0]  ;;  %v6585_v1 = vor.u32 %v8613_v58, %v6584_v57  ;;  %v8559_v3 = vld [vmem:[#allocation9 + $0x434] sm:$0xf0] }
  0x27   :  { %v6152_v62 = vld [vmem:[#allocation9 + $0x270] sm:$0xf]  ;;  %v8505_v63 = vld [vmem:[#allocation9 + $0x284] sm:$0xf0]  ;;  %v6560_v4 = vld [vmem:[#allocation9 + $0x5a0] sm:$0xf]  ;;  %v5961_v6 = vor.u32 %v8457_v61, %v5960_v60  ;;  %v6369_v12 = vor.u32 %v8559_v3, %v6368_v2 }
  0x28   :  { %393 = vmatpush.bf16.msra.mxu2 %v5811_v34  ;;  %406 = vmatpush.bf16.msra.mxu3 %v5815_v35  ;;  %v8607_v5 = vld [vmem:[#allocation9 + $0x5b4] sm:$0xf0]  ;;  %v6153_v7 = vor.u32 %v8505_v63, %v6152_v62  ;;  %v5936_v8 = vld [vmem:[#allocation9 + $0xc0] sm:$0xf]  ;;  %v6344_v14 = vld [vmem:[#allocation9 + $0x3f0] sm:$0xf] }
  0x29   :  { %v8451_v9 = vld [vmem:[#allocation9 + $0xd4] sm:$0xf0]  ;;  %v6128_v10 = vld [vmem:[#allocation9 + $0x240] sm:$0xf]  ;;  %v6561_v13 = vor.u32 %v8607_v5, %v6560_v4  ;;  %v8553_v15 = vld [vmem:[#allocation9 + $0x404] sm:$0xf0] }
  0x2a   :  { %2222 = vmatpush.bf16.msra.mxu0 %v6009_v46  ;;  %2235 = vmatpush.bf16.msra.mxu1 %v6201_v49  ;;  %v8499_v11 = vld [vmem:[#allocation9 + $0x254] sm:$0xf0]  ;;  %v6536_v16 = vld [vmem:[#allocation9 + $0x570] sm:$0xf]  ;;  %v8601_v17 = vld [vmem:[#allocation9 + $0x584] sm:$0xf0]  ;;  %v5937_v18 = vor.u32 %v8451_v9, %v5936_v8  ;;  %v6345_v24 = vor.u32 %v8553_v15, %v6344_v14 }
  0x2b   :  { %v6129_v19 = vor.u32 %v8499_v11, %v6128_v10  ;;  %v5912_v20 = vld [vmem:[#allocation9 + $0x90] sm:$0xf]  ;;  %v8445_v21 = vld [vmem:[#allocation9 + $0xa4] sm:$0xf0]  ;;  %v6537_v25 = vor.u32 %v8601_v17, %v6536_v16  ;;  %v6320_v26 = vld [vmem:[#allocation9 + $0x3c0] sm:$0xf] }
  0x2c   :  { %v6104_v22 = vld [vmem:[#allocation9 + $0x210] sm:$0xf]  ;;  %v8493_v23 = vld [vmem:[#allocation9 + $0x224] sm:$0xf0]  ;;  %v8547_v27 = vld [vmem:[#allocation9 + $0x3d4] sm:$0xf0]  ;;  %v5913_v30 = vor.u32 %v8445_v21, %v5912_v20 }
  0x2d   :  { %v8595_v29 = vld [vmem:[#allocation9 + $0x554] sm:$0xf0]  ;;  %v6105_v31 = vor.u32 %v8493_v23, %v6104_v22  ;;  %v6321_v32 = vor.u32 %v8547_v27, %v6320_v26  ;;  %v6296_v34 = vld [vmem:[#allocation9 + $0x390] sm:$0xf]  ;;  %v8541_v35 = vld [vmem:[#allocation9 + $0x3a4] sm:$0xf0] }
  0x2e   :  { %2223 = vmatpush.bf16.msra.mxu0 %v5985_v55  ;;  %2236 = vmatpush.bf16.msra.mxu1 %v6177_v59  ;;  %v6488_v36 = vld [vmem:[#allocation9 + $0x510] sm:$0xf]  ;;  %v8589_v37 = vld [vmem:[#allocation9 + $0x524] sm:$0xf0]  ;;  %v6297_v38 = vor.u32 %v8541_v35, %v6296_v34  ;;  %v6272_v40 = vld [vmem:[#allocation9 + $0x360] sm:$0xf] }
  0x2f   :  { %v6489_v39 = vor.u32 %v8589_v37, %v6488_v36  ;;  %v8583_v44 = vld [vmem:[#allocation9 + $0x4f4] sm:$0xf0]  ;;  %v6248_v47 = vld [vmem:[#allocation9 + $0x330] sm:$0xf]  ;;  %v8529_v48 = vld [vmem:[#allocation9 + $0x344] sm:$0xf0] }
  0x30   :  { %v6440_v49 = vld [vmem:[#allocation9 + $0x4b0] sm:$0xf]  ;;  %v8577_v50 = vld [vmem:[#allocation9 + $0x4c4] sm:$0xf0]  ;;  %v6249_v51 = vor.u32 %v8529_v48, %v6248_v47  ;;  %v6224_v53 = vld [vmem:[#allocation9 + $0x300] sm:$0xf] }
  0x31   :  { %v6441_v52 = vor.u32 %v8577_v50, %v6440_v49  ;;  %v8523_v54 = vld [vmem:[#allocation9 + $0x314] sm:$0xf0]  ;;  %v6416_v55 = vld [vmem:[#allocation9 + $0x480] sm:$0xf]  ;;  %v8466_v57 = vld [vmem:[#allocation9 + $0x154] sm:$0xf] }
  0x32   :  { %2224 = vmatpush.bf16.msra.mxu0 %v5961_v6  ;;  %2237 = vmatpush.bf16.msra.mxu1 %v6153_v7  ;;  %v8571_v56 = vld [vmem:[#allocation9 + $0x494] sm:$0xf0]  ;;  %v6010_v58 = vld [vmem:[#allocation9 + $0x168] sm:$0xf0]  ;;  %v8514_v59 = vld [vmem:[#allocation9 + $0x2d4] sm:$0xf]  ;;  %v6225_v61 = vor.u32 %v8523_v54, %v6224_v53 }
  0x33   :  { %5804 = vmatmul.msk.bf16.vlgmr.msrb.gmra.mxu2 %vm252_vm2, %v227_v28  ;;  %5805 = vmatmul.msk.bf16.vlgmr.msrb.gmra.mxu3 %vm252_vm2, %v227_v28  ;;  %v6512_v28 = vld [vmem:[#allocation9 + $0x540] sm:$0xf]  ;;  %v6202_v60 = vld [vmem:[#allocation9 + $0x2e8] sm:$0xf0]  ;;  %v6417_v62 = vor.u32 %v8571_v56, %v6416_v55  ;;  %v6013_v63 = vor.u32 %v8466_v57, %v6010_v58  ;;  %v5986_v2 = vld [vmem:[#allocation9 + $0x138] sm:$0xf0] }
  0x34   :  { %445 = vmatpush.bf16.msrb.mxu2 %v5827_v42  ;;  %458 = vmatpush.bf16.msrb.mxu3 %v5831_v43  ;;  %v6513_v33 = vor.u32 %v8595_v29, %v6512_v28  ;;  %v8535_v42 = vld [vmem:[#allocation9 + $0x374] sm:$0xf0]  ;;  %v6464_v43 = vld [vmem:[#allocation9 + $0x4e0] sm:$0xf]  ;;  %v8508_v3 = vld [vmem:[#allocation9 + $0x2a4] sm:$0xf] }
  0x35   :  { %5834 = vmatmul.msk.bf16.vlgmr.msrb.gmra.mxu0 %vm382_vm3, %v9278_v41  ;;  %5835 = vmatmul.msk.bf16.vlgmr.msrb.gmra.mxu1 %vm382_vm3, %v9278_v41  ;;  %v6273_v45 = vor.u32 %v8535_v42, %v6272_v40  ;;  %v6465_v46 = vor.u32 %v8583_v44, %v6464_v43  ;;  %v6178_v5 = vld [vmem:[#allocation9 + $0x2b8] sm:$0xf0]  ;;  %v5888_v7 = vld [vmem:[#allocation9 + $0x60] sm:$0xf]  ;;  %v8439_v8 = vld [vmem:[#allocation9 + $0x74] sm:$0xf0] }
  0x36   :  { %2225 = vmatpush.bf16.msra.mxu0 %v5937_v18  ;;  %2238 = vmatpush.bf16.msra.mxu1 %v6129_v19  ;;  %v6181_v6 = vor.u32 %v8508_v3, %v6178_v5  ;;  %v6080_v9 = vld [vmem:[#allocation9 + $0x1e0] sm:$0xf]  ;;  %v5889_v10 = vor.u32 %v8439_v8, %v5888_v7  ;;  %v8487_v11 = vld [vmem:[#allocation9 + $0x1f4] sm:$0xf0]  ;;  %v8502_v16 = vld [vmem:[#allocation9 + $0x274] sm:$0xf] }
  0x37   :  { %v6081_v14 = vor.u32 %v8487_v11, %v6080_v9  ;;  %v6154_v17 = vld [vmem:[#allocation9 + $0x288] sm:$0xf0]  ;;  %v5864_v18 = vld [vmem:[#allocation9 + $0x30] sm:$0xf]  ;;  %v8433_v20 = vld [vmem:[#allocation9 + $0x44] sm:$0xf0] }
  0x38   :  { %v6157_v19 = vor.u32 %v8502_v16, %v6154_v17  ;;  %v6056_v21 = vld [vmem:[#allocation9 + $0x1b0] sm:$0xf]  ;;  %v8481_v22 = vld [vmem:[#allocation9 + $0x1c4] sm:$0xf0]  ;;  %v5865_v23 = vor.u32 %v8433_v20, %v5864_v18  ;;  %v5938_v26 = vld [vmem:[#allocation9 + $0xd8] sm:$0xf0] }
  0x39   :  { %v8496_v27 = vld [vmem:[#allocation9 + $0x244] sm:$0xf]  ;;  %v6130_v29 = vld [vmem:[#allocation9 + $0x258] sm:$0xf0]  ;;  %v8475_v35 = vld [vmem:[#allocation9 + $0x194] sm:$0xf0] }
  0x3a   :  { %2226 = vmatpush.bf16.msra.mxu0 %v5913_v30  ;;  %2239 = vmatpush.bf16.msra.mxu1 %v6105_v31  ;;  %v6133_v30 = vor.u32 %v8496_v27, %v6130_v29  ;;  %v5840_v31 = vld [vmem:[#allocation9] sm:$0xf]  ;;  %v6776_v36 = vld [vmem:[#allocation9 + $0x750] sm:$0xf]  ;;  %v8661_v37 = vld [vmem:[#allocation9 + $0x764] sm:$0xf0] }
  0x3b   :  { %v6968_v40 = vld [vmem:[#allocation9 + $0x8d0] sm:$0xf]  ;;  %v8709_v42 = vld [vmem:[#allocation9 + $0x8e4] sm:$0xf0]  ;;  %v8442_v43 = vld [vmem:[#allocation9 + $0x94] sm:$0xf] }
  0x3c   :  { %v6969_v44 = vor.u32 %v8709_v42, %v6968_v40  ;;  %v6106_v47 = vld [vmem:[#allocation9 + $0x228] sm:$0xf0]  ;;  %v6752_v50 = vld [vmem:[#allocation9 + $0x720] sm:$0xf]  ;;  %v8703_v54 = vld [vmem:[#allocation9 + $0x8b4] sm:$0xf0] }
  0x3d   :  { %v8436_v55 = vld [vmem:[#allocation9 + $0x64] sm:$0xf]  ;;  %v5890_v56 = vld [vmem:[#allocation9 + $0x78] sm:$0xf0]  ;;  %v8430_v3 = vld [vmem:[#allocation9 + $0x34] sm:$0xf] }
  0x3e   :  { %2227 = vmatpush.bf16.msra.mxu0 %v5889_v10  ;;  %2240 = vmatpush.bf16.msra.mxu1 %v6081_v14  ;;  %v5893_v58 = vor.u32 %v8436_v55, %v5890_v56  ;;  %v5866_v5 = vld [vmem:[#allocation9 + $0x48] sm:$0xf0]  ;;  %v6704_v10 = vld [vmem:[#allocation9 + $0x6c0] sm:$0xf]  ;;  %v8643_v11 = vld [vmem:[#allocation9 + $0x6d4] sm:$0xf0] }
  0x3f   :  { %v6058_v7 = vld [vmem:[#allocation9 + $0x1c8] sm:$0xf0]  ;;  %v5869_v8 = vor.u32 %v8430_v3, %v5866_v5  ;;  %v8691_v14 = vld [vmem:[#allocation9 + $0x854] sm:$0xf0]  ;;  %v5842_v16 = vld [vmem:[#allocation9 + $0x18] sm:$0xf0] }
  0x40   :  { %v6034_v20 = vld [vmem:[#allocation9 + $0x198] sm:$0xf0]  ;;  %v8706_v5 = vld [vmem:[#allocation9 + $0x8d4] sm:$0xf]  ;;  %vm5789_vm4 = vcmask 97280   ;;  %vm5791_vm5 = vcmask 162816  }
  0x42   :  { %2228 = vmatpush.bf16.msra.mxu0 %v5865_v23  ;;  %v8637_v23 = vld [vmem:[#allocation9 + $0x6a4] sm:$0xf0] }
  0x43   :  { %5832 = vmatmul.msk.bf16.vlgmr.msra.gmra.mxu2 %vm382_vm3, %v9278_v41  ;;  %5833 = vmatmul.msk.bf16.vlgmr.msra.gmra.mxu3 %vm382_vm3, %v9278_v41 }
  0x44   :  { %2248 = vmatpush.bf16.msra.mxu2 %v6393_v0  ;;  %2261 = vmatpush.bf16.msra.mxu3 %v6585_v1  ;;  %v6205_v0 = vor.u32 %v8514_v59, %v6202_v60  ;;  %v8460_v1 = vld [vmem:[#allocation9 + $0x124] sm:$0xf]  ;;  %v6082_v60 = vld [vmem:[#allocation9 + $0x1f8] sm:$0xf0] }
  0x45   :  { %v5989_v4 = vor.u32 %v8460_v1, %v5986_v2  ;;  %v8484_v59 = vld [vmem:[#allocation9 + $0x1e4] sm:$0xf]  ;;  %v6920_v1 = vld [vmem:[#allocation9 + $0x870] sm:$0xf]  ;;  %v8697_v2 = vld [vmem:[#allocation9 + $0x884] sm:$0xf0] }
  0x48   :  { %2249 = vmatpush.bf16.msra.mxu2 %v6369_v12  ;;  %2262 = vmatpush.bf16.msra.mxu3 %v6561_v13  ;;  %v8454_v12 = vld [vmem:[#allocation9 + $0xf4] sm:$0xf]  ;;  %v5962_v13 = vld [vmem:[#allocation9 + $0x108] sm:$0xf0] }
  0x49   :  { %v5965_v15 = vor.u32 %v8454_v12, %v5962_v13  ;;  %v6896_v12 = vld [vmem:[#allocation9 + $0x840] sm:$0xf]  ;;  %v6705_v13 = vor.u32 %v8643_v11, %v6704_v10 }
  0x4a   :  { %v6897_v17 = vor.u32 %v8691_v14, %v6896_v12 }
  0x4c   :  { %2250 = vmatpush.bf16.msra.mxu2 %v6345_v24  ;;  %2263 = vmatpush.bf16.msra.mxu3 %v6537_v25  ;;  %v6057_v24 = vor.u32 %v8481_v22, %v6056_v21  ;;  %v8448_v25 = vld [vmem:[#allocation9 + $0xc4] sm:$0xf]  ;;  %v6680_v22 = vld [vmem:[#allocation9 + $0x690] sm:$0xf] }
  0x4d   :  { %v5941_v28 = vor.u32 %v8448_v25, %v5938_v26  ;;  %v6681_v27 = vor.u32 %v8637_v23, %v6680_v22  ;;  %v118_v23 = vld [vmem:[#allocation10] sm:$0xff] }
  0x4e   :  { %2241 = vmatpush.bf16.msra.mxu1 %v6057_v24  ;;  %v6872_v24 = vld [vmem:[#allocation9 + $0x810] sm:$0xf] }
  0x50   :  { %2251 = vmatpush.bf16.msra.mxu2 %v6321_v32  ;;  %2264 = vmatpush.bf16.msra.mxu3 %v6513_v33  ;;  %v8427_v32 = vld [vmem:[#allocation9 + $0x14] sm:$0xf0]  ;;  %v6032_v33 = vld [vmem:[#allocation9 + $0x180] sm:$0xf] }
  0x51   :  { %v5841_v34 = vor.u32 %v8427_v32, %v5840_v31  ;;  %v8631_v31 = vld [vmem:[#allocation9 + $0x674] sm:$0xf0] }
  0x53   :  { %5836 = vmatmul.msk.bf16.vlgmr.msrb.gmra.mxu2 %vm382_vm3, %v9278_v41  ;;  %5837 = vmatmul.msk.bf16.vlgmr.msrb.gmra.mxu3 %vm382_vm3, %v9278_v41 }
  0x54   :  { %2252 = vmatpush.bf16.msra.mxu2 %v6297_v38  ;;  %2265 = vmatpush.bf16.msra.mxu3 %v6489_v39  ;;  %v6033_v38 = vor.u32 %v8475_v35, %v6032_v33  ;;  %v6777_v39 = vor.u32 %v8661_v37, %v6776_v36  ;;  %v6848_v33 = vld [vmem:[#allocation9 + $0x7e0] sm:$0xf] }
  0x55   :  { %2229 = vmatpush.bf16.msra.mxu0 %v5841_v34  ;;  %v8679_v34 = vld [vmem:[#allocation9 + $0x7f4] sm:$0xf0] }
  0x56   :  { %2242 = vmatpush.bf16.msra.mxu1 %v6033_v38  ;;  %v6849_v37 = vor.u32 %v8679_v34, %v6848_v33  ;;  %v6632_v38 = vld [vmem:[#allocation9 + $0x630] sm:$0xf] }
  0x58   :  { %2253 = vmatpush.bf16.msra.mxu2 %v6273_v45  ;;  %2266 = vmatpush.bf16.msra.mxu3 %v6465_v46  ;;  %v5914_v45 = vld [vmem:[#allocation9 + $0xa8] sm:$0xf0]  ;;  %v8490_v46 = vld [vmem:[#allocation9 + $0x214] sm:$0xf] }
  0x59   :  { %2274 = vmatpush.bf16.msrb.mxu0 %v6777_v39  ;;  %v5917_v48 = vor.u32 %v8442_v43, %v5914_v45  ;;  %v6109_v49 = vor.u32 %v8490_v46, %v6106_v47  ;;  %v8625_v39 = vld [vmem:[#allocation9 + $0x644] sm:$0xf0]  ;;  %v6608_v47 = vld [vmem:[#allocation9 + $0x600] sm:$0xf] }
  0x5a   :  { %2287 = vmatpush.bf16.msrb.mxu1 %v6969_v44  ;;  %v6633_v43 = vor.u32 %v8625_v39, %v6632_v38  ;;  %v6824_v44 = vld [vmem:[#allocation9 + $0x7b0] sm:$0xf]  ;;  %v8673_v45 = vld [vmem:[#allocation9 + $0x7c4] sm:$0xf0]  ;;  %v6706_v38 = vld [vmem:[#allocation9 + $0x6d8] sm:$0xf0] }
  0x5b   :  { %v6825_v46 = vor.u32 %v8673_v45, %v6824_v44  ;;  %v8688_v39 = vld [vmem:[#allocation9 + $0x844] sm:$0xf] }
  0x5c   :  { %2254 = vmatpush.bf16.msra.mxu2 %v6249_v51  ;;  %2267 = vmatpush.bf16.msra.mxu3 %v6441_v52  ;;  %v8655_v51 = vld [vmem:[#allocation9 + $0x734] sm:$0xf0]  ;;  %v6944_v52 = vld [vmem:[#allocation9 + $0x8a0] sm:$0xf] }
  0x5d   :  { %v6753_v53 = vor.u32 %v8655_v51, %v6752_v50  ;;  %v6945_v57 = vor.u32 %v8703_v54, %v6944_v52  ;;  %v8667_v51 = vld [vmem:[#allocation9 + $0x794] sm:$0xf0] }
  0x5f   :  { %2275 = vmatpush.bf16.msrb.mxu0 %v6753_v53  ;;  %2288 = vmatpush.bf16.msrb.mxu1 %v6945_v57  ;;  %v120_v57 = vld [vmem:[#allocation10 + $0x10] sm:$0xff] }
  0x60   :  { %2255 = vmatpush.bf16.msra.mxu2 %v6225_v61  ;;  %2268 = vmatpush.bf16.msra.mxu3 %v6417_v62  ;;  %v6085_v61 = vor.u32 %v8484_v59, %v6082_v60  ;;  %v6728_v62 = vld [vmem:[#allocation9 + $0x6f0] sm:$0xf]  ;;  %v466_v59 = vperm.slane %v120_v57, 0 }
  0x64   :  { %2300 = vmatpush.bf16.msrb.mxu2 %v6013_v63  ;;  %2313 = vmatpush.bf16.msrb.mxu3 %v6205_v0  ;;  %v8649_v63 = vld [vmem:[#allocation9 + $0x704] sm:$0xf0] }
  0x65   :  { %v6729_v0 = vor.u32 %v8649_v63, %v6728_v62 }
  0x67   :  { %2276 = vmatpush.bf16.msrb.mxu0 %v6729_v0 }
  0x68   :  { %2301 = vmatpush.bf16.msrb.mxu2 %v5989_v4  ;;  %2314 = vmatpush.bf16.msrb.mxu3 %v6181_v6  ;;  %v6921_v4 = vor.u32 %v8697_v2, %v6920_v1  ;;  %v8478_v6 = vld [vmem:[#allocation9 + $0x1b4] sm:$0xf] }
  0x69   :  { %v6061_v9 = vor.u32 %v8478_v6, %v6058_v7  ;;  %v8658_v1 = vld [vmem:[#allocation9 + $0x754] sm:$0xf]  ;;  %v6970_v6 = vld [vmem:[#allocation9 + $0x8e8] sm:$0xf0] }
  0x6a   :  { %2289 = vmatpush.bf16.msrb.mxu1 %v6921_v4  ;;  %v6778_v4 = vld [vmem:[#allocation9 + $0x768] sm:$0xf0]  ;;  %v6973_v12 = vor.u32 %v8706_v5, %v6970_v6  ;;  %v6562_v5 = vld [vmem:[#allocation9 + $0x5b8] sm:$0xf0]  ;;  %v8628_v6 = vld [vmem:[#allocation9 + $0x664] sm:$0xf] }
  0x6b   :  { %2277 = vmatpush.bf16.msrb.mxu0 %v6705_v13  ;;  %v6781_v11 = vor.u32 %v8658_v1, %v6778_v4  ;;  %v8652_v13 = vld [vmem:[#allocation9 + $0x724] sm:$0xf] }
  0x6c   :  { %2302 = vmatpush.bf16.msrb.mxu2 %v5965_v15  ;;  %2315 = vmatpush.bf16.msrb.mxu3 %v6157_v19  ;;  %v8424_v15 = vld [vmem:[#allocation9 + $0x4] sm:$0xf] }
  0x6d   :  { %v5845_v18 = vor.u32 %v8424_v15, %v5842_v16  ;;  %v8472_v19 = vld [vmem:[#allocation9 + $0x184] sm:$0xf]  ;;  %v6754_v16 = vld [vmem:[#allocation9 + $0x738] sm:$0xf0] }
  0x6e   :  { %v6037_v21 = vor.u32 %v8472_v19, %v6034_v20  ;;  %2290 = vmatpush.bf16.msrb.mxu1 %v6897_v17  ;;  %v8700_v17 = vld [vmem:[#allocation9 + $0x8a4] sm:$0xf] }
  0x6f   :  { %2278 = vmatpush.bf16.msrb.mxu0 %v6681_v27  ;;  %v6730_v27 = vld [vmem:[#allocation9 + $0x708] sm:$0xf0]  ;;  %v8604_v4 = vld [vmem:[#allocation9 + $0x5a4] sm:$0xf] }
  0x70   :  { %2303 = vmatpush.bf16.msrb.mxu2 %v5941_v28  ;;  %2316 = vmatpush.bf16.msrb.mxu3 %v6133_v30  ;;  %v8685_v28 = vld [vmem:[#allocation9 + $0x824] sm:$0xf0]  ;;  %v6656_v30 = vld [vmem:[#allocation9 + $0x660] sm:$0xf] }
  0x71   :  { %v6873_v29 = vor.u32 %v8685_v28, %v6872_v24  ;;  %v6657_v32 = vor.u32 %v8631_v31, %v6656_v30  ;;  %v8646_v24 = vld [vmem:[#allocation9 + $0x6f4] sm:$0xf]  ;;  %v119_v28 = vld [vmem:[#allocation10 + $0x8] sm:$0xff]  ;;  %v464_v31 = vperm.slane %v118_v23, 0 }
  0x72   :  { %v6922_v30 = vld [vmem:[#allocation9 + $0x888] sm:$0xf0]  ;;  %v6733_v33 = vor.u32 %v8646_v24, %v6730_v27  ;;  %v8670_v24 = vld [vmem:[#allocation9 + $0x7b4] sm:$0xf] }
  0x73   :  { %2291 = vmatpush.bf16.msrb.mxu1 %v6873_v29  ;;  %2279 = vmatpush.bf16.msrb.mxu0 %v6657_v32  ;;  %v8694_v29 = vld [vmem:[#allocation9 + $0x874] sm:$0xf]  ;;  %v465_v32 = vperm.slane %v119_v28, 0  ;;  %v6634_v23 = vld [vmem:[#allocation9 + $0x648] sm:$0xf0] }
  0x74   :  { %2304 = vmatpush.bf16.msrb.mxu2 %v5917_v48  ;;  %2317 = vmatpush.bf16.msrb.mxu3 %v6109_v49  ;;  %v8619_v48 = vld [vmem:[#allocation9 + $0x614] sm:$0xf0]  ;;  %v6800_v49 = vld [vmem:[#allocation9 + $0x780] sm:$0xf]  ;;  %v6925_v34 = vor.u32 %v8694_v29, %v6922_v30  ;;  %v6826_v27 = vld [vmem:[#allocation9 + $0x7c8] sm:$0xf0] }
  0x75   :  { %v6609_v50 = vor.u32 %v8619_v48, %v6608_v47  ;;  %v6801_v54 = vor.u32 %v8667_v51, %v6800_v49  ;;  %v6394_v51 = vld [vmem:[#allocation9 + $0x468] sm:$0xf0] }
  0x77   :  { %2292 = vmatpush.bf16.msrb.mxu1 %v6849_v37  ;;  %2280 = vmatpush.bf16.msrb.mxu0 %v6633_v43  ;;  %v8640_v37 = vld [vmem:[#allocation9 + $0x6c4] sm:$0xf] }
  0x78   :  { %2305 = vmatpush.bf16.msrb.mxu2 %v5893_v58  ;;  %2318 = vmatpush.bf16.msrb.mxu3 %v6085_v61  ;;  %v121_v58 = vld [vmem:[#allocation10 + $0x18] sm:$0xff] }
  0x79   :  { %v467_v60 = vperm.slane %v121_v58, 0  ;;  %v8682_v58 = vld [vmem:[#allocation9 + $0x814] sm:$0xf] }
  0x7b   :  { %2293 = vmatpush.bf16.msrb.mxu1 %v6825_v46  ;;  %2281 = vmatpush.bf16.msrb.mxu0 %v6609_v50  ;;  %v6709_v46 = vor.u32 %v8640_v37, %v6706_v38  ;;  %v8562_v50 = vld [vmem:[#allocation9 + $0x454] sm:$0xf] }
  0x7c   :  { %2306 = vmatpush.bf16.msrb.mxu2 %v5869_v8  ;;  %2319 = vmatpush.bf16.msrb.mxu3 %v6061_v9 }
  0x7f   :  { %2294 = vmatpush.bf16.msrb.mxu1 %v6801_v54  ;;  %v8634_v54 = vld [vmem:[#allocation9 + $0x694] sm:$0xf] }
  0x80   :  { %2307 = vmatpush.bf16.msrb.mxu2 %v5845_v18  ;;  %2320 = vmatpush.bf16.msrb.mxu3 %v6037_v21  ;;  %v6946_v18 = vld [vmem:[#allocation9 + $0x8b8] sm:$0xf0]  ;;  %v6757_v21 = vor.u32 %v8652_v13, %v6754_v16  ;;  %v123_v13 = vld [vmem:[#allocation10 + $0x28] sm:$0xff]  ;;  %v8550_v16 = vld [vmem:[#allocation9 + $0x3f4] sm:$0xf] }
  0x81   :  { %v6949_v22 = vor.u32 %v8700_v17, %v6946_v18  ;;  %v6346_v17 = vld [vmem:[#allocation9 + $0x408] sm:$0xf0]  ;;  %v469_v29 = vperm.slane %v123_v13, 0  ;;  %v6466_v13 = vld [vmem:[#allocation9 + $0x4f8] sm:$0xf0] }
  0x82   :  { %v6349_v30 = vor.u32 %v8550_v16, %v6346_v17 }
  0xa2   :  { %v9294_v25 = vpop.f32.mrf.mxu0  ;;  %v9296_v26 = vpop.f32.mrf.mxu1 }
  0xa6   :  { %v9298_v35 = vpop.f32.mrf.mxu2  ;;  %v9300_v36 = vpop.f32.mrf.mxu3 }
  0xaa   :  { %v337_v40 = vpop.f32.mrf.mxu0  ;;  %v350_v42 = vpop.f32.mrf.mxu1 }
  0xab   :  { %v6898_v40 = vld [vmem:[#allocation9 + $0x858] sm:$0xf0] }
  0xac   :  { %v6901_v47 = vor.u32 %v8688_v39, %v6898_v40  ;;  %v6829_v40 = vor.u32 %v8670_v24, %v6826_v27  ;;  %v8526_v27 = vld [vmem:[#allocation9 + $0x334] sm:$0xf] }
  0xae   :  { %v285_v52 = vpop.f32.mrf.mxu2  ;;  %v298_v53 = vpop.f32.mrf.mxu3 }
  0xaf   :  { %v8610_v52 = vld [vmem:[#allocation9 + $0x5d4] sm:$0xf]  ;;  %v6586_v53 = vld [vmem:[#allocation9 + $0x5e8] sm:$0xf0] }
  0xb2   :  { %v421_v55 = vpop.f32.mrf.mxu0  ;;  %v434_v56 = vpop.f32.mrf.mxu1 }
  0xb6   :  { %v309_v61 = vpop.f32.mrf.mxu2  ;;  %v322_v62 = vpop.f32.mrf.mxu3 }
  0xb7   :  { %v422_v63 = vadd.f32 %v421_v55, %v309_v61  ;;  %v435_v0 = vadd.f32 %v434_v56, %v322_v62  ;;  %v6682_v55 = vld [vmem:[#allocation9 + $0x6a8] sm:$0xf0]  ;;  %v6589_v61 = vor.u32 %v8610_v52, %v6586_v53  ;;  %v8556_v62 = vld [vmem:[#allocation9 + $0x424] sm:$0xf]  ;;  %v6592_v52 = vld [vmem:[#allocation9 + $0x5d8] sm:$0xf] }
  0xb8   :  { %v8614_v53 = vld [vmem:[#allocation9 + $0x5ec] sm:$0xf0] }
  0xb9   :  { %v472_v2 = vadd.f32 %v466_v59, %v422_v63  ;;  %v473_v3 = vadd.f32 %v467_v60, %v435_v0  ;;  %v6874_v59 = vld [vmem:[#allocation9 + $0x828] sm:$0xf0]  ;;  %v6397_v60 = vor.u32 %v8562_v50, %v6394_v51  ;;  %v6370_v63 = vld [vmem:[#allocation9 + $0x438] sm:$0xf0]  ;;  %v8566_v51 = vld [vmem:[#allocation9 + $0x46c] sm:$0xf0] }
  0xba   :  { %v423_v7 = vpop.f32.mrf.mxu0  ;;  %v436_v8 = vpop.f32.mrf.mxu1 }
  0xbb   :  { %v478_v9 = vmax.f32 %v472_v2, 0.0  ;;  %v479_v10 = vmax.f32 %v473_v3, 0.0  ;;  %v6685_v2 = vor.u32 %v8634_v54, %v6682_v55  ;;  %v6877_v3 = vor.u32 %v8682_v58, %v6874_v59  ;;  %v6658_v7 = vld [vmem:[#allocation9 + $0x678] sm:$0xf0]  ;;  %v8676_v8 = vld [vmem:[#allocation9 + $0x7e4] sm:$0xf] }
  0xbc   :  { %v6661_v18 = vor.u32 %v8628_v6, %v6658_v7  ;;  %v6298_v58 = vld [vmem:[#allocation9 + $0x3a8] sm:$0xf0] }
  0xbd   :  { %v9302_v14 = vpack.c.bf16 %v478_v9, %v478_v9  ;;  %v9304_v15 = vpack.c.bf16 %v479_v10, %v479_v10  ;;  %v6850_v9 = vld [vmem:[#allocation9 + $0x7f8] sm:$0xf0]  ;;  %v122_v10 = vld [vmem:[#allocation10 + $0x20] sm:$0xff] }
  0xbe   :  { %v311_v19 = vpop.f32.mrf.mxu2  ;;  %v324_v20 = vpop.f32.mrf.mxu3  ;;  %v468_v28 = vperm.slane %v122_v10, 0 }
  0xbf   :  { %2256 = vmatmul.bf16.vlgmr.msra.gmra.mxu2 %v9302_v14  ;;  %2269 = vmatmul.bf16.vlgmr.msra.gmra.mxu3 %v9304_v15  ;;  %v6853_v19 = vor.u32 %v8676_v8, %v6850_v9  ;;  %v8598_v20 = vld [vmem:[#allocation9 + $0x574] sm:$0xf]  ;;  %v8532_v9 = vld [vmem:[#allocation9 + $0x364] sm:$0xf] }
  0xc0   :  { %2352 = vmatpush.bf16.msra.mxu2 %v6781_v11  ;;  %2365 = vmatpush.bf16.msra.mxu3 %v6973_v12  ;;  %v6373_v11 = vor.u32 %v8556_v62, %v6370_v63  ;;  %v6565_v12 = vor.u32 %v8604_v4, %v6562_v5  ;;  %v6568_v4 = vld [vmem:[#allocation9 + $0x5a8] sm:$0xf]  ;;  %v8608_v5 = vld [vmem:[#allocation9 + $0x5bc] sm:$0xf0] }
  0xc4   :  { %2353 = vmatpush.bf16.msra.mxu2 %v6757_v21  ;;  %2366 = vmatpush.bf16.msra.mxu3 %v6949_v22  ;;  %v6538_v21 = vld [vmem:[#allocation9 + $0x588] sm:$0xf0]  ;;  %v8622_v22 = vld [vmem:[#allocation9 + $0x634] sm:$0xf] }
  0xc5   :  { %v6637_v39 = vor.u32 %v8622_v22, %v6634_v23  ;;  %v8602_v22 = vld [vmem:[#allocation9 + $0x58c] sm:$0xf0] }
  0xc6   :  { %v395_v42 = vpop.f32.mrf.mxu2  ;;  %v408_v43 = vpop.f32.mrf.mxu3 }
  0xc7   :  { %v396_v44 = vadd.f32 %v395_v42, %v9298_v35  ;;  %v409_v45 = vadd.f32 %v408_v43, %v9300_v36  ;;  %v6514_v42 = vld [vmem:[#allocation9 + $0x558] sm:$0xf0]  ;;  %v8616_v43 = vld [vmem:[#allocation9 + $0x604] sm:$0xf] }
  0xc8   :  { %2354 = vmatpush.bf16.msra.mxu2 %v6733_v33  ;;  %2367 = vmatpush.bf16.msra.mxu3 %v6925_v34  ;;  %v6322_v33 = vld [vmem:[#allocation9 + $0x3d8] sm:$0xf0]  ;;  %v8592_v34 = vld [vmem:[#allocation9 + $0x544] sm:$0xf] }
  0xc9   :  { %v470_v48 = vadd.f32 %v464_v31, %v396_v44  ;;  %v471_v49 = vadd.f32 %v465_v32, %v409_v45  ;;  %v6541_v31 = vor.u32 %v8598_v20, %v6538_v21  ;;  %v8544_v32 = vld [vmem:[#allocation9 + $0x3c4] sm:$0xf]  ;;  %v6610_v44 = vld [vmem:[#allocation9 + $0x618] sm:$0xf0]  ;;  %v8554_v20 = vld [vmem:[#allocation9 + $0x40c] sm:$0xf0] }
  0xca   :  { %v6325_v50 = vor.u32 %v8544_v32, %v6322_v33  ;;  %v6613_v59 = vor.u32 %v8616_v43, %v6610_v44  ;;  %v6544_v21 = vld [vmem:[#allocation9 + $0x578] sm:$0xf]  ;;  %v6328_v33 = vld [vmem:[#allocation9 + $0x3c8] sm:$0xf]  ;;  %v6226_v43 = vld [vmem:[#allocation9 + $0x318] sm:$0xf0] }
  0xcb   :  { %v476_v56 = vmax.f32 %v470_v48, 0.0  ;;  %v477_v57 = vmax.f32 %v471_v49, 0.0  ;;  %v6802_v48 = vld [vmem:[#allocation9 + $0x798] sm:$0xf0]  ;;  %v6400_v49 = vld [vmem:[#allocation9 + $0x458] sm:$0xf]  ;;  %v6545_v32 = vor.u32 %v8602_v22, %v6544_v21 }
  0xcc   :  { %2355 = vmatpush.bf16.msra.mxu2 %v6709_v46  ;;  %2368 = vmatpush.bf16.msra.mxu3 %v6901_v47  ;;  %v8664_v47 = vld [vmem:[#allocation9 + $0x784] sm:$0xf]  ;;  %v6401_v63 = vor.u32 %v8566_v51, %v6400_v49  ;;  %v8518_v51 = vld [vmem:[#allocation9 + $0x2ec] sm:$0xf0]  ;;  %v5944_v22 = vld [vmem:[#allocation9 + $0xc8] sm:$0xf] }
  0xcd   :  { %v9310_v35 = vpack.c.bf16 %v476_v56, %v476_v56  ;;  %v9312_v36 = vpack.c.bf16 %v477_v57, %v477_v57  ;;  %v6517_v56 = vor.u32 %v8592_v34, %v6514_v42  ;;  %v8538_v57 = vld [vmem:[#allocation9 + $0x394] sm:$0xf]  ;;  %v8548_v34 = vld [vmem:[#allocation9 + $0x3dc] sm:$0xf0]  ;;  %v8520_v42 = vld [vmem:[#allocation9 + $0x304] sm:$0xf] }
  0xce   :  { %v397_v0 = vpop.f32.mrf.mxu2  ;;  %v410_v1 = vpop.f32.mrf.mxu3  ;;  %v8568_v44 = vld [vmem:[#allocation9 + $0x484] sm:$0xf] }
  0xcf   :  { %2230 = vmatmul.bf16.vlgmr.msra.gmra.mxu0 %v9310_v35  ;;  %2243 = vmatmul.bf16.vlgmr.msra.gmra.mxu1 %v9312_v36  ;;  %v6593_v0 = vor.u32 %v8614_v53, %v6592_v52  ;;  %v6376_v1 = vld [vmem:[#allocation9 + $0x428] sm:$0xf]  ;;  %v6304_v52 = vld [vmem:[#allocation9 + $0x398] sm:$0xf]  ;;  %v8542_v53 = vld [vmem:[#allocation9 + $0x3ac] sm:$0xf0] }
  0xd0   :  { %2308 = vmatmul.bf16.vlgmr.msrb.gmra.mxu2 %v9310_v35  ;;  %2321 = vmatmul.bf16.vlgmr.msrb.gmra.mxu3 %v9312_v36 }
  0xd1   :  { %2326 = vmatpush.bf16.msra.mxu0 %v6397_v60  ;;  %2339 = vmatpush.bf16.msra.mxu1 %v6589_v61  ;;  %v8586_v60 = vld [vmem:[#allocation9 + $0x514] sm:$0xf] }
  0xd2   :  { %2356 = vmatpush.bf16.msra.mxu2 %v6685_v2  ;;  %2369 = vmatpush.bf16.msra.mxu3 %v6877_v3  ;;  %v6301_v2 = vor.u32 %v8538_v57, %v6298_v58  ;;  %v8560_v3 = vld [vmem:[#allocation9 + $0x43c] sm:$0xf0] }
  0xd3   :  { %v6377_v17 = vor.u32 %v8560_v3, %v6376_v1  ;;  %v8536_v1 = vld [vmem:[#allocation9 + $0x37c] sm:$0xf0] }
  0xd4   :  { %v8584_v3 = vld [vmem:[#allocation9 + $0x4fc] sm:$0xf0] }
  0xd5   :  { %2327 = vmatpush.bf16.msra.mxu0 %v6373_v11  ;;  %2340 = vmatpush.bf16.msra.mxu1 %v6565_v12  ;;  %v6274_v11 = vld [vmem:[#allocation9 + $0x378] sm:$0xf0]  ;;  %v8580_v12 = vld [vmem:[#allocation9 + $0x4e4] sm:$0xf] }
  0xd6   :  { %2357 = vmatpush.bf16.msra.mxu2 %v6661_v18  ;;  %2370 = vmatpush.bf16.msra.mxu3 %v6853_v19  ;;  %v447_v37 = vpop.f32.mrf.mxu2  ;;  %v460_v38 = vpop.f32.mrf.mxu3  ;;  %v6569_v18 = vor.u32 %v8608_v5, %v6568_v4  ;;  %v6352_v19 = vld [vmem:[#allocation9 + $0x3f8] sm:$0xf]  ;;  %v6277_v23 = vor.u32 %v8532_v9, %v6274_v11  ;;  %v6469_v24 = vor.u32 %v8580_v12, %v6466_v13  ;;  %v8458_v9 = vld [vmem:[#allocation9 + $0x10c] sm:$0xf0] }
  0xd7   :  { %v448_v45 = vadd.f32 %v447_v37, %v9294_v25  ;;  %v461_v46 = vadd.f32 %v460_v38, %v9296_v26  ;;  %v6805_v25 = vor.u32 %v8664_v47, %v6802_v48  ;;  %v6490_v26 = vld [vmem:[#allocation9 + $0x528] sm:$0xf0]  ;;  %v6520_v37 = vld [vmem:[#allocation9 + $0x548] sm:$0xf]  ;;  %v8596_v38 = vld [vmem:[#allocation9 + $0x55c] sm:$0xf0]  ;;  %v6329_v48 = vor.u32 %v8548_v34, %v6328_v33 }
  0xd8   :  { %v6493_v8 = vor.u32 %v8586_v60, %v6490_v26  ;;  %v8470_v47 = vld [vmem:[#allocation9 + $0x16c] sm:$0xf0]  ;;  %v6521_v49 = vor.u32 %v8596_v38, %v6520_v37  ;;  %v8464_v60 = vld [vmem:[#allocation9 + $0x13c] sm:$0xf0]  ;;  %v6305_v26 = vor.u32 %v8542_v53, %v6304_v52  ;;  %v6160_v12 = vld [vmem:[#allocation9 + $0x278] sm:$0xf] }
  0xd9   :  { %v474_v54 = vadd.f32 %v468_v28, %v448_v45  ;;  %v475_v55 = vadd.f32 %v469_v29, %v461_v46  ;;  %2328 = vmatpush.bf16.msra.mxu0 %v6349_v30  ;;  %2341 = vmatpush.bf16.msra.mxu1 %v6541_v31  ;;  %v6250_v28 = vld [vmem:[#allocation9 + $0x348] sm:$0xf0]  ;;  %v8574_v29 = vld [vmem:[#allocation9 + $0x4b4] sm:$0xf]  ;;  %v6353_v31 = vor.u32 %v8554_v20, %v6352_v19  ;;  %v6418_v45 = vld [vmem:[#allocation9 + $0x498] sm:$0xf0] }
  0xda   :  { %2358 = vmatpush.bf16.msra.mxu2 %v6637_v39  ;;  %2371 = vmatpush.bf16.msra.mxu3 %v6829_v40  ;;  %v6442_v30 = vld [vmem:[#allocation9 + $0x4c8] sm:$0xf0]  ;;  %v6253_v39 = vor.u32 %v8526_v27, %v6250_v28  ;;  %v6016_v46 = vld [vmem:[#allocation9 + $0x158] sm:$0xf]  ;;  %v6421_v57 = vor.u32 %v8568_v44, %v6418_v45  ;;  %v8506_v13 = vld [vmem:[#allocation9 + $0x28c] sm:$0xf0] }
  0xdb   :  { %v480_v61 = vmax.f32 %v474_v54, 0.0  ;;  %v481_v62 = vmax.f32 %v475_v55, 0.0  ;;  %v6445_v40 = vor.u32 %v8574_v29, %v6442_v30  ;;  %v6496_v54 = vld [vmem:[#allocation9 + $0x518] sm:$0xf]  ;;  %v8590_v55 = vld [vmem:[#allocation9 + $0x52c] sm:$0xf0]  ;;  %v6017_v58 = vor.u32 %v8470_v47, %v6016_v46 }
  0xdc   :  { %v8578_v19 = vld [vmem:[#allocation9 + $0x4cc] sm:$0xf0]  ;;  %v6161_v21 = vor.u32 %v8506_v13, %v6160_v12  ;;  %v8500_v29 = vld [vmem:[#allocation9 + $0x25c] sm:$0xf0]  ;;  %v6232_v30 = vld [vmem:[#allocation9 + $0x308] sm:$0xf] }
  0xdd   :  { %v9320_v6 = vpack.c.bf16 %v480_v61, %v480_v61  ;;  %v9322_v7 = vpack.c.bf16 %v481_v62, %v481_v62  ;;  %2329 = vmatpush.bf16.msra.mxu0 %v6325_v50  ;;  %2342 = vmatpush.bf16.msra.mxu1 %v6517_v56  ;;  %v6208_v50 = vld [vmem:[#allocation9 + $0x2d8] sm:$0xf]  ;;  %v6229_v56 = vor.u32 %v8520_v42, %v6226_v43  ;;  %v6184_v62 = vld [vmem:[#allocation9 + $0x2a8] sm:$0xf]  ;;  %v8572_v33 = vld [vmem:[#allocation9 + $0x49c] sm:$0xf0] }
  0xde   :  { %2359 = vmatpush.bf16.msra.mxu2 %v6613_v59  ;;  %2372 = vmatpush.bf16.msra.mxu3 %v6805_v25  ;;  %v449_v10 = vpop.f32.mrf.mxu2  ;;  %v462_v16 = vpop.f32.mrf.mxu3  ;;  %v6209_v59 = vor.u32 %v8518_v51, %v6208_v50  ;;  %v5992_v25 = vld [vmem:[#allocation9 + $0x128] sm:$0xf]  ;;  %v6497_v61 = vor.u32 %v8590_v55, %v6496_v54  ;;  %v8467_v34 = vld [vmem:[#allocation9 + $0x15c] sm:$0xf]  ;;  %v6018_v37 = vld [vmem:[#allocation9 + $0x170] sm:$0xf0] }
  0xdf   :  { %2282 = vmatmul.bf16.vlgmr.msrb.gmra.mxu0 %v9320_v6  ;;  %2295 = vmatmul.bf16.vlgmr.msrb.gmra.mxu1 %v9322_v7  ;;  %v5993_v4 = vor.u32 %v8464_v60, %v5992_v25  ;;  %v6256_v16 = vld [vmem:[#allocation9 + $0x338] sm:$0xf]  ;;  %v8515_v38 = vld [vmem:[#allocation9 + $0x2dc] sm:$0xf]  ;;  %v8446_v46 = vld [vmem:[#allocation9 + $0xac] sm:$0xf0]  ;;  %v6021_v47 = vor.u32 %v8467_v34, %v6018_v37 }
  0xe0   :  { %v5920_v45 = vld [vmem:[#allocation9 + $0x98] sm:$0xf]  ;;  %v8494_v50 = vld [vmem:[#allocation9 + $0x22c] sm:$0xf0]  ;;  %v8461_v51 = vld [vmem:[#allocation9 + $0x12c] sm:$0xf] }
  0xe1   :  { %2330 = vmatpush.bf16.msra.mxu0 %v6301_v2  ;;  %2343 = vmatpush.bf16.msra.mxu1 %v6493_v8  ;;  %v6472_v2 = vld [vmem:[#allocation9 + $0x4e8] sm:$0xf]  ;;  %v5968_v8 = vld [vmem:[#allocation9 + $0xf8] sm:$0xf]  ;;  %v5994_v52 = vld [vmem:[#allocation9 + $0x140] sm:$0xf0]  ;;  %v5921_v55 = vor.u32 %v8446_v46, %v5920_v45 }
  0xe2   :  { %2404 = vmatpush.bf16.msrb.mxu2 %v6401_v63  ;;  %2417 = vmatpush.bf16.msrb.mxu3 %v6593_v0  ;;  %v8512_v63 = vld [vmem:[#allocation9 + $0x2bc] sm:$0xf0]  ;;  %v6280_v0 = vld [vmem:[#allocation9 + $0x368] sm:$0xf]  ;;  %v6473_v11 = vor.u32 %v8584_v3, %v6472_v2  ;;  %v5969_v20 = vor.u32 %v8458_v9, %v5968_v8  ;;  %v8509_v53 = vld [vmem:[#allocation9 + $0x2ac] sm:$0xf] }
  0xe3   :  { %2360 = vmatmul.bf16.vlgmr.msra.gmra.mxu2 %v9320_v6  ;;  %2373 = vmatmul.bf16.vlgmr.msra.gmra.mxu3 %v9322_v7  ;;  %v6185_v5 = vor.u32 %v8512_v63, %v6184_v62  ;;  %v6281_v10 = vor.u32 %v8536_v1, %v6280_v0  ;;  %v6186_v54 = vld [vmem:[#allocation9 + $0x2c0] sm:$0xf0]  ;;  %v6088_v60 = vld [vmem:[#allocation9 + $0x1e8] sm:$0xf]  ;;  %v5970_v62 = vld [vmem:[#allocation9 + $0x110] sm:$0xf0] }
  0xe4   :  { %v6189_v25 = vor.u32 %v8509_v53, %v6186_v54  ;;  %v8503_v63 = vld [vmem:[#allocation9 + $0x27c] sm:$0xf]  ;;  %v6162_v0 = vld [vmem:[#allocation9 + $0x290] sm:$0xf0]  ;;  %v5872_v3 = vld [vmem:[#allocation9 + $0x38] sm:$0xf] }
  0xe5   :  { %2331 = vmatpush.bf16.msra.mxu0 %v6277_v23  ;;  %2344 = vmatpush.bf16.msra.mxu1 %v6469_v24  ;;  %v8452_v23 = vld [vmem:[#allocation9 + $0xdc] sm:$0xf0]  ;;  %v6136_v24 = vld [vmem:[#allocation9 + $0x248] sm:$0xf]  ;;  %v6165_v8 = vor.u32 %v8503_v63, %v6162_v0  ;;  %v6064_v9 = vld [vmem:[#allocation9 + $0x1b8] sm:$0xf] }
  0xe6   :  { %2405 = vmatpush.bf16.msrb.mxu2 %v6377_v17  ;;  %2418 = vmatpush.bf16.msrb.mxu3 %v6569_v18  ;;  %v8530_v17 = vld [vmem:[#allocation9 + $0x34c] sm:$0xf0]  ;;  %v6448_v18 = vld [vmem:[#allocation9 + $0x4b8] sm:$0xf]  ;;  %v6137_v42 = vor.u32 %v8500_v29, %v6136_v24  ;;  %v5946_v12 = vld [vmem:[#allocation9 + $0xe0] sm:$0xf0] }
  0xe7   :  { %v6257_v27 = vor.u32 %v8530_v17, %v6256_v16  ;;  %v6449_v28 = vor.u32 %v8578_v19, %v6448_v18  ;;  %v8497_v13 = vld [vmem:[#allocation9 + $0x24c] sm:$0xf]  ;;  %v6138_v16 = vld [vmem:[#allocation9 + $0x260] sm:$0xf0]  ;;  %v5848_v19 = vld [vmem:[#allocation9 + $0x8] sm:$0xf] }
  0xe8   :  { %v8476_v24 = vld [vmem:[#allocation9 + $0x19c] sm:$0xf0]  ;;  %v6976_v29 = vld [vmem:[#allocation9 + $0x8d8] sm:$0xf]  ;;  %v6114_v34 = vld [vmem:[#allocation9 + $0x230] sm:$0xf0] }
  0xe9   :  { %2332 = vmatpush.bf16.msra.mxu0 %v6253_v39  ;;  %2345 = vmatpush.bf16.msra.mxu1 %v6445_v40  ;;  %v6210_v39 = vld [vmem:[#allocation9 + $0x2f0] sm:$0xf0]  ;;  %v5945_v40 = vor.u32 %v8452_v23, %v5944_v22  ;;  %v6141_v23 = vor.u32 %v8497_v13, %v6138_v16  ;;  %v6952_v46 = vld [vmem:[#allocation9 + $0x8a8] sm:$0xf]  ;;  %v6736_v54 = vld [vmem:[#allocation9 + $0x6f8] sm:$0xf] }
  0xea   :  { %2406 = vmatpush.bf16.msrb.mxu2 %v6353_v31  ;;  %2419 = vmatpush.bf16.msrb.mxu3 %v6545_v32  ;;  %v8524_v31 = vld [vmem:[#allocation9 + $0x31c] sm:$0xf0]  ;;  %v6424_v32 = vld [vmem:[#allocation9 + $0x488] sm:$0xf]  ;;  %v6786_v13 = vld [vmem:[#allocation9 + $0x770] sm:$0xf0] }
  0xeb   :  { %v6233_v43 = vor.u32 %v8524_v31, %v6232_v30  ;;  %v6425_v44 = vor.u32 %v8572_v33, %v6424_v32  ;;  %v8710_v30 = vld [vmem:[#allocation9 + $0x8ec] sm:$0xf0]  ;;  %v8443_v31 = vld [vmem:[#allocation9 + $0x9c] sm:$0xf]  ;;  %v5922_v32 = vld [vmem:[#allocation9 + $0xb0] sm:$0xf0] }
  0xec   :  { %v8491_v33 = vld [vmem:[#allocation9 + $0x21c] sm:$0xf]  ;;  %v6712_v0 = vld [vmem:[#allocation9 + $0x6c8] sm:$0xf] }
  0xed   :  { %2333 = vmatpush.bf16.msra.mxu0 %v6229_v56  ;;  %2346 = vmatpush.bf16.msra.mxu1 %v6421_v57  ;;  %v5896_v57 = vld [vmem:[#allocation9 + $0x68] sm:$0xf]  ;;  %v6117_v45 = vor.u32 %v8491_v33, %v6114_v34  ;;  %v8707_v16 = vld [vmem:[#allocation9 + $0x8dc] sm:$0xf]  ;;  %v6954_v33 = vld [vmem:[#allocation9 + $0x8c0] sm:$0xf0] }
  0xee   :  { %2407 = vmatpush.bf16.msrb.mxu2 %v6329_v48  ;;  %2420 = vmatpush.bf16.msrb.mxu3 %v6521_v49  ;;  %v6213_v48 = vor.u32 %v8515_v38, %v6210_v39  ;;  %v6112_v49 = vld [vmem:[#allocation9 + $0x218] sm:$0xf] }
  0xef   :  { %v6113_v56 = vor.u32 %v8494_v50, %v6112_v49  ;;  %v5898_v49 = vld [vmem:[#allocation9 + $0x80] sm:$0xf0]  ;;  %v8485_v50 = vld [vmem:[#allocation9 + $0x1ec] sm:$0xf] }
  0xf0   :  { %2334 = vmatmul.bf16.vlgmr.msra.gmra.mxu0 %v9302_v14  ;;  %2347 = vmatmul.bf16.vlgmr.msra.gmra.mxu1 %v9304_v15 }
  0xf1   :  { %2378 = vmatpush.bf16.msrb.mxu0 %v6017_v58  ;;  %2391 = vmatpush.bf16.msrb.mxu1 %v6209_v59  ;;  %v8440_v58 = vld [vmem:[#allocation9 + $0x7c] sm:$0xf0]  ;;  %v5997_v59 = vor.u32 %v8461_v51, %v5994_v52  ;;  %v6090_v51 = vld [vmem:[#allocation9 + $0x200] sm:$0xf0] }
  0xf2   :  { %2408 = vmatpush.bf16.msrb.mxu2 %v6305_v26  ;;  %2421 = vmatpush.bf16.msrb.mxu3 %v6497_v61  ;;  %v8488_v26 = vld [vmem:[#allocation9 + $0x1fc] sm:$0xf0]  ;;  %v8455_v61 = vld [vmem:[#allocation9 + $0xfc] sm:$0xf]  ;;  %v5897_v1 = vor.u32 %v8440_v58, %v5896_v57  ;;  %v6093_v57 = vor.u32 %v8485_v50, %v6090_v51  ;;  %v6928_v58 = vld [vmem:[#allocation9 + $0x878] sm:$0xf] }
  0xf3   :  { %v6089_v2 = vor.u32 %v8488_v26, %v6088_v60  ;;  %v5874_v60 = vld [vmem:[#allocation9 + $0x50] sm:$0xf0]  ;;  %v8479_v26 = vld [vmem:[#allocation9 + $0x1bc] sm:$0xf]  ;;  %v6640_v51 = vld [vmem:[#allocation9 + $0x638] sm:$0xf] }
  0xf5   :  { %2379 = vmatpush.bf16.msrb.mxu0 %v5993_v4  ;;  %2392 = vmatpush.bf16.msrb.mxu1 %v6185_v5  ;;  %v8434_v4 = vld [vmem:[#allocation9 + $0x4c] sm:$0xf0]  ;;  %v5973_v5 = vor.u32 %v8455_v61, %v5970_v62  ;;  %v6066_v61 = vld [vmem:[#allocation9 + $0x1d0] sm:$0xf0] }
  0xf6   :  { %2409 = vmatpush.bf16.msrb.mxu2 %v6281_v10  ;;  %2422 = vmatpush.bf16.msrb.mxu3 %v6473_v11  ;;  %v8482_v10 = vld [vmem:[#allocation9 + $0x1cc] sm:$0xf0]  ;;  %v8449_v11 = vld [vmem:[#allocation9 + $0xcc] sm:$0xf]  ;;  %v5873_v17 = vor.u32 %v8434_v4, %v5872_v3  ;;  %v6069_v4 = vor.u32 %v8479_v26, %v6066_v61  ;;  %v6616_v61 = vld [vmem:[#allocation9 + $0x608] sm:$0xf] }
  0xf7   :  { %v6065_v18 = vor.u32 %v8482_v10, %v6064_v9  ;;  %v5949_v22 = vor.u32 %v8449_v11, %v5946_v12  ;;  %v5850_v9 = vld [vmem:[#allocation9 + $0x20] sm:$0xf0]  ;;  %v8473_v10 = vld [vmem:[#allocation9 + $0x18c] sm:$0xf]  ;;  %v8659_v12 = vld [vmem:[#allocation9 + $0x75c] sm:$0xf] }
  0xf8   :  { %v6042_v11 = vld [vmem:[#allocation9 + $0x1a0] sm:$0xf0] }
  0xf9   :  { %2380 = vmatpush.bf16.msrb.mxu0 %v5969_v20  ;;  %2393 = vmatpush.bf16.msrb.mxu1 %v6161_v21  ;;  %v8428_v20 = vld [vmem:[#allocation9 + $0x1c] sm:$0xf0]  ;;  %v6040_v21 = vld [vmem:[#allocation9 + $0x188] sm:$0xf] }
  0xfa   :  { %2410 = vmatpush.bf16.msrb.mxu2 %v6257_v27  ;;  %2423 = vmatpush.bf16.msrb.mxu3 %v6449_v28  ;;  %v6784_v27 = vld [vmem:[#allocation9 + $0x758] sm:$0xf]  ;;  %v8662_v28 = vld [vmem:[#allocation9 + $0x76c] sm:$0xf0]  ;;  %v5849_v37 = vor.u32 %v8428_v20, %v5848_v19  ;;  %v6041_v38 = vor.u32 %v8476_v24, %v6040_v21  ;;  %v6045_v21 = vor.u32 %v8473_v10, %v6042_v11  ;;  %v6690_v10 = vld [vmem:[#allocation9 + $0x6b0] sm:$0xf0] }
  0xfb   :  { %v6785_v39 = vor.u32 %v8662_v28, %v6784_v27  ;;  %v6789_v24 = vor.u32 %v8659_v12, %v6786_v13  ;;  %v6880_v28 = vld [vmem:[#allocation9 + $0x818] sm:$0xf]  ;;  %v8683_v11 = vld [vmem:[#allocation9 + $0x81c] sm:$0xf]  ;;  %v6882_v12 = vld [vmem:[#allocation9 + $0x830] sm:$0xf0] }
  0xfd   :  { %2381 = vmatpush.bf16.msrb.mxu0 %v5945_v40  ;;  %2394 = vmatpush.bf16.msrb.mxu1 %v6137_v42  ;;  %v6977_v40 = vor.u32 %v8710_v30, %v6976_v29  ;;  %v6760_v42 = vld [vmem:[#allocation9 + $0x728] sm:$0xf]  ;;  %v8686_v29 = vld [vmem:[#allocation9 + $0x82c] sm:$0xf0]  ;;  %v8653_v30 = vld [vmem:[#allocation9 + $0x72c] sm:$0xf] }
  0xfe   :  { %2411 = vmatpush.bf16.msrb.mxu2 %v6233_v43  ;;  %2424 = vmatpush.bf16.msrb.mxu3 %v6425_v44  ;;  %v8656_v43 = vld [vmem:[#allocation9 + $0x73c] sm:$0xf0]  ;;  %v5925_v44 = vor.u32 %v8443_v31, %v5922_v32  ;;  %v6762_v31 = vld [vmem:[#allocation9 + $0x740] sm:$0xf0]  ;;  %v8701_v32 = vld [vmem:[#allocation9 + $0x8ac] sm:$0xf] }
  0xff   :  { %v6761_v52 = vor.u32 %v8656_v43, %v6760_v42  ;;  %v6957_v42 = vor.u32 %v8701_v32, %v6954_v33  ;;  %v6856_v43 = vld [vmem:[#allocation9 + $0x7e8] sm:$0xf]  ;;  %v8551_v33 = vld [vmem:[#allocation9 + $0x3fc] sm:$0xf] }
 0x101   :  { %2412 = vmatmul.bf16.vlgmr.msrb.gmra.mxu2 %v9302_v14  ;;  %2425 = vmatmul.bf16.vlgmr.msrb.gmra.mxu3 %v9304_v15 }
 0x102   :  { %2456 = vmatpush.bf16.msra.mxu2 %v6021_v47  ;;  %2469 = vmatpush.bf16.msra.mxu3 %v6213_v48  ;;  %v8704_v47 = vld [vmem:[#allocation9 + $0x8bc] sm:$0xf0]  ;;  %v8437_v48 = vld [vmem:[#allocation9 + $0x6c] sm:$0xf] }
 0x103   :  { %2382 = vmatpush.bf16.msrb.mxu0 %v5921_v55  ;;  %2395 = vmatpush.bf16.msrb.mxu1 %v6113_v56  ;;  %v6953_v53 = vor.u32 %v8704_v47, %v6952_v46  ;;  %v8650_v55 = vld [vmem:[#allocation9 + $0x70c] sm:$0xf0]  ;;  %v5901_v56 = vor.u32 %v8437_v48, %v5898_v49  ;;  %v6738_v46 = vld [vmem:[#allocation9 + $0x710] sm:$0xf0]  ;;  %v8695_v47 = vld [vmem:[#allocation9 + $0x87c] sm:$0xf] }
 0x104   :  { %v6737_v62 = vor.u32 %v8650_v55, %v6736_v54  ;;  %v6930_v48 = vld [vmem:[#allocation9 + $0x890] sm:$0xf0]  ;;  %v6832_v55 = vld [vmem:[#allocation9 + $0x7b8] sm:$0xf] }
 0x105   :  { %v6933_v54 = vor.u32 %v8695_v47, %v6930_v48  ;;  %v8545_v48 = vld [vmem:[#allocation9 + $0x3cc] sm:$0xf] }
 0x106   :  { %2457 = vmatpush.bf16.msra.mxu2 %v5997_v59  ;;  %2470 = vmatpush.bf16.msra.mxu3 %v6189_v25  ;;  %v8698_v59 = vld [vmem:[#allocation9 + $0x88c] sm:$0xf0]  ;;  %v8431_v25 = vld [vmem:[#allocation9 + $0x3c] sm:$0xf] }
 0x107   :  { %2383 = vmatpush.bf16.msrb.mxu0 %v5897_v1  ;;  %2396 = vmatpush.bf16.msrb.mxu1 %v6089_v2  ;;  %v6929_v63 = vor.u32 %v8698_v59, %v6928_v58  ;;  %v8644_v1 = vld [vmem:[#allocation9 + $0x6dc] sm:$0xf0]  ;;  %v6904_v2 = vld [vmem:[#allocation9 + $0x848] sm:$0xf]  ;;  %v5877_v3 = vor.u32 %v8431_v25, %v5874_v60  ;;  %v6714_v58 = vld [vmem:[#allocation9 + $0x6e0] sm:$0xf0] }
 0x108   :  { %v8689_v59 = vld [vmem:[#allocation9 + $0x84c] sm:$0xf]  ;;  %v6906_v25 = vld [vmem:[#allocation9 + $0x860] sm:$0xf0] }
 0x10a   :  { %2458 = vmatpush.bf16.msra.mxu2 %v5973_v5  ;;  %2471 = vmatpush.bf16.msra.mxu3 %v6165_v8  ;;  %v8692_v5 = vld [vmem:[#allocation9 + $0x85c] sm:$0xf0]  ;;  %v8425_v8 = vld [vmem:[#allocation9 + $0xc] sm:$0xf] }
 0x10b   :  { %2384 = vmatpush.bf16.msrb.mxu0 %v5873_v17  ;;  %2397 = vmatpush.bf16.msrb.mxu1 %v6065_v18  ;;  %v6978_v17 = vld [vmem:[#allocation9 + $0x8f0] sm:$0xf0]  ;;  %v6713_v18 = vor.u32 %v8644_v1, %v6712_v0  ;;  %v6905_v19 = vor.u32 %v8692_v5, %v6904_v2  ;;  %v5853_v20 = vor.u32 %v8425_v8, %v5850_v9  ;;  %v8668_v2 = vld [vmem:[#allocation9 + $0x79c] sm:$0xf0]  ;;  %v8611_v5 = vld [vmem:[#allocation9 + $0x5dc] sm:$0xf] }
 0x10c   :  { %v6981_v27 = vor.u32 %v8707_v16, %v6978_v17  ;;  %v6909_v1 = vor.u32 %v8689_v59, %v6906_v25  ;;  %v6594_v8 = vld [vmem:[#allocation9 + $0x5f0] sm:$0xf0]  ;;  %v8635_v9 = vld [vmem:[#allocation9 + $0x69c] sm:$0xf]  ;;  %v8567_v59 = vld [vmem:[#allocation9 + $0x474] sm:$0xf0] }
 0x10d   :  { %v6600_v25 = vld [vmem:[#allocation9 + $0x5e0] sm:$0xf] }
 0x10e   :  { %2459 = vmatpush.bf16.msra.mxu2 %v5949_v22  ;;  %2472 = vmatpush.bf16.msra.mxu3 %v6141_v23  ;;  %v6688_v22 = vld [vmem:[#allocation9 + $0x698] sm:$0xf]  ;;  %v8638_v23 = vld [vmem:[#allocation9 + $0x6ac] sm:$0xf0] }
 0x10f   :  { %2385 = vmatpush.bf16.msrb.mxu0 %v5849_v37  ;;  %2398 = vmatpush.bf16.msrb.mxu1 %v6041_v38  ;;  %v6689_v34 = vor.u32 %v8638_v23, %v6688_v22  ;;  %v6881_v37 = vor.u32 %v8686_v29, %v6880_v28  ;;  %v6664_v38 = vld [vmem:[#allocation9 + $0x668] sm:$0xf]  ;;  %v6885_v22 = vor.u32 %v8683_v11, %v6882_v12  ;;  %v8605_v23 = vld [vmem:[#allocation9 + $0x5ac] sm:$0xf]  ;;  %v6666_v28 = vld [vmem:[#allocation9 + $0x680] sm:$0xf0] }
 0x110   :  { %v8677_v29 = vld [vmem:[#allocation9 + $0x7ec] sm:$0xf]  ;;  %v8609_v11 = vld [vmem:[#allocation9 + $0x5c4] sm:$0xf0] }
 0x112   :  { %2460 = vmatpush.bf16.msra.mxu2 %v5925_v44  ;;  %2473 = vmatpush.bf16.msra.mxu3 %v6117_v45  ;;  %v8680_v44 = vld [vmem:[#allocation9 + $0x7fc] sm:$0xf0]  ;;  %v8647_v45 = vld [vmem:[#allocation9 + $0x6fc] sm:$0xf] }
 0x113   :  { %2430 = vmatpush.bf16.msra.mxu0 %v6785_v39  ;;  %2443 = vmatpush.bf16.msra.mxu1 %v6977_v40  ;;  %v8632_v39 = vld [vmem:[#allocation9 + $0x67c] sm:$0xf0]  ;;  %v6765_v40 = vor.u32 %v8653_v30, %v6762_v31  ;;  %v6857_v50 = vor.u32 %v8680_v44, %v6856_v43  ;;  %v6858_v30 = vld [vmem:[#allocation9 + $0x800] sm:$0xf0]  ;;  %v6642_v43 = vld [vmem:[#allocation9 + $0x650] sm:$0xf0] }
 0x114   :  { %2386 = vmatmul.bf16.vlgmr.msrb.gmra.mxu0 %v9310_v35  ;;  %2399 = vmatmul.bf16.vlgmr.msrb.gmra.mxu1 %v9312_v36  ;;  %v6665_v49 = vor.u32 %v8632_v39, %v6664_v38  ;;  %v6861_v38 = vor.u32 %v8677_v29, %v6858_v30  ;;  %v8599_v39 = vld [vmem:[#allocation9 + $0x57c] sm:$0xf] }
 0x115   :  { %v8671_v44 = vld [vmem:[#allocation9 + $0x7bc] sm:$0xf] }
 0x116   :  { %2461 = vmatpush.bf16.msra.mxu2 %v5901_v56  ;;  %2474 = vmatpush.bf16.msra.mxu3 %v6093_v57  ;;  %v8674_v56 = vld [vmem:[#allocation9 + $0x7cc] sm:$0xf0]  ;;  %v8641_v57 = vld [vmem:[#allocation9 + $0x6cc] sm:$0xf]  ;;  %v8527_v30 = vld [vmem:[#allocation9 + $0x33c] sm:$0xf] }
 0x117   :  { %2431 = vmatpush.bf16.msra.mxu0 %v6761_v52  ;;  %2444 = vmatpush.bf16.msra.mxu1 %v6953_v53  ;;  %v8626_v52 = vld [vmem:[#allocation9 + $0x64c] sm:$0xf0]  ;;  %v6741_v53 = vor.u32 %v8647_v45, %v6738_v46  ;;  %v6833_v26 = vor.u32 %v8674_v56, %v6832_v55  ;;  %v6717_v0 = vor.u32 %v8641_v57, %v6714_v58  ;;  %v6834_v45 = vld [vmem:[#allocation9 + $0x7d0] sm:$0xf0]  ;;  %v6618_v55 = vld [vmem:[#allocation9 + $0x620] sm:$0xf0] }
 0x118   :  { %v6641_v60 = vor.u32 %v8626_v52, %v6640_v51  ;;  %v6837_v52 = vor.u32 %v8671_v44, %v6834_v45  ;;  %v8665_v56 = vld [vmem:[#allocation9 + $0x78c] sm:$0xf]  ;;  %v6810_v57 = vld [vmem:[#allocation9 + $0x7a0] sm:$0xf0]  ;;  %v6408_v58 = vld [vmem:[#allocation9 + $0x460] sm:$0xf] }
 0x119   :  { %v8521_v45 = vld [vmem:[#allocation9 + $0x30c] sm:$0xf] }
 0x11a   :  { %2462 = vmatpush.bf16.msra.mxu2 %v5877_v3  ;;  %2475 = vmatpush.bf16.msra.mxu3 %v6069_v4  ;;  %v8563_v3 = vld [vmem:[#allocation9 + $0x45c] sm:$0xf]  ;;  %v6402_v4 = vld [vmem:[#allocation9 + $0x470] sm:$0xf0] }
 0x11b   :  { %2432 = vmatpush.bf16.msra.mxu0 %v6737_v62  ;;  %2445 = vmatpush.bf16.msra.mxu1 %v6929_v63  ;;  %v8620_v62 = vld [vmem:[#allocation9 + $0x61c] sm:$0xf0]  ;;  %v6808_v63 = vld [vmem:[#allocation9 + $0x788] sm:$0xf]  ;;  %v6405_v17 = vor.u32 %v8563_v3, %v6402_v4  ;;  %v8587_v4 = vld [vmem:[#allocation9 + $0x51c] sm:$0xf] }
 0x11c   :  { %v6617_v13 = vor.u32 %v8620_v62, %v6616_v61  ;;  %v6809_v16 = vor.u32 %v8668_v2, %v6808_v63  ;;  %v6813_v63 = vor.u32 %v8665_v56, %v6810_v57  ;;  %v6409_v2 = vor.u32 %v8567_v59, %v6408_v58  ;;  %v8543_v58 = vld [vmem:[#allocation9 + $0x3b4] sm:$0xf0]  ;;  %v6504_v59 = vld [vmem:[#allocation9 + $0x520] sm:$0xf] }
 0x11e   :  { %2463 = vmatpush.bf16.msra.mxu2 %v5853_v20  ;;  %2476 = vmatpush.bf16.msra.mxu3 %v6045_v21  ;;  %v6378_v20 = vld [vmem:[#allocation9 + $0x440] sm:$0xf0]  ;;  %v6693_v21 = vor.u32 %v8635_v9, %v6690_v10  ;;  %v8561_v9 = vld [vmem:[#allocation9 + $0x444] sm:$0xf0]  ;;  %v6576_v10 = vld [vmem:[#allocation9 + $0x5b0] sm:$0xf] }
 0x11f   :  { %2433 = vmatpush.bf16.msra.mxu0 %v6713_v18  ;;  %2446 = vmatpush.bf16.msra.mxu1 %v6905_v19  ;;  %v6597_v18 = vor.u32 %v8611_v5, %v6594_v8  ;;  %v8557_v19 = vld [vmem:[#allocation9 + $0x42c] sm:$0xf]  ;;  %v6498_v5 = vld [vmem:[#allocation9 + $0x530] sm:$0xf0]  ;;  %v6384_v8 = vld [vmem:[#allocation9 + $0x430] sm:$0xf] }
 0x120   :  { %v6381_v31 = vor.u32 %v8557_v19, %v6378_v20  ;;  %v6577_v19 = vor.u32 %v8609_v11, %v6576_v10  ;;  %v8581_v20 = vld [vmem:[#allocation9 + $0x4ec] sm:$0xf]  ;;  %v8585_v10 = vld [vmem:[#allocation9 + $0x504] sm:$0xf0] }
 0x121   :  { %2464 = vmatmul.bf16.vlgmr.msra.gmra.mxu2 %v9310_v35  ;;  %2477 = vmatmul.bf16.vlgmr.msra.gmra.mxu3 %v9312_v36 }
 0x122   :  { %2508 = vmatpush.bf16.msrb.mxu2 %v6789_v24  ;;  %2521 = vmatpush.bf16.msrb.mxu3 %v6981_v27  ;;  %v6570_v24 = vld [vmem:[#allocation9 + $0x5c0] sm:$0xf0]  ;;  %v8629_v27 = vld [vmem:[#allocation9 + $0x66c] sm:$0xf] }
 0x123   :  { %2434 = vmatpush.bf16.msra.mxu0 %v6689_v34  ;;  %2447 = vmatpush.bf16.msra.mxu1 %v6881_v37  ;;  %v6573_v32 = vor.u32 %v8605_v23, %v6570_v24  ;;  %v6354_v34 = vld [vmem:[#allocation9 + $0x410] sm:$0xf0]  ;;  %v6669_v37 = vor.u32 %v8629_v27, %v6666_v28  ;;  %v8555_v23 = vld [vmem:[#allocation9 + $0x414] sm:$0xf0]  ;;  %v6552_v24 = vld [vmem:[#allocation9 + $0x580] sm:$0xf] }
 0x124   :  { %v6357_v46 = vor.u32 %v8551_v33, %v6354_v34  ;;  %v8603_v27 = vld [vmem:[#allocation9 + $0x594] sm:$0xf0]  ;;  %v8575_v34 = vld [vmem:[#allocation9 + $0x4bc] sm:$0xf] }
 0x125   :  { %v6553_v33 = vor.u32 %v8603_v27, %v6552_v24 }
 0x126   :  { %2509 = vmatpush.bf16.msrb.mxu2 %v6765_v40  ;;  %2522 = vmatpush.bf16.msrb.mxu3 %v6957_v42  ;;  %v6546_v40 = vld [vmem:[#allocation9 + $0x590] sm:$0xf0]  ;;  %v8623_v42 = vld [vmem:[#allocation9 + $0x63c] sm:$0xf] }
 0x127   :  { %2435 = vmatpush.bf16.msra.mxu0 %v6665_v49  ;;  %2448 = vmatpush.bf16.msra.mxu1 %v6857_v50  ;;  %v6549_v47 = vor.u32 %v8599_v39, %v6546_v40  ;;  %v6330_v49 = vld [vmem:[#allocation9 + $0x3e0] sm:$0xf0]  ;;  %v8593_v50 = vld [vmem:[#allocation9 + $0x54c] sm:$0xf]  ;;  %v6645_v51 = vor.u32 %v8623_v42, %v6642_v43  ;;  %v8549_v39 = vld [vmem:[#allocation9 + $0x3e4] sm:$0xf0] }
 0x128   :  { %v6528_v40 = vld [vmem:[#allocation9 + $0x550] sm:$0xf]  ;;  %v8597_v42 = vld [vmem:[#allocation9 + $0x564] sm:$0xf0] }
 0x12a   :  { %2510 = vmatpush.bf16.msrb.mxu2 %v6741_v53  ;;  %2523 = vmatpush.bf16.msrb.mxu3 %v6933_v54  ;;  %v6522_v53 = vld [vmem:[#allocation9 + $0x560] sm:$0xf0]  ;;  %v8617_v54 = vld [vmem:[#allocation9 + $0x60c] sm:$0xf] }
 0x12b   :  { %2436 = vmatpush.bf16.msra.mxu0 %v6641_v60  ;;  %2449 = vmatpush.bf16.msra.mxu1 %v6833_v26  ;;  %v8615_v60 = vld [vmem:[#allocation9 + $0x5f4] sm:$0xf0]  ;;  %v6333_v26 = vor.u32 %v8545_v48, %v6330_v49  ;;  %v6525_v61 = vor.u32 %v8593_v50, %v6522_v53  ;;  %v6621_v62 = vor.u32 %v8617_v54, %v6618_v55  ;;  %v6426_v50 = vld [vmem:[#allocation9 + $0x4a0] sm:$0xf0]  ;;  %v6216_v53 = vld [vmem:[#allocation9 + $0x2e0] sm:$0xf] }
 0x12c   :  { %v6601_v3 = vor.u32 %v8615_v60, %v6600_v25  ;;  %v6529_v49 = vor.u32 %v8597_v42, %v6528_v40  ;;  %v8519_v54 = vld [vmem:[#allocation9 + $0x2f4] sm:$0xf0]  ;;  %v6312_v55 = vld [vmem:[#allocation9 + $0x3a0] sm:$0xf] }
 0x12d   :  { %v8591_v25 = vld [vmem:[#allocation9 + $0x534] sm:$0xf0] }
 0x12e   :  { %2511 = vmatpush.bf16.msrb.mxu2 %v6717_v0  ;;  %2524 = vmatpush.bf16.msrb.mxu3 %v6909_v1  ;;  %v8539_v0 = vld [vmem:[#allocation9 + $0x39c] sm:$0xf]  ;;  %v6306_v1 = vld [vmem:[#allocation9 + $0x3b0] sm:$0xf0] }
 0x12f   :  { %2437 = vmatpush.bf16.msra.mxu0 %v6617_v13  ;;  %2450 = vmatpush.bf16.msra.mxu1 %v6809_v16  ;;  %v6309_v12 = vor.u32 %v8539_v0, %v6306_v1  ;;  %v6501_v13 = vor.u32 %v8587_v4, %v6498_v5  ;;  %v8533_v16 = vld [vmem:[#allocation9 + $0x36c] sm:$0xf]  ;;  %v8465_v0 = vld [vmem:[#allocation9 + $0x144] sm:$0xf0]  ;;  %v6313_v1 = vor.u32 %v8543_v58, %v6312_v55  ;;  %v6288_v5 = vld [vmem:[#allocation9 + $0x370] sm:$0xf] }
 0x130   :  { %v8513_v4 = vld [vmem:[#allocation9 + $0x2c4] sm:$0xf0] }
 0x131   :  { %v9021_v58 = vld [vmem:[#allocation10 + $0x8] sm:$0xff] }
 0x132   :  { %2512 = vmatpush.bf16.msrb.mxu2 %v6693_v21  ;;  %2525 = vmatpush.bf16.msrb.mxu3 %v6885_v22  ;;  %v6474_v21 = vld [vmem:[#allocation9 + $0x500] sm:$0xf0]  ;;  %v6360_v22 = vld [vmem:[#allocation9 + $0x400] sm:$0xf] }
 0x133   :  { %2482 = vmatpush.bf16.msrb.mxu0 %v6405_v17  ;;  %2495 = vmatpush.bf16.msrb.mxu1 %v6597_v18  ;;  %v6282_v17 = vld [vmem:[#allocation9 + $0x380] sm:$0xf0]  ;;  %v6385_v18 = vor.u32 %v8561_v9, %v6384_v8  ;;  %v6477_v29 = vor.u32 %v8581_v20, %v6474_v21  ;;  %v8537_v8 = vld [vmem:[#allocation9 + $0x384] sm:$0xf0]  ;;  %v6480_v9 = vld [vmem:[#allocation9 + $0x4f0] sm:$0xf] }
 0x134   :  { %2438 = vmatmul.bf16.vlgmr.msra.gmra.mxu0 %v9320_v6  ;;  %2451 = vmatmul.bf16.vlgmr.msra.gmra.mxu1 %v9322_v7  ;;  %v6285_v28 = vor.u32 %v8533_v16, %v6282_v17  ;;  %v8459_v16 = vld [vmem:[#allocation9 + $0x114] sm:$0xf0]  ;;  %v6168_v17 = vld [vmem:[#allocation9 + $0x280] sm:$0xf] }
 0x135   :  { %v8507_v20 = vld [vmem:[#allocation9 + $0x294] sm:$0xf0]  ;;  %v6264_v21 = vld [vmem:[#allocation9 + $0x340] sm:$0xf] }
 0x136   :  { %2513 = vmatpush.bf16.msrb.mxu2 %v6669_v37  ;;  %2526 = vmatpush.bf16.msrb.mxu3 %v6861_v38  ;;  %v6450_v37 = vld [vmem:[#allocation9 + $0x4d0] sm:$0xf0]  ;;  %v6336_v38 = vld [vmem:[#allocation9 + $0x3d0] sm:$0xf] }
 0x137   :  { %2483 = vmatpush.bf16.msrb.mxu0 %v6381_v31  ;;  %2496 = vmatpush.bf16.msrb.mxu1 %v6573_v32  ;;  %v6258_v31 = vld [vmem:[#allocation9 + $0x350] sm:$0xf0]  ;;  %v6361_v32 = vor.u32 %v8555_v23, %v6360_v22  ;;  %v6453_v44 = vor.u32 %v8575_v34, %v6450_v37  ;;  %v6337_v48 = vor.u32 %v8549_v39, %v6336_v38  ;;  %v9020_v22 = vld [vmem:[#allocation10] sm:$0xff]  ;;  %v5952_v37 = vld [vmem:[#allocation9 + $0xd0] sm:$0xf] }
 0x138   :  { %v6261_v43 = vor.u32 %v8527_v30, %v6258_v31  ;;  %v776_v23 = vperm.slane %v9020_v22, 1  ;;  %v8579_v30 = vld [vmem:[#allocation9 + $0x4d4] sm:$0xf0]  ;;  %v8453_v38 = vld [vmem:[#allocation9 + $0xe4] sm:$0xf0] }
 0x139   :  { %v6144_v39 = vld [vmem:[#allocation9 + $0x250] sm:$0xf] }
 0x13a   :  { %2514 = vmatpush.bf16.msrb.mxu2 %v6645_v51  ;;  %2527 = vmatpush.bf16.msrb.mxu3 %v6837_v52  ;;  %v6024_v51 = vld [vmem:[#allocation9 + $0x160] sm:$0xf]  ;;  %v8471_v52 = vld [vmem:[#allocation9 + $0x174] sm:$0xf0] }
 0x13b   :  { %2484 = vmatpush.bf16.msrb.mxu0 %v6357_v46  ;;  %2497 = vmatpush.bf16.msrb.mxu1 %v6549_v47  ;;  %v6234_v46 = vld [vmem:[#allocation9 + $0x320] sm:$0xf0]  ;;  %v8569_v47 = vld [vmem:[#allocation9 + $0x48c] sm:$0xf] }
 0x13c   :  { %v6237_v60 = vor.u32 %v8521_v45, %v6234_v46  ;;  %v6240_v45 = vld [vmem:[#allocation9 + $0x310] sm:$0xf]  ;;  %v8525_v46 = vld [vmem:[#allocation9 + $0x324] sm:$0xf0] }
 0x13e   :  { %2515 = vmatpush.bf16.msrb.mxu2 %v6621_v62  ;;  %2528 = vmatpush.bf16.msrb.mxu3 %v6813_v63  ;;  %v6217_v62 = vor.u32 %v8519_v54, %v6216_v53  ;;  %v6000_v63 = vld [vmem:[#allocation9 + $0x130] sm:$0xf]  ;;  %v6218_v53 = vld [vmem:[#allocation9 + $0x2f8] sm:$0xf0]  ;;  %v5953_v54 = vor.u32 %v8453_v38, %v5952_v37  ;;  %v6072_v38 = vld [vmem:[#allocation9 + $0x1c0] sm:$0xf] }
 0x13f   :  { %2485 = vmatpush.bf16.msrb.mxu0 %v6333_v26  ;;  %2498 = vmatpush.bf16.msrb.mxu1 %v6525_v61  ;;  %v6429_v26 = vor.u32 %v8569_v47, %v6426_v50  ;;  %v6025_v61 = vor.u32 %v8471_v52, %v6024_v51  ;;  %v6001_v11 = vor.u32 %v8465_v0, %v6000_v63  ;;  %v6432_v47 = vld [vmem:[#allocation9 + $0x490] sm:$0xf]  ;;  %v6026_v51 = vld [vmem:[#allocation9 + $0x178] sm:$0xf0]  ;;  %v8516_v52 = vld [vmem:[#allocation9 + $0x2e4] sm:$0xf] }
 0x140   :  { %v6221_v0 = vor.u32 %v8516_v52, %v6218_v53  ;;  %v8429_v52 = vld [vmem:[#allocation9 + $0x24] sm:$0xf0]  ;;  %v6048_v53 = vld [vmem:[#allocation9 + $0x190] sm:$0xf] }
 0x141   :  { %2516 = vmatmul.bf16.vlgmr.msrb.gmra.mxu2 %v9320_v6  ;;  %2529 = vmatmul.bf16.vlgmr.msrb.gmra.mxu3 %v9322_v7 }
 0x142   :  { %2560 = vmatpush.bf16.msra.mxu2 %v6409_v2  ;;  %2573 = vmatpush.bf16.msra.mxu3 %v6601_v3  ;;  %v9340_v56 = vpop.f32.mrf.mxu2  ;;  %v9342_v57 = vpop.f32.mrf.mxu3  ;;  %v6505_v2 = vor.u32 %v8591_v25, %v6504_v59  ;;  %v6192_v3 = vld [vmem:[#allocation9 + $0x2b0] sm:$0xf]  ;;  %v777_v59 = vperm.slane %v9021_v58, 1 }
 0x143   :  { %2486 = vmatpush.bf16.msrb.mxu0 %v6309_v12  ;;  %2499 = vmatpush.bf16.msrb.mxu1 %v6501_v13  ;;  %v6193_v12 = vor.u32 %v8513_v4, %v6192_v3  ;;  %v5976_v13 = vld [vmem:[#allocation9 + $0x100] sm:$0xf]  ;;  %v8462_v3 = vld [vmem:[#allocation9 + $0x134] sm:$0xf] }
 0x144   :  { %v5977_v31 = vor.u32 %v8459_v16, %v5976_v13 }
 0x146   :  { %2561 = vmatpush.bf16.msra.mxu2 %v6385_v18  ;;  %2574 = vmatpush.bf16.msra.mxu3 %v6577_v19  ;;  %v6289_v18 = vor.u32 %v8537_v8, %v6288_v5  ;;  %v6481_v19 = vor.u32 %v8585_v10, %v6480_v9  ;;  %v6002_v8 = vld [vmem:[#allocation9 + $0x148] sm:$0xf0]  ;;  %v8510_v9 = vld [vmem:[#allocation9 + $0x2b4] sm:$0xf] }
 0x147   :  { %2487 = vmatpush.bf16.msrb.mxu0 %v6285_v28  ;;  %2500 = vmatpush.bf16.msrb.mxu1 %v6477_v29  ;;  %v8531_v28 = vld [vmem:[#allocation9 + $0x354] sm:$0xf0]  ;;  %v6456_v29 = vld [vmem:[#allocation9 + $0x4c0] sm:$0xf]  ;;  %v6194_v10 = vld [vmem:[#allocation9 + $0x2c8] sm:$0xf0] }
 0x148   :  { %v6265_v40 = vor.u32 %v8531_v28, %v6264_v21  ;;  %v6457_v42 = vor.u32 %v8579_v30, %v6456_v29  ;;  %v6005_v21 = vor.u32 %v8462_v3, %v6002_v8  ;;  %v6197_v22 = vor.u32 %v8510_v9, %v6194_v10  ;;  %v8504_v28 = vld [vmem:[#allocation9 + $0x284] sm:$0xf]  ;;  %v6170_v29 = vld [vmem:[#allocation9 + $0x298] sm:$0xf0]  ;;  %v6768_v9 = vld [vmem:[#allocation9 + $0x730] sm:$0xf] }
 0x149   :  { %v6173_v37 = vor.u32 %v8504_v28, %v6170_v29  ;;  %v8657_v10 = vld [vmem:[#allocation9 + $0x744] sm:$0xf0]  ;;  %v6744_v28 = vld [vmem:[#allocation9 + $0x700] sm:$0xf]  ;;  %v8651_v29 = vld [vmem:[#allocation9 + $0x714] sm:$0xf0] }
 0x14a   :  { %2562 = vmatpush.bf16.msra.mxu2 %v6361_v32  ;;  %2575 = vmatpush.bf16.msra.mxu3 %v6553_v33  ;;  %v2259_v24 = vpop.f32.mrf.mxu2  ;;  %v2272_v27 = vpop.f32.mrf.mxu3  ;;  %v6169_v32 = vor.u32 %v8507_v20, %v6168_v17 }
 0x14b   :  { %2488 = vmatpush.bf16.msrb.mxu0 %v6261_v43  ;;  %2501 = vmatpush.bf16.msrb.mxu1 %v6453_v44  ;;  %v8501_v44 = vld [vmem:[#allocation9 + $0x264] sm:$0xf0]  ;;  %v5978_v27 = vld [vmem:[#allocation9 + $0x118] sm:$0xf0] }
 0x14c   :  { %v2231_v33 = vpop.f32.mrf.mxu0  ;;  %v2244_v34 = vpop.f32.mrf.mxu1  ;;  %v6145_v55 = vor.u32 %v8501_v44, %v6144_v39  ;;  %v8489_v24 = vld [vmem:[#allocation9 + $0x204] sm:$0xf0]  ;;  %v8483_v39 = vld [vmem:[#allocation9 + $0x1d4] sm:$0xf0]  ;;  %v5954_v44 = vld [vmem:[#allocation9 + $0xe8] sm:$0xf0] }
 0x14d   :  { %v2232_v43 = vadd.f32 %v2231_v33, %v776_v23  ;;  %v6096_v23 = vld [vmem:[#allocation9 + $0x1f0] sm:$0xf]  ;;  %v8435_v33 = vld [vmem:[#allocation9 + $0x54] sm:$0xf0] }
 0x14e   :  { %2563 = vmatpush.bf16.msra.mxu2 %v6337_v48  ;;  %2576 = vmatpush.bf16.msra.mxu3 %v6529_v49  ;;  %v8573_v48 = vld [vmem:[#allocation9 + $0x4a4] sm:$0xf0]  ;;  %v8468_v49 = vld [vmem:[#allocation9 + $0x164] sm:$0xf] }
 0x14f   :  { %2489 = vmatpush.bf16.msrb.mxu0 %v6237_v60  ;;  %2502 = vmatpush.bf16.msrb.mxu1 %v6429_v26  ;;  %v2245_v50 = vadd.f32 %v2244_v34, %v2232_v43  ;;  %v6241_v60 = vor.u32 %v8525_v46, %v6240_v45  ;;  %v6433_v26 = vor.u32 %v8573_v48, %v6432_v47  ;;  %v8498_v45 = vld [vmem:[#allocation9 + $0x254] sm:$0xf]  ;;  %v6146_v46 = vld [vmem:[#allocation9 + $0x268] sm:$0xf0] }
 0x150   :  { %v6029_v63 = vor.u32 %v8468_v49, %v6026_v51  ;;  %v6073_v48 = vor.u32 %v8483_v39, %v6072_v38  ;;  %v5856_v51 = vld [vmem:[#allocation9 + $0x10] sm:$0xf]  ;;  %v6149_v58 = vor.u32 %v8498_v45, %v6146_v46  ;;  %v8480_v38 = vld [vmem:[#allocation9 + $0x1c4] sm:$0xf]  ;;  %v6074_v39 = vld [vmem:[#allocation9 + $0x1d8] sm:$0xf0] }
 0x151   :  { %v2258_v25 = vadd.f32 %v9340_v56, %v2245_v50  ;;  %v5857_v3 = vor.u32 %v8429_v52, %v5856_v51  ;;  %v6912_v45 = vld [vmem:[#allocation9 + $0x850] sm:$0xf]  ;;  %v8474_v51 = vld [vmem:[#allocation9 + $0x194] sm:$0xf]  ;;  %v6050_v52 = vld [vmem:[#allocation9 + $0x1a8] sm:$0xf0] }
 0x152   :  { %2564 = vmatpush.bf16.msra.mxu2 %v6313_v1  ;;  %2577 = vmatpush.bf16.msra.mxu3 %v6505_v2  ;;  %v6120_v1 = vld [vmem:[#allocation9 + $0x220] sm:$0xf]  ;;  %v8495_v2 = vld [vmem:[#allocation9 + $0x234] sm:$0xf0] }
 0x153   :  { %2534 = vmatpush.bf16.msra.mxu0 %v6025_v61  ;;  %2547 = vmatpush.bf16.msra.mxu1 %v6217_v62  ;;  %v5928_v61 = vld [vmem:[#allocation9 + $0xa0] sm:$0xf]  ;;  %v8447_v62 = vld [vmem:[#allocation9 + $0xb4] sm:$0xf0]  ;;  %v2309_v4 = vpop.f32.mrf.mxu2  ;;  %v2322_v5 = vpop.f32.mrf.mxu3  ;;  %v6121_v17 = vor.u32 %v8495_v2, %v6120_v1  ;;  %v8492_v1 = vld [vmem:[#allocation9 + $0x224] sm:$0xf] }
 0x154   :  { %2490 = vmatmul.bf16.vlgmr.msrb.gmra.mxu0 %v9302_v14  ;;  %2503 = vmatmul.bf16.vlgmr.msrb.gmra.mxu1 %v9304_v15  ;;  %v2233_v56 = vpop.f32.mrf.mxu0  ;;  %v2246_v13 = vpop.f32.mrf.mxu1  ;;  %v5929_v16 = vor.u32 %v8447_v62, %v5928_v61  ;;  %v8711_v61 = vld [vmem:[#allocation9 + $0x8f4] sm:$0xf0]  ;;  %v8444_v62 = vld [vmem:[#allocation9 + $0xa4] sm:$0xf]  ;;  %v6122_v2 = vld [vmem:[#allocation9 + $0x238] sm:$0xf0] }
 0x155   :  { %v6960_v56 = vld [vmem:[#allocation9 + $0x8b0] sm:$0xf]  ;;  %v8705_v13 = vld [vmem:[#allocation9 + $0x8c4] sm:$0xf0] }
 0x156   :  { %2565 = vmatpush.bf16.msra.mxu2 %v6289_v18  ;;  %2578 = vmatpush.bf16.msra.mxu3 %v6481_v19  ;;  %v5904_v18 = vld [vmem:[#allocation9 + $0x70] sm:$0xf]  ;;  %v8441_v19 = vld [vmem:[#allocation9 + $0x84] sm:$0xf0] }
 0x157   :  { %2535 = vmatpush.bf16.msra.mxu0 %v6001_v11  ;;  %2548 = vmatpush.bf16.msra.mxu1 %v6193_v12  ;;  %v2271_v11 = vadd.f32 %v9342_v57, %v2258_v25  ;;  %v2310_v12 = vadd.f32 %v2309_v4, %v777_v59  ;;  %v8456_v57 = vld [vmem:[#allocation9 + $0x104] sm:$0xf]  ;;  %v5905_v30 = vor.u32 %v8441_v19, %v5904_v18  ;;  %v8477_v59 = vld [vmem:[#allocation9 + $0x1a4] sm:$0xf0]  ;;  %v6792_v25 = vld [vmem:[#allocation9 + $0x760] sm:$0xf] }
 0x158   :  { %v5981_v34 = vor.u32 %v8456_v57, %v5978_v27  ;;  %v6049_v4 = vor.u32 %v8477_v59, %v6048_v53  ;;  %v8486_v18 = vld [vmem:[#allocation9 + $0x1f4] sm:$0xf]  ;;  %v6098_v19 = vld [vmem:[#allocation9 + $0x208] sm:$0xf0]  ;;  %v6769_v57 = vor.u32 %v8657_v10, %v6768_v9  ;;  %v6961_v27 = vor.u32 %v8705_v13, %v6960_v56  ;;  %v8660_v53 = vld [vmem:[#allocation9 + $0x764] sm:$0xf] }
 0x159   :  { %v9348_v20 = vadd.f32 %v2322_v5, %v2310_v12  ;;  %v6125_v12 = vor.u32 %v8492_v1, %v6122_v2  ;;  %v8708_v59 = vld [vmem:[#allocation9 + $0x8e4] sm:$0xf]  ;;  %v6053_v2 = vor.u32 %v8474_v51, %v6050_v52  ;;  %v6888_v9 = vld [vmem:[#allocation9 + $0x820] sm:$0xf]  ;;  %v8687_v10 = vld [vmem:[#allocation9 + $0x834] sm:$0xf0] }
 0x15a   :  { %2566 = vmatpush.bf16.msra.mxu2 %v6265_v40  ;;  %2579 = vmatpush.bf16.msra.mxu3 %v6457_v42  ;;  %v8450_v40 = vld [vmem:[#allocation9 + $0xd4] sm:$0xf]  ;;  %v6770_v56 = vld [vmem:[#allocation9 + $0x748] sm:$0xf0]  ;;  %v6816_v51 = vld [vmem:[#allocation9 + $0x790] sm:$0xf] }
 0x15b   :  { %2536 = vmatpush.bf16.msra.mxu0 %v5977_v31  ;;  %2549 = vmatpush.bf16.msra.mxu1 %v6169_v32  ;;  %v6097_v31 = vor.u32 %v8489_v24, %v6096_v23  ;;  %v5880_v32 = vld [vmem:[#allocation9 + $0x40] sm:$0xf]  ;;  %v2311_v42 = vpop.f32.mrf.mxu2  ;;  %v2324_v43 = vpop.f32.mrf.mxu3  ;;  %v8702_v13 = vld [vmem:[#allocation9 + $0x8b4] sm:$0xf] }
 0x15c   :  { %v5881_v47 = vor.u32 %v8435_v33, %v5880_v32  ;;  %v2283_v49 = vpop.f32.mrf.mxu0  ;;  %v2296_v50 = vpop.f32.mrf.mxu1  ;;  %v6936_v32 = vld [vmem:[#allocation9 + $0x880] sm:$0xf]  ;;  %v8699_v33 = vld [vmem:[#allocation9 + $0x894] sm:$0xf0]  ;;  %v6720_v43 = vld [vmem:[#allocation9 + $0x6d0] sm:$0xf] }
 0x15d   :  { %v6937_v42 = vor.u32 %v8699_v33, %v6936_v32  ;;  %v8696_v32 = vld [vmem:[#allocation9 + $0x884] sm:$0xf]  ;;  %v6938_v33 = vld [vmem:[#allocation9 + $0x898] sm:$0xf0] }
 0x15e   :  { %2567 = vmatpush.bf16.msra.mxu2 %v6241_v60  ;;  %2580 = vmatpush.bf16.msra.mxu3 %v6433_v26  ;;  %v8663_v60 = vld [vmem:[#allocation9 + $0x774] sm:$0xf0]  ;;  %v6984_v26 = vld [vmem:[#allocation9 + $0x8e0] sm:$0xf] }
 0x15f   :  { %2537 = vmatpush.bf16.msra.mxu0 %v5953_v54  ;;  %2550 = vmatpush.bf16.msra.mxu1 %v6145_v55  ;;  %v2284_v54 = vadd.f32 %v2283_v49, %v2271_v11  ;;  %v5957_v55 = vor.u32 %v8450_v40, %v5954_v44  ;;  %v6793_v5 = vor.u32 %v8663_v60, %v6792_v25  ;;  %v8645_v44 = vld [vmem:[#allocation9 + $0x6e4] sm:$0xf0]  ;;  %v8426_v49 = vld [vmem:[#allocation9 + $0x14] sm:$0xf]  ;;  %v6986_v25 = vld [vmem:[#allocation9 + $0x8f8] sm:$0xf0] }
 0x160   :  { %v6985_v8 = vor.u32 %v8711_v61, %v6984_v26  ;;  %v6745_v40 = vor.u32 %v8651_v29, %v6744_v28  ;;  %v6721_v61 = vor.u32 %v8645_v44, %v6720_v43  ;;  %v8681_v28 = vld [vmem:[#allocation9 + $0x804] sm:$0xf0]  ;;  %v8648_v29 = vld [vmem:[#allocation9 + $0x704] sm:$0xf]  ;;  %v6840_v43 = vld [vmem:[#allocation9 + $0x7c0] sm:$0xf] }
 0x161   :  { %2568 = vmatmul.bf16.vlgmr.msra.gmra.mxu2 %v9302_v14  ;;  %2581 = vmatmul.bf16.vlgmr.msra.gmra.mxu3 %v9304_v15  ;;  %v8675_v44 = vld [vmem:[#allocation9 + $0x7d4] sm:$0xf0] }
 0x162   :  { %2612 = vmatpush.bf16.msrb.mxu2 %v6029_v63  ;;  %2625 = vmatpush.bf16.msrb.mxu3 %v6221_v0  ;;  %v9352_v63 = vadd.f32 %v2296_v50, %v2284_v54  ;;  %v5930_v0 = vld [vmem:[#allocation9 + $0xb8] sm:$0xf0]  ;;  %v5858_v50 = vld [vmem:[#allocation9 + $0x28] sm:$0xf0] }
 0x163   :  { %2538 = vmatpush.bf16.msra.mxu0 %v5929_v16  ;;  %2551 = vmatpush.bf16.msra.mxu1 %v6121_v17  ;;  %v5933_v11 = vor.u32 %v8444_v62, %v5930_v0  ;;  %v8438_v16 = vld [vmem:[#allocation9 + $0x74] sm:$0xf]  ;;  %v5906_v17 = vld [vmem:[#allocation9 + $0x88] sm:$0xf0]  ;;  %v5861_v1 = vor.u32 %v8426_v49, %v5858_v50  ;;  %v6624_v49 = vld [vmem:[#allocation9 + $0x610] sm:$0xf] }
 0x164   :  { %v2285_v23 = vpop.f32.mrf.mxu0  ;;  %v2298_v24 = vpop.f32.mrf.mxu1  ;;  %v8621_v50 = vld [vmem:[#allocation9 + $0x624] sm:$0xf0] }
 0x165   :  { %v8633_v23 = vld [vmem:[#allocation9 + $0x684] sm:$0xf0] }
 0x166   :  { %2613 = vmatpush.bf16.msrb.mxu2 %v6005_v21  ;;  %2626 = vmatpush.bf16.msrb.mxu3 %v6197_v22  ;;  %v9354_v21 = vpop.f32.mrf.mxu2  ;;  %v9356_v22 = vpop.f32.mrf.mxu3 }
 0x167   :  { %2539 = vmatpush.bf16.msra.mxu0 %v5905_v30  ;;  %2552 = vmatpush.bf16.msra.mxu1 %v6097_v31  ;;  %v5909_v30 = vor.u32 %v8438_v16, %v5906_v17  ;;  %v6101_v31 = vor.u32 %v8486_v18, %v6098_v19  ;;  %v6962_v16 = vld [vmem:[#allocation9 + $0x8c8] sm:$0xf0]  ;;  %v6889_v18 = vor.u32 %v8687_v10, %v6888_v9  ;;  %v6672_v19 = vld [vmem:[#allocation9 + $0x670] sm:$0xf] }
 0x16a   :  { %2614 = vmatpush.bf16.msrb.mxu2 %v5981_v34  ;;  %2627 = vmatpush.bf16.msrb.mxu3 %v6173_v37  ;;  %v8432_v34 = vld [vmem:[#allocation9 + $0x44] sm:$0xf]  ;;  %v5882_v37 = vld [vmem:[#allocation9 + $0x58] sm:$0xf0] }
 0x16b   :  { %2540 = vmatpush.bf16.msra.mxu0 %v5881_v47  ;;  %2553 = vmatpush.bf16.msra.mxu1 %v6073_v48  ;;  %v5885_v46 = vor.u32 %v8432_v34, %v5882_v37  ;;  %v6077_v47 = vor.u32 %v8480_v38, %v6074_v39  ;;  %v8693_v48 = vld [vmem:[#allocation9 + $0x864] sm:$0xf0]  ;;  %v6673_v37 = vor.u32 %v8633_v23, %v6672_v19  ;;  %v6648_v39 = vld [vmem:[#allocation9 + $0x640] sm:$0xf]  ;;  %v8552_v23 = vld [vmem:[#allocation9 + $0x404] sm:$0xf] }
 0x16c   :  { %v6913_v62 = vor.u32 %v8693_v48, %v6912_v45  ;;  %v8642_v45 = vld [vmem:[#allocation9 + $0x6d4] sm:$0xf]  ;;  %v6841_v48 = vor.u32 %v8675_v44, %v6840_v43 }
 0x16d   :  { %v2335_v60 = vpop.f32.mrf.mxu0  ;;  %v2348_v26 = vpop.f32.mrf.mxu1  ;;  %v8594_v44 = vld [vmem:[#allocation9 + $0x554] sm:$0xf] }
 0x16e   :  { %2615 = vmatpush.bf16.msrb.mxu2 %v5957_v55  ;;  %2628 = vmatpush.bf16.msrb.mxu3 %v6149_v58  ;;  %v2363_v54 = vpop.f32.mrf.mxu2  ;;  %v2376_v55 = vpop.f32.mrf.mxu3  ;;  %v6794_v58 = vld [vmem:[#allocation9 + $0x778] sm:$0xf0]  ;;  %v2336_v0 = vadd.f32 %v2335_v60, %v9348_v20  ;;  %v8636_v60 = vld [vmem:[#allocation9 + $0x6a4] sm:$0xf] }
 0x16f   :  { %2541 = vmatpush.bf16.msra.mxu0 %v5857_v3  ;;  %2554 = vmatpush.bf16.msra.mxu1 %v6049_v4  ;;  %v6696_v3 = vld [vmem:[#allocation9 + $0x6a0] sm:$0xf]  ;;  %v8639_v4 = vld [vmem:[#allocation9 + $0x6b4] sm:$0xf0]  ;;  %v8669_v54 = vld [vmem:[#allocation9 + $0x7a4] sm:$0xf0] }
 0x170   :  { %v6697_v20 = vor.u32 %v8639_v4, %v6696_v3  ;;  %v8564_v55 = vld [vmem:[#allocation9 + $0x464] sm:$0xf]  ;;  %v8558_v4 = vld [vmem:[#allocation9 + $0x434] sm:$0xf] }
 0x172   :  { %2616 = vmatpush.bf16.msrb.mxu2 %v5933_v11  ;;  %2629 = vmatpush.bf16.msrb.mxu3 %v6125_v12  ;;  %v8654_v11 = vld [vmem:[#allocation9 + $0x734] sm:$0xf]  ;;  %v2349_v12 = vadd.f32 %v2348_v26, %v2336_v0  ;;  %v6698_v26 = vld [vmem:[#allocation9 + $0x6b8] sm:$0xf0]  ;;  %v6625_v0 = vor.u32 %v8621_v50, %v6624_v49 }
 0x173   :  { %2586 = vmatpush.bf16.msrb.mxu0 %v6793_v5  ;;  %2599 = vmatpush.bf16.msrb.mxu1 %v6985_v8  ;;  %v6797_v5 = vor.u32 %v8660_v53, %v6794_v58  ;;  %v6989_v8 = vor.u32 %v8708_v59, %v6986_v25  ;;  %v6773_v24 = vor.u32 %v8654_v11, %v6770_v56  ;;  %v6410_v58 = vld [vmem:[#allocation9 + $0x478] sm:$0xf0]  ;;  %v8612_v59 = vld [vmem:[#allocation9 + $0x5e4] sm:$0xf]  ;;  %v6578_v56 = vld [vmem:[#allocation9 + $0x5c8] sm:$0xf0] }
 0x174   :  { %2542 = vmatmul.bf16.vlgmr.msra.gmra.mxu0 %v9310_v35  ;;  %2555 = vmatmul.bf16.vlgmr.msra.gmra.mxu1 %v9312_v36  ;;  %v2362_v17 = vadd.f32 %v9354_v21, %v2349_v12  ;;  %v6602_v25 = vld [vmem:[#allocation9 + $0x5f8] sm:$0xf0]  ;;  %v8606_v12 = vld [vmem:[#allocation9 + $0x5b4] sm:$0xf] }
 0x175   :  { %v2337_v21 = vpop.f32.mrf.mxu0  ;;  %v2350_v34 = vpop.f32.mrf.mxu1  ;;  %v6605_v3 = vor.u32 %v8612_v59, %v6602_v25  ;;  %v6581_v19 = vor.u32 %v8606_v12, %v6578_v56  ;;  %v6506_v59 = vld [vmem:[#allocation9 + $0x538] sm:$0xf0]  ;;  %v8576_v56 = vld [vmem:[#allocation9 + $0x4c4] sm:$0xf] }
 0x176   :  { %2617 = vmatpush.bf16.msrb.mxu2 %v5909_v30  ;;  %2630 = vmatpush.bf16.msrb.mxu3 %v6101_v31  ;;  %v9363_v30 = vadd.f32 %v9356_v22, %v2362_v17  ;;  %v6746_v31 = vld [vmem:[#allocation9 + $0x718] sm:$0xf0]  ;;  %v6941_v22 = vor.u32 %v8696_v32, %v6938_v33  ;;  %v8678_v17 = vld [vmem:[#allocation9 + $0x7f4] sm:$0xf]  ;;  %v8672_v33 = vld [vmem:[#allocation9 + $0x7c4] sm:$0xf] }
 0x177   :  { %2587 = vmatpush.bf16.msrb.mxu0 %v6769_v57  ;;  %2600 = vmatpush.bf16.msrb.mxu1 %v6961_v27  ;;  %v6965_v57 = vor.u32 %v8702_v13, %v6962_v16  ;;  %v6864_v27 = vld [vmem:[#allocation9 + $0x7f0] sm:$0xf]  ;;  %v8630_v13 = vld [vmem:[#allocation9 + $0x674] sm:$0xf]  ;;  %v6674_v16 = vld [vmem:[#allocation9 + $0x688] sm:$0xf0] }
 0x178   :  { %v6865_v38 = vor.u32 %v8681_v28, %v6864_v27  ;;  %v8600_v28 = vld [vmem:[#allocation9 + $0x584] sm:$0xf]  ;;  %v6650_v32 = vld [vmem:[#allocation9 + $0x658] sm:$0xf0] }
 0x179   :  { %v6842_v21 = vld [vmem:[#allocation9 + $0x7d8] sm:$0xf0] }
 0x17a   :  { %2618 = vmatpush.bf16.msrb.mxu2 %v5885_v46  ;;  %2631 = vmatpush.bf16.msrb.mxu3 %v6077_v47  ;;  %v6722_v46 = vld [vmem:[#allocation9 + $0x6e8] sm:$0xf0]  ;;  %v8690_v47 = vld [vmem:[#allocation9 + $0x854] sm:$0xf]  ;;  %v9378_v25 = vld [vmem:[%s9977_s6 + $0xb8] sm:$0xff] }
 0x17b   :  { %2588 = vmatpush.bf16.msrb.mxu0 %v6745_v40  ;;  %2601 = vmatpush.bf16.msrb.mxu1 %v6937_v42  ;;  %v8627_v40 = vld [vmem:[#allocation9 + $0x654] sm:$0xf0]  ;;  %v6749_v42 = vor.u32 %v8648_v29, %v6746_v31  ;;  %v6725_v52 = vor.u32 %v8642_v45, %v6722_v46  ;;  %v6554_v29 = vld [vmem:[#allocation9 + $0x598] sm:$0xf0]  ;;  %v8624_v31 = vld [vmem:[#allocation9 + $0x644] sm:$0xf] }
 0x17c   :  { %v6530_v45 = vld [vmem:[#allocation9 + $0x568] sm:$0xf0]  ;;  %v8618_v46 = vld [vmem:[#allocation9 + $0x614] sm:$0xf]  ;;  %v6266_v12 = vld [vmem:[#allocation9 + $0x358] sm:$0xf0] }
 0x17e   :  { %2619 = vmatpush.bf16.msrb.mxu2 %v5861_v1  ;;  %2632 = vmatpush.bf16.msrb.mxu3 %v6053_v2  ;;  %v6817_v1 = vor.u32 %v8669_v54, %v6816_v51  ;;  %v6413_v2 = vor.u32 %v8564_v55, %v6410_v58  ;;  %v6533_v51 = vor.u32 %v8594_v44, %v6530_v45  ;;  %v8540_v54 = vld [vmem:[#allocation9 + $0x3a4] sm:$0xf]  ;;  %v6314_v55 = vld [vmem:[#allocation9 + $0x3b8] sm:$0xf0]  ;;  %v9453_v44 = vld [vmem:[%s9977_s6 + $0x90] sm:$0xff] }
 0x17f   :  { %2589 = vmatpush.bf16.msrb.mxu0 %v6721_v61  ;;  %2602 = vmatpush.bf16.msrb.mxu1 %v6913_v62  ;;  %v8684_v61 = vld [vmem:[#allocation9 + $0x824] sm:$0xf]  ;;  %v6890_v62 = vld [vmem:[#allocation9 + $0x838] sm:$0xf0] }
 0x180   :  { %v6893_v9 = vor.u32 %v8684_v61, %v6890_v62  ;;  %v8588_v58 = vld [vmem:[#allocation9 + $0x524] sm:$0xf]  ;;  %v8534_v61 = vld [vmem:[#allocation9 + $0x374] sm:$0xf]  ;;  %v6290_v62 = vld [vmem:[#allocation9 + $0x388] sm:$0xf0] }
 0x181   :  { %2620 = vmatmul.bf16.vlgmr.msrb.gmra.mxu2 %v9310_v35  ;;  %2633 = vmatmul.bf16.vlgmr.msrb.gmra.mxu3 %v9312_v36  ;;  %v6914_v35 = vld [vmem:[#allocation9 + $0x868] sm:$0xf0]  ;;  %v6649_v36 = vor.u32 %v8627_v40, %v6648_v39  ;;  %v6653_v40 = vor.u32 %v8624_v31, %v6650_v32 }
 0x182   :  { %2664 = vmatpush.bf16.msra.mxu2 %v6797_v5  ;;  %2677 = vmatpush.bf16.msra.mxu3 %v6989_v8  ;;  %v6917_v53 = vor.u32 %v8690_v47, %v6914_v35  ;;  %v6386_v5 = vld [vmem:[#allocation9 + $0x448] sm:$0xf0]  ;;  %v6701_v8 = vor.u32 %v8636_v60, %v6698_v26  ;;  %v8666_v35 = vld [vmem:[#allocation9 + $0x794] sm:$0xf]  ;;  %v6317_v60 = vor.u32 %v8540_v54, %v6314_v55 }
 0x183   :  { %2590 = vmatpush.bf16.msrb.mxu0 %v6697_v20  ;;  %2603 = vmatpush.bf16.msrb.mxu1 %v6889_v18  ;;  %v6866_v20 = vld [vmem:[#allocation9 + $0x808] sm:$0xf0]  ;;  %v6389_v18 = vor.u32 %v8558_v4, %v6386_v5  ;;  %v6509_v26 = vor.u32 %v8588_v58, %v6506_v59  ;;  %v6293_v5 = vor.u32 %v8534_v61, %v6290_v62  ;;  %v9503_v58 = vld [vmem:[%s9977_s6 + $0x18] sm:$0xff] }
 0x184   :  { %v9367_v10 = vpop.f32.mrf.mxu2  ;;  %v9369_v11 = vpop.f32.mrf.mxu3  ;;  %v6869_v27 = vor.u32 %v8678_v17, %v6866_v20  ;;  %v6338_v39 = vld [vmem:[#allocation9 + $0x3e8] sm:$0xf0]  ;;  %v9508_v59 = vld [vmem:[%s9977_s6 + $0x58] sm:$0xff] }
 0x185   :  { %v6626_v47 = vld [vmem:[#allocation9 + $0x628] sm:$0xf0] }
 0x186   :  { %2665 = vmatpush.bf16.msra.mxu2 %v6773_v24  ;;  %2678 = vmatpush.bf16.msra.mxu3 %v6965_v57  ;;  %v6362_v24 = vld [vmem:[#allocation9 + $0x418] sm:$0xf0]  ;;  %v6677_v57 = vor.u32 %v8630_v13, %v6674_v16  ;;  %v9392_v16 = vld [vmem:[%s9977_s6 + $0xa8] sm:$0xff] }
 0x187   :  { %2591 = vmatpush.bf16.msrb.mxu0 %v6673_v37  ;;  %2604 = vmatpush.bf16.msrb.mxu1 %v6865_v38  ;;  %v6365_v34 = vor.u32 %v8552_v23, %v6362_v24  ;;  %v6557_v37 = vor.u32 %v8600_v28, %v6554_v29  ;;  %v8546_v38 = vld [vmem:[#allocation9 + $0x3d4] sm:$0xf]  ;;  %v6458_v13 = vld [vmem:[#allocation9 + $0x4d8] sm:$0xf0]  ;;  %v6242_v23 = vld [vmem:[#allocation9 + $0x328] sm:$0xf0] }
 0x188   :  { %v6341_v50 = vor.u32 %v8546_v38, %v6338_v39  ;;  %v8570_v24 = vld [vmem:[#allocation9 + $0x494] sm:$0xf]  ;;  %v9433_v39 = vld [vmem:[%s9977_s6 + $0x98] sm:$0xff] }
 0x189   :  { %v9409_v28 = vld [vmem:[%s9977_s6 + $0xf0] sm:$0xff] }
 0x18a   :  { %2666 = vmatpush.bf16.msra.mxu2 %v6749_v42  ;;  %2679 = vmatpush.bf16.msra.mxu3 %v6941_v22  ;;  %v6845_v42 = vor.u32 %v8672_v33, %v6842_v21  ;;  %v8377_v33 = vld [vmem:[%s9977_s6 + $0x38] sm:$0xff] }
 0x18b   :  { %2592 = vmatpush.bf16.msrb.mxu0 %v6649_v36  ;;  %2605 = vmatpush.bf16.msrb.mxu1 %v6841_v48  ;;  %v6818_v36 = vld [vmem:[#allocation9 + $0x7a8] sm:$0xf0]  ;;  %v9418_v21 = vld [vmem:[%s9977_s6 + $0x78] sm:$0xff] }
 0x18c   :  { %v2415_v22 = vpop.f32.mrf.mxu2  ;;  %v2428_v43 = vpop.f32.mrf.mxu3  ;;  %5572 = vrot.lane.b32.xlu1 %v8377_v33, %s9197_s4 }
 0x18d   :  { %v8376_v22 = vld [vmem:[%s9977_s6 + $0x30] sm:$0xff] }
 0x18e   :  { %2667 = vmatpush.bf16.msra.mxu2 %v6725_v52  ;;  %2680 = vmatpush.bf16.msra.mxu3 %v6917_v53  ;;  %v6629_v52 = vor.u32 %v8618_v46, %v6626_v47  ;;  %v6821_v53 = vor.u32 %v8666_v35, %v6818_v36  ;;  %v8384_v43 = vld [vmem:[%s9977_s6 + $0x70] sm:$0xff]  ;;  %v9462_v46 = vld [vmem:[%s9977_s6 + $0xd8] sm:$0xff]  ;;  %v8375_v47 = vld [vmem:[%s9977_s6 + $0x28] sm:$0xff] }
 0x18f   :  { %2593 = vmatpush.bf16.msrb.mxu0 %v6625_v0  ;;  %2606 = vmatpush.bf16.msrb.mxu1 %v6817_v1  ;;  %v8582_v0 = vld [vmem:[#allocation9 + $0x4f4] sm:$0xf]  ;;  %v6482_v1 = vld [vmem:[#allocation9 + $0x508] sm:$0xf0] }
 0x190   :  { %5570 = vrot.lane.b32.xlu2 %v8376_v22, %s9197_s4 }
 0x191   :  { %v2387_v48 = vpop.f32.mrf.mxu0  ;;  %v9373_v49 = vpop.f32.mrf.mxu1 }
 0x192   :  { %2668 = vmatpush.bf16.msra.mxu2 %v6701_v8  ;;  %2681 = vmatpush.bf16.msra.mxu3 %v6893_v9  ;;  %v6485_v8 = vor.u32 %v8582_v0, %v6482_v1  ;;  %v8528_v9 = vld [vmem:[#allocation9 + $0x344] sm:$0xf]  ;;  %v9523_v0 = vld [vmem:[%s9977_s6 + $0x10] sm:$0xff] }
 0x193   :  { %2638 = vmatpush.bf16.msra.mxu0 %v6413_v2  ;;  %2651 = vmatpush.bf16.msra.mxu1 %v6605_v3  ;;  %v9384_v2 = vld [vmem:[%s9977_s6 + $0xb0] sm:$0xff]  ;;  %v6269_v20 = vor.u32 %v8528_v9, %v6266_v12  ;;  %v9561_v9 = vld [vmem:[%s9977_s6 + $0x40] sm:$0xff]  ;;  %v2690_v12 = vmax.f32 %v9352_v63, 0.0 }
 0x194   :  { %2594 = vmatmul.bf16.vlgmr.msrb.gmra.mxu0 %v9320_v6  ;;  %2607 = vmatmul.bf16.vlgmr.msrb.gmra.mxu1 %v9322_v7  ;;  %v9528_v1 = vld [vmem:[%s9977_s6 + $0x50] sm:$0xff] }
 0x195   :  { %5588 = vrot.lane.b32.xlu1 %v9418_v21, %s9197_s4 }
 0x196   :  { %2669 = vmatpush.bf16.msra.mxu2 %v6677_v57  ;;  %2682 = vmatpush.bf16.msra.mxu3 %v6869_v27  ;;  %v6434_v57 = vld [vmem:[#allocation9 + $0x4a8] sm:$0xf0]  ;;  %v9404_v27 = vld [vmem:[%s9977_s6 + $0xa0] sm:$0xff] }
 0x197   :  { %2639 = vmatpush.bf16.msra.mxu0 %v6389_v18  ;;  %2652 = vmatpush.bf16.msra.mxu1 %v6581_v19  ;;  %v6461_v18 = vor.u32 %v8576_v56, %v6458_v13  ;;  %v8522_v19 = vld [vmem:[#allocation9 + $0x314] sm:$0xf]  ;;  %v6437_v32 = vor.u32 %v8570_v24, %v6434_v57  ;;  %v2691_v56 = vmax.f32 %v9363_v30, 0.0 }
 0x198   :  { %v6245_v31 = vor.u32 %v8522_v19, %v6242_v23  ;;  %5586 = vrot.lane.b32.xlu2 %v8384_v43, %s9197_s4 }
 0x199   :  { %v2389_v3 = vpop.f32.mrf.mxu0  ;;  %v2402_v4 = vpop.f32.mrf.mxu1  ;;  %v2697_v19 = vpack.c.bf16 %v2691_v56, %v2691_v56 }
 0x19a   :  { %2670 = vmatpush.bf16.msra.mxu2 %v6653_v40  ;;  %2683 = vmatpush.bf16.msra.mxu3 %v6845_v42  ;;  %v9440_v42 = vld [vmem:[%s9977_s6 + $0xe0] sm:$0xff]  ;;  %v9542_v4 = vld [vmem:[%s9977_s6 + $0x8] sm:$0xff] }
 0x19b   :  { %2640 = vmatpush.bf16.msra.mxu0 %v6365_v34  ;;  %2653 = vmatpush.bf16.msra.mxu1 %v6557_v37  ;;  %v9424_v34 = vld [vmem:[%s9977_s6 + $0xe8] sm:$0xff]  ;;  %v9533_v3 = vld [vmem:[%s9977_s6 + $0xc0] sm:$0xff] }
 0x19d   :  { %5568 = vrot.lane.b32.xlu1 %v8375_v47, %s9197_s4 }
 0x19e   :  { %2671 = vmatpush.bf16.msra.mxu2 %v6629_v52  ;;  %2684 = vmatpush.bf16.msra.mxu3 %v6821_v53  ;;  %v9484_v52 = vld [vmem:[%s9977_s6 + $0x60] sm:$0xff] }
 0x19f   :  { %2641 = vmatpush.bf16.msra.mxu0 %v6341_v50  ;;  %2654 = vmatpush.bf16.msra.mxu1 %v6533_v51  ;;  %v8374_v51 = vld [vmem:[%s9977_s6 + $0x20] sm:$0xff] }
 0x1a0   :  { %v9495_v53 = vld [vmem:[%s9977_s6 + $0x80] sm:$0xff] }
 0x1a1   :  { %2672 = vmatmul.bf16.vlgmr.msra.gmra.mxu2 %v9320_v6  ;;  %2685 = vmatmul.bf16.vlgmr.msra.gmra.mxu3 %v9322_v7  ;;  %v9397_v6 = vld [vmem:[%s9977_s6 + $0xf8] sm:$0xff]  ;;  %v9022_v7 = vld [vmem:[#allocation10 + $0x10] sm:$0xff] }
 0x1a2   :  { %3017 = vmatpush.bf16.msrb.mxu2 %v9378_v25  ;;  %v778_v17 = vperm.slane %v9022_v7, 1  ;;  %3030 = vmatpush.bf16.msrb.mxu3 %v9397_v6 }
 0x1a3   :  { %2642 = vmatpush.bf16.msra.mxu0 %v6317_v60  ;;  %2655 = vmatpush.bf16.msra.mxu1 %v6509_v26  ;;  %v9513_v60 = vld [vmem:[%s9977_s6 + $0xc8] sm:$0xff] }
 0x1a4   :  { %v2388_v29 = vadd.f32 %v2387_v48, %v778_v17  ;;  %v9426_v37 = vpop.f32.mrf.mxu2  ;;  %v9428_v38 = vpop.f32.mrf.mxu3  ;;  %v9566_v17 = vld [vmem:[#allocation10 + $0x18] sm:$0xff] }
 0x1a5   :  { %5602 = vrot.lane.b32.xlu1 %v9384_v2, %s9197_s4 }
 0x1a6   :  { %3018 = vmatpush.bf16.msrb.mxu2 %v9384_v2  ;;  %3031 = vmatpush.bf16.msrb.mxu3 %v9409_v28  ;;  %v2401_v40 = vadd.f32 %v9373_v49, %v2388_v29 }
 0x1a7   :  { %2643 = vmatpush.bf16.msra.mxu0 %v6293_v5  ;;  %2656 = vmatpush.bf16.msra.mxu1 %v6485_v8  ;;  %v9547_v5 = vld [vmem:[%s9977_s6 + $0x48] sm:$0xff]  ;;  %v9556_v8 = vld [vmem:[%s9977_s6] sm:$0xff] }
 0x1a8   :  { %v2414_v45 = vadd.f32 %v9367_v10, %v2401_v40  ;;  %v8383_v10 = vld [vmem:[%s9977_s6 + $0x68] sm:$0xff] }
 0x1a9   :  { %5584 = vrot.lane.b32.xlu2 %v8383_v10, %s9197_s4 }
 0x1aa   :  { %3019 = vmatpush.bf16.msrb.mxu2 %v9392_v16  ;;  %3032 = vmatpush.bf16.msrb.mxu3 %v9424_v34  ;;  %v2427_v36 = vadd.f32 %v9369_v11, %v2414_v45  ;;  %v9489_v11 = vld [vmem:[%s9977_s6 + $0xd0] sm:$0xff] }
 0x1ab   :  { %2644 = vmatpush.bf16.msra.mxu0 %v6269_v20  ;;  %2657 = vmatpush.bf16.msra.mxu1 %v6461_v18  ;;  %v779_v20 = vperm.slane %v9566_v17, 1  ;;  %v2696_v18 = vpack.c.bf16 %v2690_v12, %v2690_v12 }
 0x1ac   :  { %v2480_v35 = vpop.f32.mrf.mxu3 }
 0x1ad   :  { %v2466_v63 = vadd.f32 %v9426_v37, %v779_v20  ;;  %v9586_v37 = vld [vmem:[%s9977_s6 + $0x130] sm:$0xff]  ;;  %5618 = vrot.lane.b32.xlu1 %v9409_v28, %s9197_s4 }
 0x1ae   :  { %3020 = vmatpush.bf16.msrb.mxu2 %v9404_v27  ;;  %3033 = vmatpush.bf16.msrb.mxu3 %v9440_v42  ;;  %v9665_v20 = vld [vmem:[%s9977_s6 + $0x150] sm:$0xff] }
 0x1af   :  { %2645 = vmatpush.bf16.msra.mxu0 %v6245_v31  ;;  %2658 = vmatpush.bf16.msra.mxu1 %v6437_v32  ;;  %v2479_v24 = vadd.f32 %v9428_v38, %v2466_v63 }
 0x1b1   :  { %v2439_v48 = vpop.f32.mrf.mxu0  ;;  %v2452_v49 = vpop.f32.mrf.mxu1  ;;  %5566 = vrot.lane.b32.xlu2 %v8374_v51, %s9197_s4 }
 0x1b2   :  { %3021 = vmatpush.bf16.msrb.mxu2 %v9433_v39  ;;  %2646 = vmatmul.bf16.vlgmr.msra.gmra.mxu0 %v9302_v14  ;;  %v2467_v14 = vpop.f32.mrf.mxu2  ;;  %v2440_v50 = vadd.f32 %v2439_v48, %v2427_v36  ;;  %v9626_v36 = vld [vmem:[%s9977_s6 + $0x108] sm:$0xff] }
 0x1b3   :  { %2991 = vmatpush.bf16.msrb.mxu0 %v8377_v33  ;;  %3004 = vmatpush.bf16.msrb.mxu1 %v9418_v21  ;;  %v9580_v33 = vld [vmem:[%s9977_s6 + $0x138] sm:$0xff] }
 0x1b4   :  { %2659 = vmatmul.bf16.vlgmr.msra.gmra.mxu1 %v9304_v15  ;;  %v9474_v15 = vld [vmem:[%s9977_s6 + $0x88] sm:$0xff]  ;;  %3034 = vmatpush.bf16.msrb.mxu3 %v9462_v46  ;;  %v2453_v54 = vadd.f32 %v2452_v49, %v2440_v50  ;;  %v8417_v50 = vld [vmem:[%s9977_s6 + $0x178] sm:$0xff] }
 0x1b5   :  { %5580 = vrot.lane.b32.xlu1 %v9508_v59, %s9197_s4 }
 0x1b6   :  { %3022 = vmatpush.bf16.msrb.mxu2 %v9453_v44  ;;  %v2692_v55 = vmax.f32 %v2453_v54, 0.0 }
 0x1b7   :  { %2992 = vmatpush.bf16.msrb.mxu0 %v8376_v22  ;;  %3005 = vmatpush.bf16.msrb.mxu1 %v8384_v43  ;;  %v9596_v43 = vld [vmem:[%s9977_s6 + $0x128] sm:$0xff] }
 0x1b8   :  { %3035 = vmatpush.bf16.msrb.mxu3 %v9489_v11  ;;  %v2698_v26 = vpack.c.bf16 %v2692_v55, %v2692_v55  ;;  %v9024_v55 = vld [vmem:[#allocation10 + $0x20] sm:$0xff] }
 0x1b9   :  { %v2441_v61 = vpop.f32.mrf.mxu0  ;;  %v2454_v62 = vpop.f32.mrf.mxu1  ;;  %5600 = vrot.lane.b32.xlu2 %v9392_v16, %s9197_s4  ;;  %v9606_v16 = vld [vmem:[%s9977_s6 + $0x120] sm:$0xff] }
 0x1ba   :  { %3023 = vmatpush.bf16.msrb.mxu2 %v9474_v15 }
 0x1bb   :  { %2993 = vmatpush.bf16.msrb.mxu0 %v8375_v47  ;;  %3006 = vmatpush.bf16.msrb.mxu1 %v8383_v10  ;;  %v9612_v10 = vld [vmem:[%s9977_s6 + $0x118] sm:$0xff] }
 0x1bc   :  { %3036 = vmatpush.bf16.msrb.mxu3 %v9513_v60 }
 0x1bd   :  { %5652 = vrot.lane.b32.xlu1 %v8417_v50, %s9197_s4 }
 0x1be   :  { %3024 = vmatpush.bf16.msrb.mxu2 %v9495_v53 }
 0x1bf   :  { %2994 = vmatpush.bf16.msrb.mxu0 %v8374_v51  ;;  %3007 = vmatpush.bf16.msrb.mxu1 %v9484_v52 }
 0x1c0   :  { %3037 = vmatpush.bf16.msrb.mxu3 %v9533_v3 }
 0x1c1   :  { %3025 = vmatmul.bf16.vlgmr.msrb.gmra.mxu2 %v2698_v26  ;;  %5616 = vrot.lane.b32.xlu2 %v9424_v34, %s9197_s4  ;;  %v9620_v34 = vld [vmem:[%s9977_s6 + $0x110] sm:$0xff]  ;;  %v8415_v26 = vld [vmem:[%s9977_s6 + $0x168] sm:$0xff] }
 0x1c3   :  { %2995 = vmatpush.bf16.msrb.mxu0 %v9503_v58  ;;  %3008 = vmatpush.bf16.msrb.mxu1 %v9508_v59  ;;  %v780_v59 = vperm.slane %v9024_v55, 1 }
 0x1c4   :  { %v2517_v13 = vpop.f32.mrf.mxu2  ;;  %v2530_v7 = vpop.f32.mrf.mxu3 }
 0x1c5   :  { %5578 = vrot.lane.b32.xlu1 %v9528_v1, %s9197_s4 }
 0x1c7   :  { %2996 = vmatpush.bf16.msrb.mxu0 %v9523_v0  ;;  %3009 = vmatpush.bf16.msrb.mxu1 %v9528_v1 }
 0x1c9   :  { %5598 = vrot.lane.b32.xlu2 %v9404_v27, %s9197_s4  ;;  %v9634_v27 = vld [vmem:[%s9977_s6 + $0x100] sm:$0xff] }
 0x1cb   :  { %2997 = vmatpush.bf16.msrb.mxu0 %v9542_v4  ;;  %3010 = vmatpush.bf16.msrb.mxu1 %v9547_v5 }
 0x1cc   :  { %v2519_v30 = vpop.f32.mrf.mxu2  ;;  %v2532_v23 = vpop.f32.mrf.mxu3 }
 0x1cf   :  { %2998 = vmatpush.bf16.msrb.mxu0 %v9556_v8  ;;  %3011 = vmatpush.bf16.msrb.mxu1 %v9561_v9 }
 0x1d1   :  { %v2491_v57 = vpop.f32.mrf.mxu0  ;;  %v2504_v29 = vpop.f32.mrf.mxu1  ;;  %5614 = vrot.lane.b32.xlu2 %v9440_v42, %s9197_s4  ;;  %v8416_v42 = vld [vmem:[%s9977_s6 + $0x170] sm:$0xff] }
 0x1d2   :  { %2999 = vmatmul.bf16.vlgmr.msrb.gmra.mxu0 %v2696_v18  ;;  %3012 = vmatmul.bf16.vlgmr.msrb.gmra.mxu1 %v2697_v19  ;;  %v2492_v31 = vadd.f32 %v2491_v57, %v2479_v24  ;;  %v8410_v57 = vld [vmem:[%s9977_s6 + $0x140] sm:$0xff] }
 0x1d3   :  { %3043 = vmatpush.bf16.msra.mxu0 %v9580_v33  ;;  %3056 = vmatpush.bf16.msra.mxu1 %v8417_v50 }
 0x1d4   :  { %v2505_v32 = vadd.f32 %v2504_v29, %v2492_v31  ;;  %5650 = vrot.lane.b32.xlu1 %v8416_v42, %s9197_s4 }
 0x1d6   :  { %v2518_v21 = vadd.f32 %v2517_v13, %v2505_v32  ;;  %v8413_v13 = vld [vmem:[%s9977_s6 + $0x158] sm:$0xff] }
 0x1d7   :  { %3044 = vmatpush.bf16.msra.mxu0 %v9586_v37  ;;  %3057 = vmatpush.bf16.msra.mxu1 %v8416_v42  ;;  %v9697_v42 = vld [vmem:[#allocation10] sm:$0xff] }
 0x1d8   :  { %v2531_v38 = vadd.f32 %v2530_v7, %v2518_v21  ;;  %v9684_v21 = vld [vmem:[#allocation10 + $0x28] sm:$0xff]  ;;  %v2702_v55 = vperm.slane %v9697_v42, 4 }
 0x1d9   :  { %v2493_v2 = vpop.f32.mrf.mxu0  ;;  %v2506_v40 = vpop.f32.mrf.mxu1  ;;  %5596 = vrot.lane.b32.xlu2 %v9433_v39, %s9197_s4  ;;  %v8414_v39 = vld [vmem:[%s9977_s6 + $0x160] sm:$0xff] }
 0x1da   :  { %v2693_v22 = vmax.f32 %v2531_v38, 0.0  ;;  %v781_v38 = vperm.slane %v9684_v21, 1 }
 0x1db   :  { %3045 = vmatpush.bf16.msra.mxu0 %v9596_v43  ;;  %3058 = vmatpush.bf16.msra.mxu1 %v8415_v26 }
 0x1dc   :  { %v2699_v45 = vpack.c.bf16 %v2693_v22, %v2693_v22  ;;  %5576 = vrot.lane.b32.xlu1 %v9547_v5, %s9197_s4 }
 0x1de   :  { %3038 = vmatmul.bf16.vlgmr.msrb.gmra.mxu3 %v2699_v45 }
 0x1df   :  { %3046 = vmatpush.bf16.msra.mxu0 %v9606_v16  ;;  %3059 = vmatpush.bf16.msra.mxu1 %v8414_v39 }
 0x1e1   :  { %5612 = vrot.lane.b32.xlu2 %v9462_v46, %s9197_s4 }
 0x1e3   :  { %3047 = vmatpush.bf16.msra.mxu0 %v9612_v10  ;;  %3060 = vmatpush.bf16.msra.mxu1 %v8413_v13 }
 0x1e4   :  { %v2569_v28 = vpop.f32.mrf.mxu2  ;;  %v2582_v47 = vpop.f32.mrf.mxu3  ;;  %5648 = vrot.lane.b32.xlu1 %v8415_v26, %s9197_s4 }
 0x1e7   :  { %3048 = vmatpush.bf16.msra.mxu0 %v9620_v34  ;;  %3061 = vmatpush.bf16.msra.mxu1 %v9665_v20 }
 0x1e9   :  { %5594 = vrot.lane.b32.xlu2 %v9453_v44, %s9197_s4  ;;  %v8411_v44 = vld [vmem:[%s9977_s6 + $0x148] sm:$0xff]  ;;  %s9198_s6 = smov 8  }
 0x1eb   :  { %3049 = vmatpush.bf16.msra.mxu0 %v9626_v36  ;;  %3062 = vmatpush.bf16.msra.mxu1 %v8411_v44 }
 0x1ec   :  { %v2571_v14 = vpop.f32.mrf.mxu2  ;;  %v2584_v35 = vpop.f32.mrf.mxu3  ;;  %5574 = vrot.lane.b32.xlu1 %v9561_v9, %s9197_s4 }
 0x1ed   :  { %v3073_v35 = vld [vmem:[#allocation4] sm:$0xff] }
 0x1ee   :  { %3075 = vrot.lane.b32.xlu0 %v3073_v35, %s9198_s6  ;;  %v7200_v35 = vld [vmem:[#allocation6 + $0x50] sm:$0xf0] }
 0x1ef   :  { %3050 = vmatpush.bf16.msra.mxu0 %v9634_v27  ;;  %3063 = vmatpush.bf16.msra.mxu1 %v8410_v57 }
 0x1f1   :  { %v2543_v48 = vpop.f32.mrf.mxu0  ;;  %v2556_v49 = vpop.f32.mrf.mxu1  ;;  %5610 = vrot.lane.b32.xlu2 %v9489_v11, %s9197_s4 }
 0x1f2   :  { %v2544_v61 = vadd.f32 %v2543_v48, %v780_v59 }
 0x1f4   :  { %v2557_v56 = vadd.f32 %v2556_v49, %v2544_v61  ;;  %5646 = vrot.lane.b32.xlu1 %v8414_v39, %s9197_s4 }
 0x1f6   :  { %v2570_v46 = vadd.f32 %v2569_v28, %v2557_v56 }
 0x1f8   :  { %v2583_v18 = vadd.f32 %v2582_v47, %v2570_v46 }
 0x1f9   :  { %v2545_v51 = vpop.f32.mrf.mxu0  ;;  %v2558_v54 = vpop.f32.mrf.mxu1  ;;  %5592 = vrot.lane.b32.xlu2 %v9474_v15, %s9197_s4 }
 0x1fc   :  { %5628 = vrot.lane.b32.xlu1 %v9612_v10, %s9197_s4 }
 0x201   :  { %5644 = vrot.lane.b32.xlu2 %v8413_v13, %s9197_s4 }
 0x204   :  { %v2621_v62 = vpop.f32.mrf.mxu2  ;;  %v2634_v12 = vpop.f32.mrf.mxu3  ;;  %5606 = vrot.lane.b32.xlu1 %v9533_v3, %s9197_s4 }
 0x205   :  { %v2622_v2 = vadd.f32 %v2621_v62, %v781_v38 }
 0x207   :  { %v2635_v22 = vadd.f32 %v2634_v12, %v2622_v2 }
 0x209   :  { %5626 = vrot.lane.b32.xlu2 %v9620_v34, %s9197_s4 }
 0x20c   :  { %v2623_v1 = vpop.f32.mrf.mxu2  ;;  %v2636_v7 = vpop.f32.mrf.mxu3  ;;  %5624 = vrot.lane.b32.xlu1 %v9626_v36, %s9197_s4 }
 0x211   :  { %v2595_v19 = vpop.f32.mrf.mxu0  ;;  %v2608_v63 = vpop.f32.mrf.mxu1  ;;  %5640 = vrot.lane.b32.xlu2 %v8411_v44, %s9197_s4 }
 0x212   :  { %v2596_v30 = vadd.f32 %v2595_v19, %v2583_v18 }
 0x214   :  { %v2609_v23 = vadd.f32 %v2608_v63, %v2596_v30  ;;  %5638 = vrot.lane.b32.xlu1 %v8410_v57, %s9197_s4 }
 0x216   :  { %v2694_v24 = vmax.f32 %v2609_v23, 0.0 }
 0x218   :  { %v2700_v29 = vpack.c.bf16 %v2694_v24, %v2694_v24 }
 0x219   :  { %v2597_v31 = vpop.f32.mrf.mxu0  ;;  %v2610_v32 = vpop.f32.mrf.mxu1 }
 0x21a   :  { %3051 = vmatmul.bf16.vlgmr.msra.gmra.mxu0 %v2700_v29 }
 0x224   :  { %v2673_v11 = vpop.f32.mrf.mxu2  ;;  %v2686_v5 = vpop.f32.mrf.mxu3 }
 0x22c   :  { %v2675_v15 = vpop.f32.mrf.mxu2  ;;  %v2688_v40 = vpop.f32.mrf.mxu3 }
 0x22f   :  { %v2647_v45 = vpop.f32.mrf.mxu0 }
 0x230   :  { %v2648_v47 = vadd.f32 %v2647_v45, %v2635_v22 }
 0x231   :  { %v2660_v28 = vpop.f32.mrf.mxu1 }
 0x232   :  { %v2661_v14 = vadd.f32 %v2660_v28, %v2648_v47  ;;  %v7198_v47 = vld [vmem:[#allocation6 + $0x38] sm:$0xf] }
 0x234   :  { %v2674_v9 = vadd.f32 %v2673_v11, %v2661_v14  ;;  %v8716_v14 = vld [vmem:[#allocation6 + $0x4c] sm:$0xf0] }
 0x236   :  { %v2687_v48 = vadd.f32 %v2686_v5, %v2674_v9  ;;  %v8713_v9 = vld [vmem:[#allocation6 + $0x3c] sm:$0xf] }
 0x237   :  { %v2649_v34 = vpop.f32.mrf.mxu0 }
 0x238   :  { %v2695_v50 = vmax.f32 %v2687_v48, 0.0  ;;  %v7203_v48 = vor.u32 %v8713_v9, %v7200_v35  ;;  %v7190_v34 = vld [vmem:[#allocation6 + $0x30] sm:$0xf]  ;;  %v8829_v9 = vld [vmem:[#allocation9 + $0xc74] sm:$0xf0] }
 0x239   :  { %v2662_v49 = vpop.f32.mrf.mxu1 }
 0x23a   :  { %v2701_v51 = vpack.c.bf16 %v2695_v50, %v2695_v50  ;;  %v8715_v49 = vld [vmem:[#allocation6 + $0x44] sm:$0xf0] }
 0x23c   :  { %3064 = vmatmul.bf16.vlgmr.msra.gmra.mxu1 %v2701_v51  ;;  %v8712_v51 = vld [vmem:[#allocation6 + $0x34] sm:$0xf] }
 0x244   :  { %v3026_v54 = vpop.f32.mrf.mxu2 }
 0x24c   :  { %v3028_v61 = vpop.f32.mrf.mxu2 }
 0x24d   :  { %v7208_v61 = vld [vmem:[#allocation6 + $0x58] sm:$0xf0] }
 0x24f   :  { %v3000_v10 = vpop.f32.mrf.mxu0  ;;  %v3013_v59 = vpop.f32.mrf.mxu1 }
 0x250   :  { %v3001_v26 = vadd.f32 %v3000_v10, %v2702_v55  ;;  %v7191_v10 = vor.u32 %v8715_v49, %v7190_v34  ;;  %v7340_v34 = vld [vmem:[#allocation9 + $0x9f0] sm:$0xf] }
 0x252   :  { %v3014_v39 = vadd.f32 %v3013_v59, %v3001_v26  ;;  %v8714_v26 = vld [vmem:[#allocation6 + $0x44] sm:$0xf] }
 0x254   :  { %v3027_v62 = vadd.f32 %v3026_v54, %v3014_v39  ;;  %v7192_v54 = vld [vmem:[#allocation6 + $0x48] sm:$0xf0] }
 0x255   :  { %v7195_v59 = vor.u32 %v8712_v51, %v7192_v54  ;;  %v7532_v51 = vld [vmem:[#allocation9 + $0xb70] sm:$0xf]  ;;  %v8799_v54 = vld [vmem:[#allocation9 + $0xb84] sm:$0xf0] }
 0x257   :  { %v3002_v12 = vpop.f32.mrf.mxu0  ;;  %v3015_v56 = vpop.f32.mrf.mxu1 }
 0x258   :  { %v8859_v12 = vld [vmem:[#allocation9 + $0xd64] sm:$0xf0]  ;;  %v7964_v56 = vld [vmem:[#allocation9 + $0xed0] sm:$0xf] }
 0x260   :  { %v3076_v24 = vpop.permute.xlu0 %3075 }
 0x261   :  { %v3039_v13 = vpop.f32.mrf.mxu3 }
 0x262   :  { %v3040_v3 = vadd.f32 %v3039_v13, %v3027_v62  ;;  %v7211_v62 = vor.u32 %v8714_v26, %v7208_v61  ;;  %v8871_v61 = vld [vmem:[#allocation9 + $0xdc4] sm:$0xf0] }
 0x269   :  { %v3041_v46 = vpop.f32.mrf.mxu3 }
 0x297   :  { %v3052_v1 = vpop.f32.mrf.mxu0 }
 0x298   :  { %v3053_v36 = vadd.f32 %v3052_v1, %v3040_v3  ;;  %v8907_v3 = vld [vmem:[#allocation9 + $0xee4] sm:$0xf0]  ;;  %v7748_v1 = vld [vmem:[#allocation9 + $0xd20] sm:$0xf] }
 0x299   :  { %v7965_v46 = vor.u32 %v8907_v3, %v7964_v56  ;;  %v7604_v3 = vld [vmem:[#allocation9 + $0xc00] sm:$0xf] }
 0x29f   :  { %v3054_v7 = vpop.f32.mrf.mxu0 }
 0x2a0   :  { %v8853_v7 = vld [vmem:[#allocation9 + $0xd34] sm:$0xf0] }
 0x2b9   :  { %v3065_v18 = vpop.f32.mrf.mxu1 }
 0x2ba   :  { %v9701_v19 = vadd.f32 %v3065_v18, %v3053_v36  ;;  %v7940_v36 = vld [vmem:[#allocation9 + $0xea0] sm:$0xf]  ;;  %v7749_v18 = vor.u32 %v8853_v7, %v7748_v1 }
 0x2bc   :  { %v3069_v63 = vmax.f32 %v9701_v19, -4.0  ;;  %5781 = vrot.lane.b32.xlu2 %v9701_v19, %s9199_s20 }
 0x2be   :  { %v3070_v30 = vmin.f32 %v3069_v63, 15.0  ;;  %v7724_v63 = vld [vmem:[#allocation9 + $0xcf0] sm:$0xf] }
 0x2c0   :  { %v3071_v44 = vmul.f32 1.442695, %v3070_v30  ;;  %v8847_v30 = vld [vmem:[#allocation9 + $0xd04] sm:$0xf0] }
 0x2c1   :  { %v3067_v23 = vpop.f32.mrf.mxu1 }
 0x2c2   :  { %9018 = vpow2.f32 %v3071_v44  ;;  %v7916_v23 = vld [vmem:[#allocation9 + $0xe70] sm:$0xf] }
 0x2c8   :  { %v9706_v57 = vpop.eup %9018 }
 0x2c9   :  { %v3078_v29 = vmul.f32 %v9706_v57, %v3076_v24  ;;  %v8895_v24 = vld [vmem:[#allocation9 + $0xe84] sm:$0xf0] }
 0x2cb   :  { %3080 = vrot.lane.b32.xlu0 %v3078_v29, %s9200_s21  ;;  %v7700_v29 = vld [vmem:[#allocation9 + $0xcc0] sm:$0xf] }
 0x2d3   :  { %5604 = vrot.lane.b32.xlu0 %v9378_v25, %s9197_s4  ;;  %v3093_v25 = vld [vmem:[#allocation7 + $0x18] sm:$0xff] }
 0x2d4   :  { %v3100_v31 = vunpack.c.h.b16 %v3093_v25 }
 0x2db   :  { %5620 = vrot.lane.b32.xlu0 %v9397_v6, %s9197_s4  ;;  %v3095_v6 = vld [vmem:[#allocation7 + $0x28] sm:$0xff] }
 0x2dc   :  { %v3104_v32 = vunpack.c.h.b16 %v3095_v6 }
 0x2de   :  { %v3110_v5 = vpack.c.b16 %v3104_v32, %v3104_v32  ;;  %v8763_v32 = vld [vmem:[#allocation9 + $0xa64] sm:$0xf0] }
 0x2e3   :  { %5582 = vrot.lane.b32.xlu0 %v9484_v52, %s9197_s4  ;;  %v3099_v52 = vunpack.c.l.b16 %v3093_v25  ;;  %v8841_v25 = vld [vmem:[#allocation9 + $0xcd4] sm:$0xf0] }
 0x2eb   :  { %5564 = vrot.lane.b32.xlu0 %v9503_v58, %s9197_s4  ;;  %v3103_v58 = vunpack.c.l.b16 %v3095_v6  ;;  %v7892_v6 = vld [vmem:[#allocation9 + $0xe40] sm:$0xf] }
 0x2ed   :  { %v3109_v11 = vpack.c.b16 %v3103_v58, %v3103_v58  ;;  %v7388_v58 = vld [vmem:[#allocation9 + $0xa50] sm:$0xf] }
 0x2ef   :  { %v3127_v38 = vsel %vm255_vm0, %v3109_v11, 0  ;;  %v7580_v11 = vld [vmem:[#allocation9 + $0xbd0] sm:$0xf] }
 0x2f0   :  { %3191 = vmatpush.bf16.msrb.mxu0 %v3127_v38  ;;  %v8835_v38 = vld [vmem:[#allocation9 + $0xca4] sm:$0xf0] }
 0x2f3   :  { %5636 = vrot.lane.b32.xlu0 %v9580_v33, %s9197_s4  ;;  %v3105_v33 = vpack.c.b16 %v3099_v52, %v3099_v52  ;;  %v7701_v52 = vor.u32 %v8841_v25, %v7700_v29  ;;  %v8739_v29 = vld [vmem:[#allocation9 + $0x9a4] sm:$0xf0]  ;;  %v7484_v25 = vld [vmem:[#allocation9 + $0xb10] sm:$0xf] }
 0x2fb   :  { %5562 = vrot.lane.b32.xlu0 %v9523_v0, %s9197_s4  ;;  %v3106_v0 = vpack.c.b16 %v3100_v31, %v3100_v31  ;;  %v8889_v31 = vld [vmem:[#allocation9 + $0xe54] sm:$0xf0] }
 0x303   :  { %5634 = vrot.lane.b32.xlu0 %v9586_v37, %s9197_s4  ;;  %v3115_v37 = vsel %vm255_vm0, %v3105_v33, 0  ;;  %v7893_v33 = vor.u32 %v8889_v31, %v7892_v6  ;;  %v8754_v31 = vld [vmem:[#allocation9 + $0xa24] sm:$0xf] }
 0x304   :  { %3139 = vmatpush.bf16.msra.mxu2 %v3115_v37  ;;  %v7676_v37 = vld [vmem:[#allocation9 + $0xc90] sm:$0xf] }
 0x30b   :  { %5560 = vrot.lane.b32.xlu0 %v9542_v4, %s9197_s4  ;;  %v3118_v4 = vsel %vm255_vm0, %v3106_v0, 0  ;;  %v7389_v0 = vor.u32 %v8763_v32, %v7388_v58  ;;  %v7366_v58 = vld [vmem:[#allocation9 + $0xa38] sm:$0xf0] }
 0x30c   :  { %3152 = vmatpush.bf16.msra.mxu3 %v3118_v4 }
 0x313   :  { %5632 = vrot.lane.b32.xlu0 %v9596_v43, %s9197_s4  ;;  %v3130_v43 = vsel %vm255_vm0, %v3110_v5, 0  ;;  %v8811_v5 = vld [vmem:[#allocation9 + $0xbe4] sm:$0xf0] }
 0x314   :  { %3204 = vmatpush.bf16.msrb.mxu1 %v3130_v43  ;;  %v7581_v4 = vor.u32 %v8811_v5, %v7580_v11  ;;  %v7868_v43 = vld [vmem:[#allocation9 + $0xe10] sm:$0xf]  ;;  %v7558_v11 = vld [vmem:[#allocation9 + $0xbb8] sm:$0xf0] }
 0x318   :  { %3286 = vmatpush.bf16.msra.mxu1 %v7203_v48  ;;  %v7844_v48 = vld [vmem:[#allocation9 + $0xde0] sm:$0xf] }
 0x31b   :  { %5558 = vrot.lane.b32.xlu0 %v9556_v8, %s9197_s4  ;;  %v3094_v8 = vld [vmem:[#allocation7 + $0x20] sm:$0xff] }
 0x31c   :  { %v3101_v2 = vunpack.c.l.b16 %v3094_v8  ;;  %v3102_v15 = vunpack.c.h.b16 %v3094_v8  ;;  %v8883_v8 = vld [vmem:[#allocation9 + $0xe24] sm:$0xf0] }
 0x31e   :  { %v3107_v40 = vpack.c.b16 %v3101_v2, %v3101_v2  ;;  %v3108_v22 = vpack.c.b16 %v3102_v15, %v3102_v15  ;;  %v7677_v2 = vor.u32 %v8835_v38, %v7676_v37  ;;  %v7869_v15 = vor.u32 %v8883_v8, %v7868_v43  ;;  %v7268_v37 = vld [vmem:[#allocation9 + $0x960] sm:$0xf]  ;;  %v8781_v8 = vld [vmem:[#allocation9 + $0xaf4] sm:$0xf0] }
 0x31f   :  { %v7460_v38 = vld [vmem:[#allocation9 + $0xae0] sm:$0xf] }
 0x320   :  { %v3121_v45 = vsel %vm255_vm0, %v3107_v40, 0  ;;  %v3124_v28 = vsel %vm255_vm0, %v3108_v22, 0  ;;  %v7364_v40 = vld [vmem:[#allocation9 + $0xa20] sm:$0xf]  ;;  %v8757_v22 = vld [vmem:[#allocation9 + $0xa34] sm:$0xf0] }
 0x321   :  { %3165 = vmatpush.bf16.msrb.mxu2 %v3121_v45  ;;  %3178 = vmatpush.bf16.msrb.mxu3 %v3124_v28  ;;  %v7556_v45 = vld [vmem:[#allocation9 + $0xba0] sm:$0xf]  ;;  %v7365_v28 = vor.u32 %v8757_v22, %v7364_v40  ;;  %v7461_v40 = vor.u32 %v8781_v8, %v7460_v38  ;;  %v7438_v38 = vld [vmem:[#allocation9 + $0xac8] sm:$0xf0] }
 0x323   :  { %5630 = vrot.lane.b32.xlu0 %v9606_v16, %s9197_s4  ;;  %v7199_v16 = vor.u32 %v8716_v14, %v7198_v47  ;;  %v8805_v47 = vld [vmem:[#allocation9 + $0xbb4] sm:$0xf0]  ;;  %v7652_v14 = vld [vmem:[#allocation9 + $0xc60] sm:$0xf] }
 0x324   :  { %v7653_v35 = vor.u32 %v8829_v9, %v7652_v14  ;;  %v8727_v9 = vld [vmem:[#allocation9 + $0x944] sm:$0xf0] }
 0x325   :  { %3273 = vmatpush.bf16.msra.mxu0 %v7199_v16  ;;  %v7557_v16 = vor.u32 %v8805_v47, %v7556_v45  ;;  %v8796_v45 = vld [vmem:[#allocation9 + $0xb74] sm:$0xf]  ;;  %v7244_v47 = vld [vmem:[#allocation9 + $0x930] sm:$0xf] }
 0x32b   :  { %5608 = vrot.lane.b32.xlu0 %v9513_v60, %s9197_s4 }
 0x333   :  { %5590 = vrot.lane.b32.xlu0 %v9495_v53, %s9197_s4  ;;  %v7206_v53 = vld [vmem:[#allocation6 + $0x40] sm:$0xf] }
 0x33b   :  { %5642 = vrot.lane.b32.xlu0 %v9665_v20, %s9197_s4  ;;  %v8717_v20 = vld [vmem:[#allocation6 + $0x54] sm:$0xf0] }
 0x33c   :  { %v7207_v39 = vor.u32 %v8717_v20, %v7206_v53  ;;  %v8823_v53 = vld [vmem:[#allocation9 + $0xc44] sm:$0xf0]  ;;  %v7820_v20 = vld [vmem:[#allocation9 + $0xdb0] sm:$0xf] }
 0x33d   :  { %v3081_v60 = vpop.permute.xlu0 %3080 }
 0x33e   :  { %v3083_v50 = vadd.f32 %v3081_v60, %v9701_v19  ;;  %v8901_v19 = vld [vmem:[#allocation9 + $0xeb4] sm:$0xf0] }
 0x33f   :  { %v7941_v44 = vor.u32 %v8901_v19, %v7940_v36  ;;  %v8877_v60 = vld [vmem:[#allocation9 + $0xdf4] sm:$0xf0]  ;;  %v7796_v36 = vld [vmem:[#allocation9 + $0xd80] sm:$0xf]  ;;  %v8760_v19 = vld [vmem:[#allocation9 + $0xa54] sm:$0xf] }
 0x340   :  { %v3084_v55 = vpack.c.bf16 %v3083_v50, %v3083_v50  ;;  %v7845_v49 = vor.u32 %v8877_v60, %v7844_v48  ;;  %v8751_v50 = vld [vmem:[#allocation9 + $0xa04] sm:$0xf0]  ;;  %v7245_v48 = vor.u32 %v8727_v9, %v7244_v47  ;;  %v7222_v47 = vld [vmem:[#allocation9 + $0x918] sm:$0xf0] }
 0x342   :  { %7182 = vmatmul.msk.bf16.vlgmr.msra.gmra.mxu2 %vm252_vm2, %v3084_v55  ;;  %7183 = vmatmul.msk.bf16.vlgmr.msra.gmra.mxu3 %vm252_vm2, %v3084_v55 }
 0x343   :  { %7186 = vmatmul.msk.bf16.vlgmr.msrb.gmra.mxu0 %vm252_vm2, %v3084_v55  ;;  %7187 = vmatmul.msk.bf16.vlgmr.msrb.gmra.mxu1 %vm252_vm2, %v3084_v55 }
 0x344   :  { %5622 = vrot.lane.b32.xlu0 %v9634_v27, %s9197_s4  ;;  %3247 = vmatpush.bf16.msra.mxu2 %v7191_v10  ;;  %v7772_v27 = vld [vmem:[#allocation9 + $0xd50] sm:$0xf]  ;;  %v7533_v10 = vor.u32 %v8799_v54, %v7532_v51  ;;  %v7510_v54 = vld [vmem:[#allocation9 + $0xb58] sm:$0xf0] }
 0x345   :  { %3260 = vmatpush.bf16.msra.mxu3 %v7195_v59  ;;  %v7773_v13 = vor.u32 %v8859_v12, %v7772_v27  ;;  %5077 = vmatpush.bf16.msrb.mxu0 %v7389_v0  ;;  %v7628_v59 = vld [vmem:[#allocation9 + $0xc30] sm:$0xf]  ;;  %v8745_v27 = vld [vmem:[#allocation9 + $0x9d4] sm:$0xf0]  ;;  %v7508_v12 = vld [vmem:[#allocation9 + $0xb40] sm:$0xf] }
 0x346   :  { %5090 = vmatpush.bf16.msrb.mxu1 %v7581_v4  ;;  %v7629_v26 = vor.u32 %v8823_v53, %v7628_v59  ;;  %v8802_v0 = vld [vmem:[#allocation9 + $0xba4] sm:$0xf]  ;;  %v8733_v4 = vld [vmem:[#allocation9 + $0x974] sm:$0xf0]  ;;  %v7412_v53 = vld [vmem:[#allocation9 + $0xa80] sm:$0xf] }
 0x347   :  { %v7561_v5 = vor.u32 %v8802_v0, %v7558_v11  ;;  %v7269_v43 = vor.u32 %v8733_v4, %v7268_v37  ;;  %v8721_v59 = vld [vmem:[#allocation9 + $0x914] sm:$0xf0]  ;;  %v8991_v0 = vld [vmem:[#allocation9 + $0x1184] sm:$0xf0]  ;;  %v8724_v11 = vld [vmem:[#allocation9 + $0x934] sm:$0xf] }
 0x348   :  { %v7246_v37 = vld [vmem:[#allocation9 + $0x948] sm:$0xf0]  ;;  %v8772_v4 = vld [vmem:[#allocation9 + $0xab4] sm:$0xf] }
 0x349   :  { %5078 = vmatpush.bf16.msrb.mxu0 %v7365_v28  ;;  %v7534_v28 = vld [vmem:[#allocation9 + $0xb88] sm:$0xf0]  ;;  %v7441_v8 = vor.u32 %v8772_v4, %v7438_v38  ;;  %v9000_v4 = vld [vmem:[#allocation9 + $0x11d4] sm:$0xf] }
 0x34a   :  { %5091 = vmatpush.bf16.msrb.mxu1 %v7557_v16  ;;  %v7537_v14 = vor.u32 %v8796_v45, %v7534_v28  ;;  %v7436_v16 = vld [vmem:[#allocation9 + $0xab0] sm:$0xf]  ;;  %v8985_v45 = vld [vmem:[#allocation9 + $0x1154] sm:$0xf0]  ;;  %v8718_v28 = vld [vmem:[#allocation9 + $0x904] sm:$0xf] }
 0x34b   :  { %v7225_v9 = vor.u32 %v8718_v28, %v7222_v47  ;;  %v8350_v38 = vld [vmem:[#allocation9 + $0x11e8] sm:$0xf0]  ;;  %v8134_v47 = vld [vmem:[#allocation9 + $0x1038] sm:$0xf0] }
 0x34c   :  { %5785 = vrot.lane.b32.xlu0 %v9706_v57, %s9199_s20  ;;  %v7917_v57 = vor.u32 %v8895_v24, %v7916_v23  ;;  %v7582_v23 = vld [vmem:[#allocation9 + $0xbe8] sm:$0xf0] }
 0x34e   :  { %5092 = vmatpush.bf16.msrb.mxu1 %v7533_v10  ;;  %v7220_v10 = vld [vmem:[#allocation9 + $0x900] sm:$0xf] }
 0x352   :  { %7184 = vmatmul.msk.bf16.vlgmr.msrb.gmra.mxu2 %vm252_vm2, %v3084_v55  ;;  %7185 = vmatmul.msk.bf16.vlgmr.msrb.gmra.mxu3 %vm252_vm2, %v3084_v55  ;;  %v7341_v55 = vor.u32 %v8751_v50, %v7340_v34  ;;  %v8742_v34 = vld [vmem:[#allocation9 + $0x9c4] sm:$0xf] }
 0x353   :  { %7214 = vmatmul.msk.bf16.vlgmr.msra.gmra.mxu0 %vm382_vm3, %v9278_v41  ;;  %7215 = vmatmul.msk.bf16.vlgmr.msra.gmra.mxu1 %vm382_vm3, %v9278_v41  ;;  %v8790_v50 = vld [vmem:[#allocation9 + $0xb44] sm:$0xf] }
 0x354   :  { %3299 = vmatpush.bf16.msrb.mxu2 %v7207_v39  ;;  %3312 = vmatpush.bf16.msrb.mxu3 %v7211_v62  ;;  %v7821_v39 = vor.u32 %v8871_v61, %v7820_v20  ;;  %v7316_v62 = vld [vmem:[#allocation9 + $0x9c0] sm:$0xf]  ;;  %v7221_v20 = vor.u32 %v8721_v59, %v7220_v10  ;;  %v8156_v61 = vld [vmem:[#allocation9 + $0x1050] sm:$0xf] }
 0x355   :  { %5079 = vmatpush.bf16.msrb.mxu0 %v7341_v55  ;;  %v7317_v56 = vor.u32 %v8745_v27, %v7316_v62  ;;  %v7513_v55 = vor.u32 %v8790_v50, %v7510_v54  ;;  %v8036_v59 = vld [vmem:[#allocation9 + $0xf60] sm:$0xf] }
 0x359   :  { %5080 = vmatpush.bf16.msrb.mxu0 %v7317_v56  ;;  %v9003_v56 = vld [vmem:[#allocation9 + $0x11e4] sm:$0xf0] }
 0x362   :  { %7212 = vmatmul.msk.bf16.vlgmr.msra.gmra.mxu2 %vm382_vm3, %v9278_v41  ;;  %7213 = vmatmul.msk.bf16.vlgmr.msra.gmra.mxu3 %vm382_vm3, %v9278_v41 }
 0x363   :  { %5103 = vmatpush.bf16.msra.mxu2 %v7773_v13  ;;  %5116 = vmatpush.bf16.msra.mxu3 %v7965_v46  ;;  %v8793_v13 = vld [vmem:[#allocation9 + $0xb54] sm:$0xf0] }
 0x364   :  { %v8817_v46 = vld [vmem:[#allocation9 + $0xc14] sm:$0xf0]  ;;  %v7509_v1 = vor.u32 %v8793_v13, %v7508_v12  ;;  %v8348_v12 = vld [vmem:[#allocation9 + $0x11d0] sm:$0xf]  ;;  %v8736_v13 = vld [vmem:[#allocation9 + $0x994] sm:$0xf] }
 0x365   :  { %v7605_v7 = vor.u32 %v8817_v46, %v7604_v3  ;;  %v8349_v3 = vor.u32 %v9003_v56, %v8348_v12  ;;  %v7294_v46 = vld [vmem:[#allocation9 + $0x9a8] sm:$0xf0]  ;;  %v8012_v12 = vld [vmem:[#allocation9 + $0xf30] sm:$0xf]  ;;  %v8919_v56 = vld [vmem:[#allocation9 + $0xf44] sm:$0xf0] }
 0x366   :  { %5093 = vmatpush.bf16.msrb.mxu1 %v7509_v1  ;;  %v8784_v1 = vld [vmem:[#allocation9 + $0xb14] sm:$0xf] }
 0x367   :  { %5104 = vmatpush.bf16.msra.mxu2 %v7749_v18  ;;  %5117 = vmatpush.bf16.msra.mxu3 %v7941_v44  ;;  %v8865_v18 = vld [vmem:[#allocation9 + $0xd94] sm:$0xf0]  ;;  %v8808_v44 = vld [vmem:[#allocation9 + $0xbd4] sm:$0xf] }
 0x36b   :  { %5118 = vmatpush.bf16.msra.mxu3 %v7917_v57  ;;  %v7292_v57 = vld [vmem:[#allocation9 + $0x990] sm:$0xf] }
 0x36c   :  { %v7293_v6 = vor.u32 %v8739_v29, %v7292_v57 }
 0x36e   :  { %5081 = vmatpush.bf16.msrb.mxu0 %v7293_v6  ;;  %v7462_v6 = vld [vmem:[#allocation9 + $0xaf8] sm:$0xf0] }
 0x36f   :  { %5119 = vmatpush.bf16.msra.mxu3 %v7893_v33  ;;  %v7369_v33 = vor.u32 %v8754_v31, %v7366_v58  ;;  %v8108_v31 = vld [vmem:[#allocation9 + $0xff0] sm:$0xf]  ;;  %v8943_v58 = vld [vmem:[#allocation9 + $0x1004] sm:$0xf0] }
 0x372   :  { %7216 = vmatmul.msk.bf16.vlgmr.msrb.gmra.mxu2 %vm382_vm3, %v9278_v41  ;;  %7217 = vmatmul.msk.bf16.vlgmr.msrb.gmra.mxu3 %vm382_vm3, %v9278_v41  ;;  %v7725_v41 = vor.u32 %v8847_v30, %v7724_v63  ;;  %v7797_v63 = vor.u32 %v8865_v18, %v7796_v36  ;;  %v7390_v30 = vld [vmem:[#allocation9 + $0xa68] sm:$0xf0]  ;;  %v7297_v36 = vor.u32 %v8736_v13, %v7294_v46 }
 0x373   :  { %5120 = vmatpush.bf16.msra.mxu3 %v7869_v15  ;;  %v7393_v24 = vor.u32 %v8760_v19, %v7390_v30  ;;  %v7342_v15 = vld [vmem:[#allocation9 + $0xa08] sm:$0xf0]  ;;  %5082 = vmatpush.bf16.msrb.mxu0 %v7269_v43  ;;  %v8132_v19 = vld [vmem:[#allocation9 + $0x1020] sm:$0xf]  ;;  %v7249_v43 = vor.u32 %v8724_v11, %v7246_v37  ;;  %v8013_v46 = vor.u32 %v8919_v56, %v8012_v12  ;;  %v8982_v12 = vld [vmem:[#allocation9 + $0x1144] sm:$0xf] }
 0x374   :  { %5105 = vmatpush.bf16.msra.mxu2 %v7725_v41  ;;  %v7585_v41 = vor.u32 %v8808_v44, %v7582_v23  ;;  %v8324_v30 = vld [vmem:[#allocation9 + $0x11a0] sm:$0xf]  ;;  %v8997_v23 = vld [vmem:[#allocation9 + $0x11b4] sm:$0xf0]  ;;  %v8158_v37 = vld [vmem:[#allocation9 + $0x1068] sm:$0xf0] }
 0x375   :  { %v8325_v57 = vor.u32 %v8997_v23, %v8324_v30  ;;  %v8278_v56 = vld [vmem:[#allocation9 + $0x1158] sm:$0xf0] }
 0x377   :  { %5121 = vmatpush.bf16.msra.mxu3 %v7845_v49  ;;  %v7318_v49 = vld [vmem:[#allocation9 + $0x9d8] sm:$0xf0]  ;;  %5083 = vmatpush.bf16.msrb.mxu0 %v7245_v48 }
 0x378   :  { %5106 = vmatpush.bf16.msra.mxu2 %v7701_v52  ;;  %v8787_v52 = vld [vmem:[#allocation9 + $0xb24] sm:$0xf0]  ;;  %v7321_v51 = vor.u32 %v8742_v34, %v7318_v49  ;;  %v8252_v49 = vld [vmem:[#allocation9 + $0x1110] sm:$0xf] }
 0x379   :  { %v7485_v32 = vor.u32 %v8787_v52, %v7484_v25  ;;  %v8778_v25 = vld [vmem:[#allocation9 + $0xae4] sm:$0xf]  ;;  %v8931_v34 = vld [vmem:[#allocation9 + $0xfa4] sm:$0xf0] }
 0x37a   :  { %v7465_v52 = vor.u32 %v8778_v25, %v7462_v6  ;;  %v9027_v25 = vld [vmem:[#allocation10 + $0x10] sm:$0xff] }
 0x37b   :  { %5122 = vmatpush.bf16.msra.mxu3 %v7821_v39  ;;  %5094 = vmatpush.bf16.msrb.mxu1 %v7485_v32  ;;  %v8955_v39 = vld [vmem:[#allocation9 + $0x1064] sm:$0xf0]  ;;  %v8109_v32 = vor.u32 %v8943_v58, %v8108_v31  ;;  %v3320_v6 = vperm.slane %v9027_v25, 2  ;;  %v8254_v25 = vld [vmem:[#allocation9 + $0x1128] sm:$0xf0] }
 0x37c   :  { %5107 = vmatpush.bf16.msra.mxu2 %v7677_v2  ;;  %v8748_v2 = vld [vmem:[#allocation9 + $0x9f4] sm:$0xf]  ;;  %v8157_v27 = vor.u32 %v8955_v39, %v8156_v61  ;;  %5084 = vmatpush.bf16.msrb.mxu0 %v7221_v20  ;;  %v8228_v20 = vld [vmem:[#allocation9 + $0x10e0] sm:$0xf]  ;;  %v8973_v61 = vld [vmem:[#allocation9 + $0x10f4] sm:$0xf0] }
 0x37d   :  { %v7345_v22 = vor.u32 %v8748_v2, %v7342_v15  ;;  %v8084_v2 = vld [vmem:[#allocation9 + $0xfc0] sm:$0xf]  ;;  %v8937_v15 = vld [vmem:[#allocation9 + $0xfd4] sm:$0xf0] }
 0x37f   :  { %5123 = vmatpush.bf16.msra.mxu3 %v7797_v63  ;;  %5095 = vmatpush.bf16.msrb.mxu1 %v7461_v40  ;;  %v8949_v63 = vld [vmem:[#allocation9 + $0x1034] sm:$0xf0]  ;;  %v8276_v40 = vld [vmem:[#allocation9 + $0x1140] sm:$0xf] }
 0x380   :  { %5108 = vmatpush.bf16.msra.mxu2 %v7653_v35  ;;  %v8775_v35 = vld [vmem:[#allocation9 + $0xac4] sm:$0xf0]  ;;  %5129 = vmatpush.bf16.msra.mxu0 %v8157_v27  ;;  %v8133_v44 = vor.u32 %v8949_v63, %v8132_v19  ;;  %v8229_v27 = vor.u32 %v8973_v61, %v8228_v20  ;;  %v8913_v19 = vld [vmem:[#allocation9 + $0xf14] sm:$0xf0]  ;;  %v8180_v63 = vld [vmem:[#allocation9 + $0x1080] sm:$0xf] }
 0x381   :  { %v7437_v60 = vor.u32 %v8775_v35, %v7436_v16  ;;  %v8766_v16 = vld [vmem:[#allocation9 + $0xa84] sm:$0xf]  ;;  %v7414_v35 = vld [vmem:[#allocation9 + $0xa98] sm:$0xf0] }
 0x382   :  { %v7417_v48 = vor.u32 %v8766_v16, %v7414_v35  ;;  %v8934_v61 = vld [vmem:[#allocation9 + $0xfc4] sm:$0xf] }
 0x383   :  { %5168 = vmatpush.bf16.msrb.mxu3 %v7585_v41  ;;  %5096 = vmatpush.bf16.msrb.mxu1 %v7437_v60  ;;  %v7270_v41 = vld [vmem:[#allocation9 + $0x978] sm:$0xf0]  ;;  %v8060_v60 = vld [vmem:[#allocation9 + $0xf90] sm:$0xf] }
 0x384   :  { %5109 = vmatpush.bf16.msra.mxu2 %v7629_v26  ;;  %v8769_v26 = vld [vmem:[#allocation9 + $0xa94] sm:$0xf0]  ;;  %5130 = vmatpush.bf16.msra.mxu0 %v8133_v44  ;;  %v8061_v54 = vor.u32 %v8931_v34, %v8060_v60  ;;  %v8940_v34 = vld [vmem:[#allocation9 + $0xff4] sm:$0xf] }
 0x385   :  { %v7413_v62 = vor.u32 %v8769_v26, %v7412_v53  ;;  %v8925_v53 = vld [vmem:[#allocation9 + $0xf74] sm:$0xf0] }
 0x386   :  { %v8037_v26 = vor.u32 %v8925_v53, %v8036_v59  ;;  %v8961_v44 = vld [vmem:[#allocation9 + $0x1094] sm:$0xf0]  ;;  %v9028_v59 = vld [vmem:[#allocation10 + $0x8] sm:$0xff] }
 0x387   :  { %5169 = vmatpush.bf16.msrb.mxu3 %v7561_v5  ;;  %5097 = vmatpush.bf16.msrb.mxu1 %v7413_v62  ;;  %v3319_v53 = vperm.slane %v9028_v59, 2  ;;  %v8838_v59 = vld [vmem:[#allocation9 + $0xcc4] sm:$0xf] }
 0x388   :  { %5110 = vmatpush.bf16.msra.mxu2 %v7605_v7  ;;  %v7486_v7 = vld [vmem:[#allocation9 + $0xb28] sm:$0xf0]  ;;  %5131 = vmatpush.bf16.msra.mxu0 %v8109_v32 }
 0x389   :  { %v7489_v18 = vor.u32 %v8784_v1, %v7486_v7  ;;  %v8204_v1 = vld [vmem:[#allocation9 + $0x10b0] sm:$0xf]  ;;  %v8967_v7 = vld [vmem:[#allocation9 + $0x10c4] sm:$0xf0] }
 0x38b   :  { %5170 = vmatpush.bf16.msrb.mxu3 %v7537_v14  ;;  %5142 = vmatpush.bf16.msra.mxu1 %v8349_v3  ;;  %v8277_v14 = vor.u32 %v8985_v45, %v8276_v40  ;;  %v8946_v45 = vld [vmem:[#allocation9 + $0x1024] sm:$0xf] }
 0x38c   :  { %5155 = vmatpush.bf16.msrb.mxu2 %v7393_v24  ;;  %v8730_v24 = vld [vmem:[#allocation9 + $0x964] sm:$0xf] }
 0x38d   :  { %v7273_v29 = vor.u32 %v8730_v24, %v7270_v41  ;;  %v8181_v41 = vor.u32 %v8961_v44, %v8180_v63  ;;  %v7774_v63 = vld [vmem:[#allocation9 + $0xd68] sm:$0xf0] }
 0x38e   :  { %v7966_v44 = vld [vmem:[#allocation9 + $0xee8] sm:$0xf0] }
 0x38f   :  { %5171 = vmatpush.bf16.msrb.mxu3 %v7513_v55  ;;  %5143 = vmatpush.bf16.msra.mxu1 %v8325_v57  ;;  %v8979_v55 = vld [vmem:[#allocation9 + $0x1124] sm:$0xf0] }
 0x390   :  { %5156 = vmatpush.bf16.msrb.mxu2 %v7369_v33  ;;  %v8300_v33 = vld [vmem:[#allocation9 + $0x1170] sm:$0xf]  ;;  %v8253_v10 = vor.u32 %v8979_v55, %v8252_v49  ;;  %v8110_v49 = vld [vmem:[#allocation9 + $0x1008] sm:$0xf0] }
 0x391   :  { %v8301_v5 = vor.u32 %v8991_v0, %v8300_v33  ;;  %v8952_v0 = vld [vmem:[#allocation9 + $0x1054] sm:$0xf]  ;;  %v8302_v55 = vld [vmem:[#allocation9 + $0x1188] sm:$0xf0]  ;;  %v8113_v20 = vor.u32 %v8940_v34, %v8110_v49  ;;  %v9029_v34 = vld [vmem:[#allocation10 + $0x20] sm:$0xff] }
 0x392   :  { %v8161_v40 = vor.u32 %v8952_v0, %v8158_v37  ;;  %v7942_v37 = vld [vmem:[#allocation9 + $0xeb8] sm:$0xf0]  ;;  %v3322_v49 = vperm.slane %v9029_v34, 2  ;;  %v7630_v34 = vld [vmem:[#allocation9 + $0xc48] sm:$0xf0] }
 0x393   :  { %5172 = vmatpush.bf16.msrb.mxu3 %v7489_v18  ;;  %5144 = vmatpush.bf16.msra.mxu1 %v8301_v5  ;;  %v7988_v18 = vld [vmem:[#allocation9 + $0xf00] sm:$0xf] }
 0x394   :  { %5157 = vmatpush.bf16.msrb.mxu2 %v7345_v22  ;;  %v8085_v22 = vor.u32 %v8937_v15, %v8084_v2  ;;  %v7989_v30 = vor.u32 %v8913_v19, %v7988_v18  ;;  %v8856_v19 = vld [vmem:[#allocation9 + $0xd54] sm:$0xf] }
 0x396   :  { %5132 = vmatpush.bf16.msra.mxu0 %v8085_v22  ;;  %v8353_v22 = vor.u32 %v9000_v4, %v8350_v38  ;;  %v8922_v4 = vld [vmem:[#allocation9 + $0xf64] sm:$0xf]  ;;  %v8038_v38 = vld [vmem:[#allocation9 + $0xf78] sm:$0xf0] }
 0x397   :  { %5173 = vmatpush.bf16.msrb.mxu3 %v7465_v52  ;;  %5145 = vmatpush.bf16.msra.mxu1 %v8277_v14  ;;  %v3321_v52 = vperm.slane %v9566_v17, 2  ;;  %v8994_v14 = vld [vmem:[#allocation9 + $0x11a4] sm:$0xf] }
 0x398   :  { %5158 = vmatpush.bf16.msrb.mxu2 %v7321_v51 }
 0x39a   :  { %5133 = vmatpush.bf16.msra.mxu0 %v8061_v54  ;;  %v8988_v54 = vld [vmem:[#allocation9 + $0x1174] sm:$0xf] }
 0x39b   :  { %5174 = vmatpush.bf16.msrb.mxu3 %v7441_v8  ;;  %5146 = vmatpush.bf16.msra.mxu1 %v8253_v10  ;;  %v3318_v10 = vperm.slane %v9697_v42, 2 }
 0x39c   :  { %5159 = vmatpush.bf16.msrb.mxu2 %v7297_v36  ;;  %v8205_v36 = vor.u32 %v8967_v7, %v8204_v1 }
 0x39e   :  { %5134 = vmatpush.bf16.msra.mxu0 %v8037_v26  ;;  %v8305_v26 = vor.u32 %v8988_v54, %v8302_v55  ;;  %v3323_v54 = vperm.slane %v9684_v21, 2 }
 0x39f   :  { %5175 = vmatpush.bf16.msrb.mxu3 %v7417_v48  ;;  %5147 = vmatpush.bf16.msra.mxu1 %v8229_v27  ;;  %v8137_v48 = vor.u32 %v8946_v45, %v8134_v47  ;;  %v8086_v27 = vld [vmem:[#allocation9 + $0xfd8] sm:$0xf0]  ;;  %v8041_v45 = vor.u32 %v8922_v4, %v8038_v38  ;;  %v8826_v38 = vld [vmem:[#allocation9 + $0xc64] sm:$0xf] }
 0x3a0   :  { %5160 = vmatpush.bf16.msrb.mxu2 %v7273_v29  ;;  %v8089_v7 = vor.u32 %v8934_v61, %v8086_v27 }
 0x3a2   :  { %5135 = vmatpush.bf16.msra.mxu0 %v8013_v46 }
 0x3a3   :  { %5148 = vmatpush.bf16.msra.mxu1 %v8205_v36  ;;  %v8281_v36 = vor.u32 %v8982_v12, %v8278_v56  ;;  %v7894_v56 = vld [vmem:[#allocation9 + $0xe58] sm:$0xf0] }
 0x3a4   :  { %5161 = vmatpush.bf16.msrb.mxu2 %v7249_v43 }
 0x3a6   :  { %5136 = vmatpush.bf16.msra.mxu0 %v7989_v30  ;;  %v8904_v30 = vld [vmem:[#allocation9 + $0xed4] sm:$0xf] }
 0x3a7   :  { %5149 = vmatpush.bf16.msra.mxu1 %v8181_v41 }
 0x3a8   :  { %5162 = vmatpush.bf16.msrb.mxu2 %v7225_v9  ;;  %v8326_v9 = vld [vmem:[#allocation9 + $0x11b8] sm:$0xf0] }
 0x3a9   :  { %v8329_v60 = vor.u32 %v8994_v14, %v8326_v9  ;;  %v8892_v14 = vld [vmem:[#allocation9 + $0xe74] sm:$0xf]  ;;  %v7918_v9 = vld [vmem:[#allocation9 + $0xe88] sm:$0xf0] }
 0x3c0   :  { %v9766_v50 = vpop.f32.mrf.mxu0  ;;  %v9768_v51 = vpop.f32.mrf.mxu1 }
 0x3c5   :  { %v9770_v39 = vpop.f32.mrf.mxu2  ;;  %v9772_v62 = vpop.f32.mrf.mxu3 }
 0x3c8   :  { %v3195_v13 = vpop.f32.mrf.mxu0  ;;  %v3208_v3 = vpop.f32.mrf.mxu1 }
 0x3cd   :  { %v3143_v23 = vpop.f32.mrf.mxu2  ;;  %v3156_v24 = vpop.f32.mrf.mxu3 }
 0x3ce   :  { %v8928_v23 = vld [vmem:[#allocation9 + $0xf94] sm:$0xf]  ;;  %v8062_v24 = vld [vmem:[#allocation9 + $0xfa8] sm:$0xf0] }
 0x3cf   :  { %v8065_v0 = vor.u32 %v8928_v23, %v8062_v24  ;;  %v8832_v24 = vld [vmem:[#allocation9 + $0xc94] sm:$0xf] }
 0x3d0   :  { %v3275_v57 = vpop.f32.mrf.mxu0  ;;  %v3288_v29 = vpop.f32.mrf.mxu1 }
 0x3d5   :  { %v3167_v31 = vpop.f32.mrf.mxu2  ;;  %v3180_v58 = vpop.f32.mrf.mxu3 }
 0x3d6   :  { %v3276_v32 = vadd.f32 %v3275_v57, %v3167_v31  ;;  %v3289_v33 = vadd.f32 %v3288_v29, %v3180_v58  ;;  %v8976_v29 = vld [vmem:[#allocation9 + $0x1114] sm:$0xf]  ;;  %v8850_v31 = vld [vmem:[#allocation9 + $0xd24] sm:$0xf]  ;;  %v7750_v58 = vld [vmem:[#allocation9 + $0xd38] sm:$0xf0] }
 0x3d8   :  { %v3326_v11 = vadd.f32 %v3320_v6, %v3276_v32  ;;  %v3327_v5 = vadd.f32 %v3321_v52, %v3289_v33  ;;  %v3277_v43 = vpop.f32.mrf.mxu0  ;;  %v3290_v8 = vpop.f32.mrf.mxu1  ;;  %v7777_v6 = vor.u32 %v8856_v19, %v7774_v63  ;;  %v7969_v52 = vor.u32 %v8904_v30, %v7966_v44  ;;  %v7972_v19 = vld [vmem:[#allocation9 + $0xed8] sm:$0xf]  ;;  %v8908_v63 = vld [vmem:[#allocation9 + $0xeec] sm:$0xf0] }
 0x3d9   :  { %v8970_v43 = vld [vmem:[#allocation9 + $0x10e4] sm:$0xf]  ;;  %v8230_v8 = vld [vmem:[#allocation9 + $0x10f8] sm:$0xf0] }
 0x3da   :  { %v3332_v2 = vmax.f32 %v3326_v11, 0.0  ;;  %v3333_v15 = vmax.f32 %v3327_v5, 0.0  ;;  %v8257_v11 = vor.u32 %v8976_v29, %v8254_v25  ;;  %v8898_v5 = vld [vmem:[#allocation9 + $0xea4] sm:$0xf]  ;;  %v8233_v47 = vor.u32 %v8970_v43, %v8230_v8  ;;  %v8880_v29 = vld [vmem:[#allocation9 + $0xe14] sm:$0xf] }
 0x3db   :  { %v7654_v8 = vld [vmem:[#allocation9 + $0xc78] sm:$0xf0] }
 0x3dc   :  { %v9775_v28 = vpack.c.bf16 %v3332_v2, %v3332_v2  ;;  %v9777_v17 = vpack.c.bf16 %v3333_v15, %v3333_v15  ;;  %v7753_v2 = vor.u32 %v8850_v31, %v7750_v58  ;;  %v7945_v15 = vor.u32 %v8898_v5, %v7942_v37  ;;  %v7756_v58 = vld [vmem:[#allocation9 + $0xd28] sm:$0xf] }
 0x3dd   :  { %v3169_v16 = vpop.f32.mrf.mxu2  ;;  %v3182_v35 = vpop.f32.mrf.mxu3  ;;  %v7973_v31 = vor.u32 %v8908_v63, %v7972_v19  ;;  %v8836_v19 = vld [vmem:[#allocation9 + $0xcac] sm:$0xf0]  ;;  %v7876_v63 = vld [vmem:[#allocation9 + $0xe18] sm:$0xf] }
 0x3de   :  { %5111 = vmatmul.bf16.vlgmr.msra.gmra.mxu2 %v9775_v28  ;;  %5124 = vmatmul.bf16.vlgmr.msra.gmra.mxu3 %v9777_v17  ;;  %v8916_v16 = vld [vmem:[#allocation9 + $0xf34] sm:$0xf]  ;;  %v8014_v35 = vld [vmem:[#allocation9 + $0xf48] sm:$0xf0] }
 0x3df   :  { %5207 = vmatpush.bf16.msra.mxu2 %v8161_v40  ;;  %5220 = vmatpush.bf16.msra.mxu3 %v8353_v22  ;;  %v8844_v40 = vld [vmem:[#allocation9 + $0xcf4] sm:$0xf]  ;;  %v7726_v22 = vld [vmem:[#allocation9 + $0xd08] sm:$0xf0]  ;;  %v8017_v27 = vor.u32 %v8916_v16, %v8014_v35  ;;  %v8896_v16 = vld [vmem:[#allocation9 + $0xe8c] sm:$0xf0]  ;;  %v7657_v35 = vor.u32 %v8826_v38, %v7654_v8 }
 0x3e0   :  { %v7729_v55 = vor.u32 %v8844_v40, %v7726_v22  ;;  %v7540_v8 = vld [vmem:[#allocation9 + $0xb78] sm:$0xf] }
 0x3e3   :  { %5208 = vmatpush.bf16.msra.mxu2 %v8137_v48  ;;  %5221 = vmatpush.bf16.msra.mxu3 %v8329_v60  ;;  %v8964_v48 = vld [vmem:[#allocation9 + $0x10b4] sm:$0xf]  ;;  %v8206_v60 = vld [vmem:[#allocation9 + $0x10c8] sm:$0xf0] }
 0x3e4   :  { %v8209_v12 = vor.u32 %v8964_v48, %v8206_v60  ;;  %v8820_v60 = vld [vmem:[#allocation9 + $0xc34] sm:$0xf] }
 0x3e5   :  { %v3249_v13 = vpop.f32.mrf.mxu2  ;;  %v3262_v3 = vpop.f32.mrf.mxu3 }
 0x3e6   :  { %v3250_v46 = vadd.f32 %v3249_v13, %v9770_v39  ;;  %v3263_v1 = vadd.f32 %v3262_v3, %v9772_v62  ;;  %v8910_v13 = vld [vmem:[#allocation9 + $0xf04] sm:$0xf]  ;;  %v7990_v3 = vld [vmem:[#allocation9 + $0xf18] sm:$0xf0] }
 0x3e7   :  { %5209 = vmatpush.bf16.msra.mxu2 %v8113_v20  ;;  %5222 = vmatpush.bf16.msra.mxu3 %v8305_v26  ;;  %v8886_v20 = vld [vmem:[#allocation9 + $0xe44] sm:$0xf] }
 0x3e8   :  { %v3324_v18 = vadd.f32 %v3318_v10, %v3250_v46  ;;  %v3325_v42 = vadd.f32 %v3319_v53, %v3263_v1  ;;  %v7921_v10 = vor.u32 %v8892_v14, %v7918_v9  ;;  %v7702_v53 = vld [vmem:[#allocation9 + $0xcd8] sm:$0xf0]  ;;  %v8958_v1 = vld [vmem:[#allocation9 + $0x1084] sm:$0xf]  ;;  %v7897_v23 = vor.u32 %v8886_v20, %v7894_v56  ;;  %v8848_v14 = vld [vmem:[#allocation9 + $0xd0c] sm:$0xf0] }
 0x3e9   :  { %v7924_v9 = vld [vmem:[#allocation9 + $0xe78] sm:$0xf]  ;;  %v7900_v20 = vld [vmem:[#allocation9 + $0xe48] sm:$0xf]  ;;  %v7606_v56 = vld [vmem:[#allocation9 + $0xc18] sm:$0xf0] }
 0x3ea   :  { %v3330_v41 = vmax.f32 %v3324_v18, 0.0  ;;  %v3331_v57 = vmax.f32 %v3325_v42, 0.0  ;;  %v7705_v18 = vor.u32 %v8838_v59, %v7702_v53  ;;  %v8860_v42 = vld [vmem:[#allocation9 + $0xd6c] sm:$0xf0]  ;;  %v7708_v59 = vld [vmem:[#allocation9 + $0xcc8] sm:$0xf] }
 0x3eb   :  { %5210 = vmatpush.bf16.msra.mxu2 %v8089_v7  ;;  %5223 = vmatpush.bf16.msra.mxu3 %v8281_v36  ;;  %v8182_v7 = vld [vmem:[#allocation9 + $0x1098] sm:$0xf0]  ;;  %v7780_v36 = vld [vmem:[#allocation9 + $0xd58] sm:$0xf]  ;;  %v8842_v53 = vld [vmem:[#allocation9 + $0xcdc] sm:$0xf0] }
 0x3ec   :  { %v9784_v39 = vpack.c.bf16 %v3330_v41, %v3330_v41  ;;  %v9786_v62 = vpack.c.bf16 %v3331_v57, %v3331_v57  ;;  %v7678_v41 = vld [vmem:[#allocation9 + $0xca8] sm:$0xf0]  ;;  %v7993_v57 = vor.u32 %v8910_v13, %v7990_v3  ;;  %v8862_v13 = vld [vmem:[#allocation9 + $0xd84] sm:$0xf]  ;;  %v7798_v3 = vld [vmem:[#allocation9 + $0xd98] sm:$0xf0] }
 0x3ed   :  { %v3251_v32 = vpop.f32.mrf.mxu2  ;;  %v3264_v33 = vpop.f32.mrf.mxu3 }
 0x3ee   :  { %5085 = vmatmul.bf16.vlgmr.msrb.gmra.mxu0 %v9784_v39  ;;  %5098 = vmatmul.bf16.vlgmr.msrb.gmra.mxu1 %v9786_v62  ;;  %v7681_v32 = vor.u32 %v8832_v24, %v7678_v41  ;;  %v8854_v33 = vld [vmem:[#allocation9 + $0xd3c] sm:$0xf0] }
 0x3ef   :  { %5163 = vmatmul.bf16.vlgmr.msrb.gmra.mxu2 %v9784_v39  ;;  %5176 = vmatmul.bf16.vlgmr.msrb.gmra.mxu3 %v9786_v62  ;;  %v7757_v22 = vor.u32 %v8854_v33, %v7756_v58  ;;  %v7852_v58 = vld [vmem:[#allocation9 + $0xde8] sm:$0xf] }
 0x3f0   :  { %5181 = vmatpush.bf16.msrb.mxu0 %v7777_v6  ;;  %5194 = vmatpush.bf16.msrb.mxu1 %v7969_v52  ;;  %v7781_v52 = vor.u32 %v8860_v42, %v7780_v36  ;;  %v7588_v36 = vld [vmem:[#allocation9 + $0xbd8] sm:$0xf] }
 0x3f1   :  { %5211 = vmatpush.bf16.msra.mxu2 %v8065_v0  ;;  %5224 = vmatpush.bf16.msra.mxu3 %v8257_v11  ;;  %v7948_v0 = vld [vmem:[#allocation9 + $0xea8] sm:$0xf]  ;;  %v8902_v11 = vld [vmem:[#allocation9 + $0xebc] sm:$0xf0]  ;;  %v7684_v42 = vld [vmem:[#allocation9 + $0xc98] sm:$0xf] }
 0x3f4   :  { %5182 = vmatpush.bf16.msrb.mxu0 %v7753_v2  ;;  %5195 = vmatpush.bf16.msrb.mxu1 %v7945_v15  ;;  %v8874_v2 = vld [vmem:[#allocation9 + $0xde4] sm:$0xf]  ;;  %v7846_v15 = vld [vmem:[#allocation9 + $0xdf8] sm:$0xf0] }
 0x3f5   :  { %5212 = vmatpush.bf16.msra.mxu2 %v8041_v45  ;;  %5225 = vmatpush.bf16.msra.mxu3 %v8233_v47  ;;  %v3301_v26 = vpop.f32.mrf.mxu2  ;;  %v3314_v61 = vpop.f32.mrf.mxu3  ;;  %v7949_v45 = vor.u32 %v8902_v11, %v7948_v0  ;;  %v7732_v47 = vld [vmem:[#allocation9 + $0xcf8] sm:$0xf]  ;;  %v7849_v48 = vor.u32 %v8874_v2, %v7846_v15  ;;  %v8800_v2 = vld [vmem:[#allocation9 + $0xb8c] sm:$0xf0] }
 0x3f6   :  { %v3302_v46 = vadd.f32 %v3301_v26, %v9766_v50  ;;  %v3315_v21 = vadd.f32 %v3314_v61, %v9768_v51  ;;  %v8185_v50 = vor.u32 %v8958_v1, %v8182_v7  ;;  %v7870_v51 = vld [vmem:[#allocation9 + $0xe28] sm:$0xf0]  ;;  %v8890_v26 = vld [vmem:[#allocation9 + $0xe5c] sm:$0xf0]  ;;  %v7633_v61 = vor.u32 %v8820_v60, %v7630_v34  ;;  %v7348_v11 = vld [vmem:[#allocation9 + $0x9f8] sm:$0xf] }
 0x3f7   :  { %v7873_v4 = vor.u32 %v8880_v29, %v7870_v51  ;;  %v7709_v1 = vor.u32 %v8842_v53, %v7708_v59  ;;  %v7901_v7 = vor.u32 %v8890_v26, %v7900_v20  ;;  %v7685_v29 = vor.u32 %v8836_v19, %v7684_v42  ;;  %v7636_v15 = vld [vmem:[#allocation9 + $0xc38] sm:$0xf]  ;;  %v8794_v34 = vld [vmem:[#allocation9 + $0xb5c] sm:$0xf0]  ;;  %v8761_v59 = vld [vmem:[#allocation9 + $0xa5c] sm:$0xf] }
 0x3f8   :  { %v3328_v30 = vadd.f32 %v3322_v49, %v3302_v46  ;;  %v3329_v44 = vadd.f32 %v3323_v54, %v3315_v21  ;;  %5183 = vmatpush.bf16.msrb.mxu0 %v7729_v55  ;;  %5196 = vmatpush.bf16.msrb.mxu1 %v7921_v10  ;;  %v8868_v49 = vld [vmem:[#allocation9 + $0xdb4] sm:$0xf]  ;;  %v7822_v54 = vld [vmem:[#allocation9 + $0xdc8] sm:$0xf0]  ;;  %v7733_v55 = vor.u32 %v8848_v14, %v7732_v47  ;;  %v7396_v46 = vld [vmem:[#allocation9 + $0xa58] sm:$0xf] }
 0x3f9   :  { %5213 = vmatpush.bf16.msra.mxu2 %v8017_v27  ;;  %5226 = vmatpush.bf16.msra.mxu3 %v8209_v12  ;;  %v7925_v10 = vor.u32 %v8896_v16, %v7924_v9  ;;  %v7825_v27 = vor.u32 %v8868_v49, %v7822_v54  ;;  %v8814_v12 = vld [vmem:[#allocation9 + $0xc04] sm:$0xf]  ;;  %v8764_v21 = vld [vmem:[#allocation9 + $0xa6c] sm:$0xf0]  ;;  %v7541_v14 = vor.u32 %v8800_v2, %v7540_v8  ;;  %v7324_v9 = vld [vmem:[#allocation9 + $0x9c8] sm:$0xf] }
 0x3fa   :  { %v3334_v25 = vmax.f32 %v3328_v30, 0.0  ;;  %v3335_v6 = vmax.f32 %v3329_v44, 0.0  ;;  %v8884_v30 = vld [vmem:[#allocation9 + $0xe2c] sm:$0xf0]  ;;  %v7609_v44 = vor.u32 %v8814_v12, %v7606_v56  ;;  %v7397_v24 = vor.u32 %v8764_v21, %v7396_v46  ;;  %v8746_v16 = vld [vmem:[#allocation9 + $0x9dc] sm:$0xf0] }
 0x3fb   :  { %v7877_v51 = vor.u32 %v8884_v30, %v7876_v63  ;;  %v7612_v49 = vld [vmem:[#allocation9 + $0xc08] sm:$0xf]  ;;  %v8818_v54 = vld [vmem:[#allocation9 + $0xc1c] sm:$0xf0]  ;;  %v7398_v53 = vld [vmem:[#allocation9 + $0xa70] sm:$0xf0] }
 0x3fc   :  { %v9795_v5 = vpack.c.bf16 %v3334_v25, %v3334_v25  ;;  %v9797_v37 = vpack.c.bf16 %v3335_v6, %v3335_v6  ;;  %5184 = vmatpush.bf16.msrb.mxu0 %v7705_v18  ;;  %5197 = vmatpush.bf16.msrb.mxu1 %v7897_v23  ;;  %v8812_v18 = vld [vmem:[#allocation9 + $0xbec] sm:$0xf0]  ;;  %v7801_v23 = vor.u32 %v8862_v13, %v7798_v3  ;;  %v7564_v25 = vld [vmem:[#allocation9 + $0xba8] sm:$0xf]  ;;  %v8806_v6 = vld [vmem:[#allocation9 + $0xbbc] sm:$0xf0] }
 0x3fd   :  { %5214 = vmatpush.bf16.msra.mxu2 %v7993_v57  ;;  %5227 = vmatpush.bf16.msra.mxu3 %v8185_v50  ;;  %v3303_v43 = vpop.f32.mrf.mxu2  ;;  %v3316_v40 = vpop.f32.mrf.mxu3  ;;  %v7589_v41 = vor.u32 %v8812_v18, %v7588_v36  ;;  %v7372_v57 = vld [vmem:[#allocation9 + $0xa28] sm:$0xf]  ;;  %v8758_v50 = vld [vmem:[#allocation9 + $0xa3c] sm:$0xf0]  ;;  %v7565_v0 = vor.u32 %v8806_v6, %v7564_v25  ;;  %v8809_v20 = vld [vmem:[#allocation9 + $0xbdc] sm:$0xf]  ;;  %v7613_v12 = vor.u32 %v8818_v54, %v7612_v49 }
 0x3fe   :  { %5137 = vmatmul.bf16.vlgmr.msra.gmra.mxu0 %v9795_v5  ;;  %5150 = vmatmul.bf16.vlgmr.msra.gmra.mxu1 %v9797_v37  ;;  %v7373_v33 = vor.u32 %v8758_v50, %v7372_v57  ;;  %v8824_v40 = vld [vmem:[#allocation9 + $0xc4c] sm:$0xf0]  ;;  %v7590_v26 = vld [vmem:[#allocation9 + $0xbf0] sm:$0xf0]  ;;  %v7300_v13 = vld [vmem:[#allocation9 + $0x998] sm:$0xf]  ;;  %v7401_v46 = vor.u32 %v8761_v59, %v7398_v53 }
 0x3ff   :  { %v8740_v3 = vld [vmem:[#allocation9 + $0x9ac] sm:$0xf0]  ;;  %v7593_v21 = vor.u32 %v8809_v20, %v7590_v26  ;;  %v8755_v36 = vld [vmem:[#allocation9 + $0xa2c] sm:$0xf]  ;;  %v7374_v18 = vld [vmem:[#allocation9 + $0xa40] sm:$0xf0] }
 0x400   :  { %5185 = vmatpush.bf16.msrb.mxu0 %v7681_v32  ;;  %5198 = vmatpush.bf16.msrb.mxu1 %v7873_v4  ;;  %v8878_v32 = vld [vmem:[#allocation9 + $0xdfc] sm:$0xf0]  ;;  %v8752_v4 = vld [vmem:[#allocation9 + $0xa0c] sm:$0xf0]  ;;  %v8803_v42 = vld [vmem:[#allocation9 + $0xbac] sm:$0xf]  ;;  %v7301_v63 = vor.u32 %v8740_v3, %v7300_v13 }
 0x401   :  { %5259 = vmatpush.bf16.msrb.mxu2 %v7781_v52  ;;  %5272 = vmatpush.bf16.msrb.mxu3 %v7973_v31  ;;  %v7660_v52 = vld [vmem:[#allocation9 + $0xc68] sm:$0xf]  ;;  %v8830_v31 = vld [vmem:[#allocation9 + $0xc7c] sm:$0xf0]  ;;  %v7853_v43 = vor.u32 %v8878_v32, %v7852_v58  ;;  %v7349_v47 = vor.u32 %v8752_v4, %v7348_v11  ;;  %v7566_v19 = vld [vmem:[#allocation9 + $0xbc0] sm:$0xf0] }
 0x402   :  { %5215 = vmatmul.bf16.vlgmr.msra.gmra.mxu2 %v9795_v5  ;;  %5228 = vmatmul.bf16.vlgmr.msra.gmra.mxu3 %v9797_v37  ;;  %v7661_v38 = vor.u32 %v8830_v31, %v7660_v52  ;;  %v7468_v57 = vld [vmem:[#allocation9 + $0xae8] sm:$0xf]  ;;  %v8782_v50 = vld [vmem:[#allocation9 + $0xafc] sm:$0xf0]  ;;  %v8797_v25 = vld [vmem:[#allocation9 + $0xb7c] sm:$0xf] }
 0x403   :  { %v7542_v6 = vld [vmem:[#allocation9 + $0xb90] sm:$0xf0]  ;;  %v7469_v31 = vor.u32 %v8782_v50, %v7468_v57  ;;  %v7252_v58 = vld [vmem:[#allocation9 + $0x938] sm:$0xf]  ;;  %v8728_v32 = vld [vmem:[#allocation9 + $0x94c] sm:$0xf0] }
 0x404   :  { %5186 = vmatpush.bf16.msrb.mxu0 %v7657_v35  ;;  %5199 = vmatpush.bf16.msrb.mxu1 %v7849_v48  ;;  %v7516_v35 = vld [vmem:[#allocation9 + $0xb48] sm:$0xf]  ;;  %v7637_v48 = vor.u32 %v8824_v40, %v7636_v15  ;;  %v7444_v11 = vld [vmem:[#allocation9 + $0xab8] sm:$0xf]  ;;  %v8776_v4 = vld [vmem:[#allocation9 + $0xacc] sm:$0xf0]  ;;  %v7253_v15 = vor.u32 %v8728_v32, %v7252_v58 }
 0x405   :  { %5260 = vmatpush.bf16.msrb.mxu2 %v7757_v22  ;;  %5273 = vmatpush.bf16.msrb.mxu3 %v7949_v45  ;;  %v7828_v22 = vld [vmem:[#allocation9 + $0xdb8] sm:$0xf]  ;;  %v8872_v45 = vld [vmem:[#allocation9 + $0xdcc] sm:$0xf0]  ;;  %v8791_v8 = vld [vmem:[#allocation9 + $0xb4c] sm:$0xf]  ;;  %v7445_v40 = vor.u32 %v8776_v4, %v7444_v11 }
 0x406   :  { %v7829_v60 = vor.u32 %v8872_v45, %v7828_v22  ;;  %v7518_v2 = vld [vmem:[#allocation9 + $0xb60] sm:$0xf0]  ;;  %v7228_v22 = vld [vmem:[#allocation9 + $0x908] sm:$0xf]  ;;  %v8722_v45 = vld [vmem:[#allocation9 + $0x91c] sm:$0xf0] }
 0x407   :  { %v8737_v49 = vld [vmem:[#allocation9 + $0x99c] sm:$0xf]  ;;  %v7302_v54 = vld [vmem:[#allocation9 + $0x9b0] sm:$0xf0]  ;;  %v7229_v59 = vor.u32 %v8722_v45, %v7228_v22  ;;  %v8332_v13 = vld [vmem:[#allocation9 + $0x11a8] sm:$0xf] }
 0x408   :  { %5187 = vmatpush.bf16.msrb.mxu0 %v7633_v61  ;;  %5200 = vmatpush.bf16.msrb.mxu1 %v7825_v27  ;;  %v7325_v61 = vor.u32 %v8746_v16, %v7324_v9  ;;  %v7517_v27 = vor.u32 %v8794_v34, %v7516_v35  ;;  %v7521_v9 = vor.u32 %v8791_v8, %v7518_v2  ;;  %v8770_v16 = vld [vmem:[#allocation9 + $0xa9c] sm:$0xf0]  ;;  %v8164_v35 = vld [vmem:[#allocation9 + $0x1058] sm:$0xf]  ;;  %v9004_v34 = vld [vmem:[#allocation9 + $0x11ec] sm:$0xf0] }
 0x409   :  { %5261 = vmatpush.bf16.msrb.mxu2 %v7733_v55  ;;  %5274 = vmatpush.bf16.msrb.mxu3 %v7925_v10  ;;  %v7804_v55 = vld [vmem:[#allocation9 + $0xd88] sm:$0xf]  ;;  %v8866_v10 = vld [vmem:[#allocation9 + $0xd9c] sm:$0xf0]  ;;  %v8773_v57 = vld [vmem:[#allocation9 + $0xabc] sm:$0xf] }
 0x40a   :  { %v7805_v56 = vor.u32 %v8866_v10, %v7804_v55  ;;  %v8785_v55 = vld [vmem:[#allocation9 + $0xb1c] sm:$0xf]  ;;  %v7494_v10 = vld [vmem:[#allocation9 + $0xb30] sm:$0xf0]  ;;  %v8998_v3 = vld [vmem:[#allocation9 + $0x11bc] sm:$0xf0] }
 0x40b   :  { %v7446_v50 = vld [vmem:[#allocation9 + $0xad0] sm:$0xf0]  ;;  %v8986_v32 = vld [vmem:[#allocation9 + $0x115c] sm:$0xf0]  ;;  %v8767_v11 = vld [vmem:[#allocation9 + $0xa8c] sm:$0xf] }
 0x40c   :  { %5188 = vmatpush.bf16.msrb.mxu0 %v7609_v44  ;;  %5201 = vmatpush.bf16.msrb.mxu1 %v7801_v23  ;;  %v7276_v44 = vld [vmem:[#allocation9 + $0x968] sm:$0xf]  ;;  %v8734_v23 = vld [vmem:[#allocation9 + $0x97c] sm:$0xf0]  ;;  %v7449_v58 = vor.u32 %v8773_v57, %v7446_v50  ;;  %v7422_v4 = vld [vmem:[#allocation9 + $0xaa0] sm:$0xf0] }
 0x40d   :  { %5262 = vmatpush.bf16.msrb.mxu2 %v7709_v1  ;;  %5275 = vmatpush.bf16.msrb.mxu3 %v7901_v7  ;;  %v7492_v1 = vld [vmem:[#allocation9 + $0xb18] sm:$0xf]  ;;  %v8788_v7 = vld [vmem:[#allocation9 + $0xb2c] sm:$0xf0]  ;;  %v7277_v52 = vor.u32 %v8734_v23, %v7276_v44  ;;  %v9001_v8 = vld [vmem:[#allocation9 + $0x11dc] sm:$0xf]  ;;  %v7425_v45 = vor.u32 %v8767_v11, %v7422_v4 }
 0x40e   :  { %v7493_v30 = vor.u32 %v8788_v7, %v7492_v1  ;;  %v8779_v1 = vld [vmem:[#allocation9 + $0xaec] sm:$0xf]  ;;  %v7470_v7 = vld [vmem:[#allocation9 + $0xb00] sm:$0xf0]  ;;  %v8308_v44 = vld [vmem:[#allocation9 + $0x1178] sm:$0xf] }
 0x40f   :  { %5189 = vmatmul.bf16.vlgmr.msrb.gmra.mxu0 %v9775_v28  ;;  %5202 = vmatmul.bf16.vlgmr.msrb.gmra.mxu1 %v9777_v17  ;;  %v8992_v23 = vld [vmem:[#allocation9 + $0x118c] sm:$0xf0]  ;;  %v8358_v2 = vld [vmem:[#allocation9 + $0x11f0] sm:$0xf0]  ;;  %v7996_v57 = vld [vmem:[#allocation9 + $0xf08] sm:$0xf] }
 0x410   :  { %5233 = vmatpush.bf16.msra.mxu0 %v7397_v24  ;;  %5246 = vmatpush.bf16.msra.mxu1 %v7589_v41  ;;  %v7377_v24 = vor.u32 %v8755_v36, %v7374_v18  ;;  %v7569_v41 = vor.u32 %v8803_v42, %v7566_v19  ;;  %v8333_v18 = vor.u32 %v8998_v3, %v8332_v13  ;;  %v8116_v42 = vld [vmem:[#allocation9 + $0xff8] sm:$0xf]  ;;  %v8944_v19 = vld [vmem:[#allocation9 + $0x100c] sm:$0xf0]  ;;  %v8989_v13 = vld [vmem:[#allocation9 + $0x117c] sm:$0xf] }
 0x411   :  { %5263 = vmatpush.bf16.msrb.mxu2 %v7685_v29  ;;  %5276 = vmatpush.bf16.msrb.mxu3 %v7877_v51  ;;  %v8749_v29 = vld [vmem:[#allocation9 + $0x9fc] sm:$0xf]  ;;  %v7350_v51 = vld [vmem:[#allocation9 + $0xa10] sm:$0xf0]  ;;  %v8914_v50 = vld [vmem:[#allocation9 + $0xf1c] sm:$0xf0] }
 0x412   :  { %v8310_v3 = vld [vmem:[#allocation9 + $0x1190] sm:$0xf0]  ;;  %v8977_v11 = vld [vmem:[#allocation9 + $0x111c] sm:$0xf] }
 0x413   :  { %v8262_v4 = vld [vmem:[#allocation9 + $0x1130] sm:$0xf0] }
 0x414   :  { %5234 = vmatpush.bf16.msra.mxu0 %v7373_v33  ;;  %5247 = vmatpush.bf16.msra.mxu1 %v7565_v0  ;;  %v7353_v33 = vor.u32 %v8749_v29, %v7350_v51  ;;  %v7545_v0 = vor.u32 %v8797_v25, %v7542_v6  ;;  %v8117_v29 = vor.u32 %v8944_v19, %v8116_v42  ;;  %v8092_v25 = vld [vmem:[#allocation9 + $0xfc8] sm:$0xf]  ;;  %v8938_v6 = vld [vmem:[#allocation9 + $0xfdc] sm:$0xf0]  ;;  %v8212_v42 = vld [vmem:[#allocation9 + $0x10b8] sm:$0xf] }
 0x415   :  { %5264 = vmatpush.bf16.msrb.mxu2 %v7661_v38  ;;  %5277 = vmatpush.bf16.msrb.mxu3 %v7853_v43  ;;  %v8743_v38 = vld [vmem:[#allocation9 + $0x9cc] sm:$0xf]  ;;  %v7326_v43 = vld [vmem:[#allocation9 + $0x9e0] sm:$0xf0]  ;;  %v8309_v51 = vor.u32 %v8992_v23, %v8308_v44  ;;  %v8968_v19 = vld [vmem:[#allocation9 + $0x10cc] sm:$0xf0] }
 0x416   :  { %v8983_v44 = vld [vmem:[#allocation9 + $0x114c] sm:$0xf]  ;;  %v8286_v23 = vld [vmem:[#allocation9 + $0x1160] sm:$0xf0] }
 0x418   :  { %5235 = vmatpush.bf16.msra.mxu0 %v7349_v47  ;;  %5248 = vmatpush.bf16.msra.mxu1 %v7541_v14  ;;  %v7420_v47 = vld [vmem:[#allocation9 + $0xa88] sm:$0xf]  ;;  %v7329_v14 = vor.u32 %v8743_v38, %v7326_v43  ;;  %v8953_v38 = vld [vmem:[#allocation9 + $0x105c] sm:$0xf]  ;;  %v8166_v43 = vld [vmem:[#allocation9 + $0x1070] sm:$0xf0] }
 0x419   :  { %5265 = vmatpush.bf16.msrb.mxu2 %v7637_v48  ;;  %5278 = vmatpush.bf16.msrb.mxu3 %v7829_v60  ;;  %v8956_v48 = vld [vmem:[#allocation9 + $0x106c] sm:$0xf0]  ;;  %v8356_v60 = vld [vmem:[#allocation9 + $0x11d8] sm:$0xf]  ;;  %v7421_v53 = vor.u32 %v8770_v16, %v7420_v47  ;;  %v8361_v16 = vor.u32 %v9001_v8, %v8358_v2 }
 0x41a   :  { %v8165_v20 = vor.u32 %v8956_v48, %v8164_v35  ;;  %v8357_v26 = vor.u32 %v9004_v34, %v8356_v60  ;;  %v8068_v47 = vld [vmem:[#allocation9 + $0xf98] sm:$0xf]  ;;  %v8980_v48 = vld [vmem:[#allocation9 + $0x112c] sm:$0xf0]  ;;  %v8947_v60 = vld [vmem:[#allocation9 + $0x102c] sm:$0xf] }
 0x41b   :  { %v8260_v35 = vld [vmem:[#allocation9 + $0x1118] sm:$0xf]  ;;  %v8142_v34 = vld [vmem:[#allocation9 + $0x1040] sm:$0xf0] }
 0x41c   :  { %5236 = vmatpush.bf16.msra.mxu0 %v7325_v61  ;;  %5249 = vmatpush.bf16.msra.mxu1 %v7517_v27  ;;  %v8140_v61 = vld [vmem:[#allocation9 + $0x1028] sm:$0xf]  ;;  %v8950_v27 = vld [vmem:[#allocation9 + $0x103c] sm:$0xf0] }
 0x41d   :  { %5266 = vmatpush.bf16.msrb.mxu2 %v7613_v12  ;;  %5279 = vmatpush.bf16.msrb.mxu3 %v7805_v56  ;;  %v7305_v12 = vor.u32 %v8737_v49, %v7302_v54  ;;  %v7497_v56 = vor.u32 %v8785_v55, %v7494_v10  ;;  %v8141_v36 = vor.u32 %v8950_v27, %v8140_v61  ;;  %v8995_v49 = vld [vmem:[#allocation9 + $0x11ac] sm:$0xf]  ;;  %v8334_v54 = vld [vmem:[#allocation9 + $0x11c0] sm:$0xf0]  ;;  %v8236_v61 = vld [vmem:[#allocation9 + $0x10e8] sm:$0xf] }
 0x41e   :  { %v8261_v10 = vor.u32 %v8980_v48, %v8260_v35  ;;  %v8974_v27 = vld [vmem:[#allocation9 + $0x10fc] sm:$0xf0]  ;;  %v8971_v35 = vld [vmem:[#allocation9 + $0x10ec] sm:$0xf]  ;;  %v8238_v48 = vld [vmem:[#allocation9 + $0x1100] sm:$0xf0] }
 0x420   :  { %5267 = vmatmul.bf16.vlgmr.msrb.gmra.mxu2 %v9775_v28  ;;  %5280 = vmatmul.bf16.vlgmr.msrb.gmra.mxu3 %v9777_v17 }
 0x421   :  { %5311 = vmatpush.bf16.msra.mxu2 %v7401_v46  ;;  %5324 = vmatpush.bf16.msra.mxu3 %v7593_v21  ;;  %v8731_v46 = vld [vmem:[#allocation9 + $0x96c] sm:$0xf]  ;;  %v7278_v21 = vld [vmem:[#allocation9 + $0x980] sm:$0xf0] }
 0x422   :  { %5237 = vmatpush.bf16.msra.mxu0 %v7301_v63  ;;  %5250 = vmatpush.bf16.msra.mxu1 %v7493_v30  ;;  %v7281_v63 = vor.u32 %v8731_v46, %v7278_v21  ;;  %v7473_v30 = vor.u32 %v8779_v1, %v7470_v7  ;;  %v8237_v21 = vor.u32 %v8974_v27, %v8236_v61  ;;  %v8020_v1 = vld [vmem:[#allocation9 + $0xf38] sm:$0xf]  ;;  %v8920_v7 = vld [vmem:[#allocation9 + $0xf4c] sm:$0xf0]  ;;  %v8965_v61 = vld [vmem:[#allocation9 + $0x10bc] sm:$0xf] }
 0x423   :  { %v8214_v27 = vld [vmem:[#allocation9 + $0x10d0] sm:$0xf0] }
 0x425   :  { %5312 = vmatpush.bf16.msra.mxu2 %v7377_v24  ;;  %5325 = vmatpush.bf16.msra.mxu3 %v7569_v41  ;;  %v8725_v24 = vld [vmem:[#allocation9 + $0x93c] sm:$0xf]  ;;  %v7254_v41 = vld [vmem:[#allocation9 + $0x950] sm:$0xf0] }
 0x426   :  { %5238 = vmatpush.bf16.msra.mxu0 %v7277_v52  ;;  %5251 = vmatpush.bf16.msra.mxu1 %v7469_v31  ;;  %v8284_v52 = vld [vmem:[#allocation9 + $0x1148] sm:$0xf]  ;;  %v7257_v31 = vor.u32 %v8725_v24, %v7254_v41  ;;  %v8021_v24 = vor.u32 %v8920_v7, %v8020_v1  ;;  %v8213_v41 = vor.u32 %v8968_v19, %v8212_v42  ;;  %v7902_v7 = vld [vmem:[#allocation9 + $0xe60] sm:$0xf0]  ;;  %v9813_v42 = vpop.permute.xlu2 %5570  ;;  %v8959_v19 = vld [vmem:[#allocation9 + $0x108c] sm:$0xf] }
 0x427   :  { %v8217_v1 = vor.u32 %v8965_v61, %v8214_v27  ;;  %v8891_v61 = vld [vmem:[#allocation9 + $0xe64] sm:$0xf0] }
 0x429   :  { %5313 = vmatpush.bf16.msra.mxu2 %v7353_v33  ;;  %5326 = vmatpush.bf16.msra.mxu3 %v7545_v0  ;;  %v8719_v33 = vld [vmem:[#allocation9 + $0x90c] sm:$0xf]  ;;  %v7230_v0 = vld [vmem:[#allocation9 + $0x920] sm:$0xf0] }
 0x42a   :  { %5239 = vmatpush.bf16.msra.mxu0 %v7253_v15  ;;  %5252 = vmatpush.bf16.msra.mxu1 %v7445_v40  ;;  %v8093_v15 = vor.u32 %v8938_v6, %v8092_v25  ;;  %v8285_v40 = vor.u32 %v8986_v32, %v8284_v52  ;;  %v7233_v22 = vor.u32 %v8719_v33, %v7230_v0  ;;  %v8962_v6 = vld [vmem:[#allocation9 + $0x109c] sm:$0xf0]  ;;  %v8857_v52 = vld [vmem:[#allocation9 + $0xd5c] sm:$0xf]  ;;  %v7974_v32 = vld [vmem:[#allocation9 + $0xef0] sm:$0xf0] }
 0x42b   :  { %v8289_v25 = vor.u32 %v8983_v44, %v8286_v23  ;;  %v8929_v33 = vld [vmem:[#allocation9 + $0xf9c] sm:$0xf]  ;;  %v8070_v0 = vld [vmem:[#allocation9 + $0xfb0] sm:$0xf0]  ;;  %v8861_v44 = vld [vmem:[#allocation9 + $0xd74] sm:$0xf0] }
 0x42c   :  { %v7980_v23 = vld [vmem:[#allocation9 + $0xee0] sm:$0xf] }
 0x42d   :  { %5314 = vmatpush.bf16.msra.mxu2 %v7329_v14  ;;  %5327 = vmatpush.bf16.msra.mxu3 %v7521_v9  ;;  %v8932_v14 = vld [vmem:[#allocation9 + $0xfac] sm:$0xf0]  ;;  %v8169_v9 = vor.u32 %v8953_v38, %v8166_v43  ;;  %v7997_v38 = vor.u32 %v8914_v50, %v7996_v57 }
 0x42e   :  { %5240 = vmatpush.bf16.msra.mxu0 %v7229_v59  ;;  %5253 = vmatpush.bf16.msra.mxu1 %v7421_v53  ;;  %v8069_v55 = vor.u32 %v8932_v14, %v8068_v47  ;;  %v8044_v59 = vld [vmem:[#allocation9 + $0xf68] sm:$0xf]  ;;  %v8926_v53 = vld [vmem:[#allocation9 + $0xf7c] sm:$0xf0]  ;;  %v8899_v47 = vld [vmem:[#allocation9 + $0xeac] sm:$0xf] }
 0x42f   :  { %v8045_v46 = vor.u32 %v8926_v53, %v8044_v59  ;;  %v7950_v14 = vld [vmem:[#allocation9 + $0xec0] sm:$0xf0]  ;;  %v8893_v59 = vld [vmem:[#allocation9 + $0xe7c] sm:$0xf]  ;;  %v7926_v53 = vld [vmem:[#allocation9 + $0xe90] sm:$0xf0] }
 0x431   :  { %5315 = vmatpush.bf16.msra.mxu2 %v7305_v12  ;;  %5328 = vmatpush.bf16.msra.mxu3 %v7497_v56  ;;  %v8941_v12 = vld [vmem:[#allocation9 + $0xffc] sm:$0xf]  ;;  %v8118_v56 = vld [vmem:[#allocation9 + $0x1010] sm:$0xf0] }
 0x432   :  { %5285 = vmatpush.bf16.msrb.mxu0 %v8165_v20  ;;  %5298 = vmatpush.bf16.msrb.mxu1 %v8357_v26  ;;  %v8145_v20 = vor.u32 %v8947_v60, %v8142_v34  ;;  %v8337_v26 = vor.u32 %v8995_v49, %v8334_v54  ;;  %v7953_v34 = vor.u32 %v8899_v47, %v7950_v14  ;;  %v8845_v49 = vld [vmem:[#allocation9 + $0xcfc] sm:$0xf]  ;;  %v7734_v54 = vld [vmem:[#allocation9 + $0xd10] sm:$0xf0]  ;;  %v7740_v47 = vld [vmem:[#allocation9 + $0xd00] sm:$0xf] }
 0x433   :  { %5241 = vmatmul.bf16.vlgmr.msra.gmra.mxu0 %v9784_v39  ;;  %5254 = vmatmul.bf16.vlgmr.msra.gmra.mxu1 %v9786_v62  ;;  %v8849_v14 = vld [vmem:[#allocation9 + $0xd14] sm:$0xf0] }
 0x435   :  { %5316 = vmatpush.bf16.msra.mxu2 %v7281_v63  ;;  %5329 = vmatpush.bf16.msra.mxu3 %v7473_v30  ;;  %v8935_v63 = vld [vmem:[#allocation9 + $0xfcc] sm:$0xf]  ;;  %v8094_v30 = vld [vmem:[#allocation9 + $0xfe0] sm:$0xf0] }
 0x436   :  { %5286 = vmatpush.bf16.msrb.mxu0 %v8141_v36  ;;  %5299 = vmatpush.bf16.msrb.mxu1 %v8333_v18  ;;  %v8121_v36 = vor.u32 %v8941_v12, %v8118_v56  ;;  %v8313_v18 = vor.u32 %v8989_v13, %v8310_v3  ;;  %v7737_v12 = vor.u32 %v8845_v49, %v7734_v54  ;;  %v8839_v13 = vld [vmem:[#allocation9 + $0xccc] sm:$0xf]  ;;  %v7710_v3 = vld [vmem:[#allocation9 + $0xce0] sm:$0xf0]  ;;  %v7638_v49 = vld [vmem:[#allocation9 + $0xc50] sm:$0xf0] }
 0x437   :  { %v7929_v56 = vor.u32 %v8893_v59, %v7926_v53  ;;  %v7741_v54 = vor.u32 %v8849_v14, %v7740_v47  ;;  %v7830_v59 = vld [vmem:[#allocation9 + $0xdd0] sm:$0xf0]  ;;  %v7716_v53 = vld [vmem:[#allocation9 + $0xcd0] sm:$0xf]  ;;  %v8753_v47 = vld [vmem:[#allocation9 + $0xa14] sm:$0xf0] }
 0x438   :  { %v7548_v14 = vld [vmem:[#allocation9 + $0xb80] sm:$0xf] }
 0x439   :  { %5317 = vmatpush.bf16.msra.mxu2 %v7257_v31  ;;  %5330 = vmatpush.bf16.msra.mxu3 %v7449_v58  ;;  %v7782_v31 = vld [vmem:[#allocation9 + $0xd70] sm:$0xf0]  ;;  %v8905_v58 = vld [vmem:[#allocation9 + $0xedc] sm:$0xf] }
 0x43a   :  { %5287 = vmatpush.bf16.msrb.mxu0 %v8117_v29  ;;  %5300 = vmatpush.bf16.msrb.mxu1 %v8309_v51  ;;  %v8188_v29 = vld [vmem:[#allocation9 + $0x1088] sm:$0xf]  ;;  %v8097_v51 = vor.u32 %v8935_v63, %v8094_v30  ;;  %v7785_v8 = vor.u32 %v8857_v52, %v7782_v31  ;;  %v7977_v2 = vor.u32 %v8905_v58, %v7974_v32  ;;  %v8190_v63 = vld [vmem:[#allocation9 + $0x10a0] sm:$0xf0]  ;;  %v7788_v30 = vld [vmem:[#allocation9 + $0xd60] sm:$0xf] }
 0x43b   :  { %v8189_v43 = vor.u32 %v8962_v6, %v8188_v29  ;;  %v8193_v29 = vor.u32 %v8959_v19, %v8190_v63  ;;  %v9815_v6 = vpop.permute.xlu0 %5604  ;;  %v7789_v52 = vor.u32 %v8861_v44, %v7788_v30  ;;  %v8881_v58 = vld [vmem:[#allocation9 + $0xe1c] sm:$0xf]  ;;  %v7878_v32 = vld [vmem:[#allocation9 + $0xe30] sm:$0xf0]  ;;  %v8765_v19 = vld [vmem:[#allocation9 + $0xa74] sm:$0xf0] }
 0x43c   :  { %v7596_v63 = vld [vmem:[#allocation9 + $0xbe0] sm:$0xf]  ;;  %v8813_v30 = vld [vmem:[#allocation9 + $0xbf4] sm:$0xf0] }
 0x43d   :  { %5318 = vmatpush.bf16.msra.mxu2 %v7233_v22  ;;  %5331 = vmatpush.bf16.msra.mxu3 %v7425_v45  ;;  %v8073_v22 = vor.u32 %v8929_v33, %v8070_v0  ;;  %v8265_v45 = vor.u32 %v8977_v11, %v8262_v4  ;;  %v7764_v33 = vld [vmem:[#allocation9 + $0xd30] sm:$0xf]  ;;  %v8855_v0 = vld [vmem:[#allocation9 + $0xd44] sm:$0xf0]  ;;  %v7692_v44 = vld [vmem:[#allocation9 + $0xca0] sm:$0xf] }
 0x43e   :  { %5288 = vmatpush.bf16.msrb.mxu0 %v8093_v15  ;;  %5301 = vmatpush.bf16.msrb.mxu1 %v8285_v40  ;;  %v8851_v15 = vld [vmem:[#allocation9 + $0xd2c] sm:$0xf]  ;;  %v7758_v40 = vld [vmem:[#allocation9 + $0xd40] sm:$0xf0]  ;;  %v7956_v11 = vld [vmem:[#allocation9 + $0xeb0] sm:$0xf] }
 0x43f   :  { %v7761_v60 = vor.u32 %v8851_v15, %v7758_v40  ;;  %v8903_v4 = vld [vmem:[#allocation9 + $0xec4] sm:$0xf0]  ;;  %v7765_v15 = vor.u32 %v8855_v0, %v7764_v33 }
 0x440   :  { %5319 = vmatmul.bf16.vlgmr.msra.gmra.mxu2 %v9784_v39  ;;  %5332 = vmatmul.bf16.vlgmr.msra.gmra.mxu3 %v9786_v62  ;;  %v7957_v40 = vor.u32 %v8903_v4, %v7956_v11  ;;  %v7572_v11 = vld [vmem:[#allocation9 + $0xbb0] sm:$0xf]  ;;  %v8807_v4 = vld [vmem:[#allocation9 + $0xbc4] sm:$0xf0] }
 0x441   :  { %5363 = vmatpush.bf16.msrb.mxu2 %v8169_v9  ;;  %5376 = vmatpush.bf16.msrb.mxu3 %v8361_v16  ;;  %v8923_v9 = vld [vmem:[#allocation9 + $0xf6c] sm:$0xf]  ;;  %v8046_v16 = vld [vmem:[#allocation9 + $0xf80] sm:$0xf0] }
 0x442   :  { %5289 = vmatpush.bf16.msrb.mxu0 %v8069_v55  ;;  %5302 = vmatpush.bf16.msrb.mxu1 %v8261_v10  ;;  %v8049_v55 = vor.u32 %v8923_v9, %v8046_v16  ;;  %v8241_v10 = vor.u32 %v8971_v35, %v8238_v48  ;;  %v7932_v9 = vld [vmem:[#allocation9 + $0xe80] sm:$0xf]  ;;  %v8897_v16 = vld [vmem:[#allocation9 + $0xe94] sm:$0xf0]  ;;  %v9817_v35 = vpop.permute.xlu2 %5586 }
 0x443   :  { %v9821_v27 = vpop.permute.xlu0 %5620 }
 0x445   :  { %5364 = vmatpush.bf16.msrb.mxu2 %v8145_v20  ;;  %5377 = vmatpush.bf16.msrb.mxu3 %v8337_v26  ;;  %v8917_v20 = vld [vmem:[#allocation9 + $0xf3c] sm:$0xf]  ;;  %v8022_v26 = vld [vmem:[#allocation9 + $0xf50] sm:$0xf0] }
 0x446   :  { %5290 = vmatpush.bf16.msrb.mxu0 %v8045_v46  ;;  %5303 = vmatpush.bf16.msrb.mxu1 %v8237_v21  ;;  %v8887_v46 = vld [vmem:[#allocation9 + $0xe4c] sm:$0xf]  ;;  %v8025_v21 = vor.u32 %v8917_v20, %v8022_v26  ;;  %v8843_v20 = vld [vmem:[#allocation9 + $0xce4] sm:$0xf0]  ;;  %v7908_v26 = vld [vmem:[#allocation9 + $0xe50] sm:$0xf] }
 0x447   :  { %v7905_v57 = vor.u32 %v8887_v46, %v7902_v7  ;;  %v7614_v46 = vld [vmem:[#allocation9 + $0xc20] sm:$0xf0]  ;;  %v7909_v7 = vor.u32 %v8891_v61, %v7908_v26 }
 0x449   :  { %5365 = vmatpush.bf16.msrb.mxu2 %v8121_v36  ;;  %5378 = vmatpush.bf16.msrb.mxu3 %v8313_v18  ;;  %v8911_v36 = vld [vmem:[#allocation9 + $0xf0c] sm:$0xf]  ;;  %v7998_v18 = vld [vmem:[#allocation9 + $0xf20] sm:$0xf0] }
 0x44a   :  { %5291 = vmatpush.bf16.msrb.mxu0 %v8021_v24  ;;  %5304 = vmatpush.bf16.msrb.mxu1 %v8213_v41  ;;  %v8909_v24 = vld [vmem:[#allocation9 + $0xef4] sm:$0xf0]  ;;  %v7713_v41 = vor.u32 %v8839_v13, %v7710_v3  ;;  %v8001_v50 = vor.u32 %v8911_v36, %v7998_v18  ;;  %v8815_v3 = vld [vmem:[#allocation9 + $0xc0c] sm:$0xf]  ;;  %v7806_v36 = vld [vmem:[#allocation9 + $0xda0] sm:$0xf0] }
 0x44b   :  { %v7981_v31 = vor.u32 %v8909_v24, %v7980_v23  ;;  %v7404_v18 = vld [vmem:[#allocation9 + $0xa60] sm:$0xf] }
 0x44d   :  { %5366 = vmatpush.bf16.msrb.mxu2 %v8097_v51  ;;  %5379 = vmatpush.bf16.msrb.mxu3 %v8289_v25  ;;  %v8833_v51 = vld [vmem:[#allocation9 + $0xc9c] sm:$0xf]  ;;  %v7686_v25 = vld [vmem:[#allocation9 + $0xcb0] sm:$0xf0] }
 0x44e   :  { %5292 = vmatpush.bf16.msrb.mxu0 %v7997_v38  ;;  %5305 = vmatpush.bf16.msrb.mxu1 %v8189_v43  ;;  %v7689_v38 = vor.u32 %v8833_v51, %v7686_v25  ;;  %v7881_v43 = vor.u32 %v8881_v58, %v7878_v32  ;;  %v9829_v25 = vpop.permute.xlu2 %5584  ;;  %v7380_v58 = vld [vmem:[#allocation9 + $0xa30] sm:$0xf]  ;;  %v8759_v32 = vld [vmem:[#allocation9 + $0xa44] sm:$0xf0] }
 0x451   :  { %5367 = vmatpush.bf16.msrb.mxu2 %v8073_v22  ;;  %5380 = vmatpush.bf16.msrb.mxu3 %v8265_v45  ;;  %v8875_v22 = vld [vmem:[#allocation9 + $0xdec] sm:$0xf]  ;;  %v7854_v45 = vld [vmem:[#allocation9 + $0xe00] sm:$0xf0] }
 0x452   :  { %5337 = vmatpush.bf16.msra.mxu0 %v7785_v8  ;;  %5350 = vmatpush.bf16.msra.mxu1 %v7977_v2  ;;  %v8827_v8 = vld [vmem:[#allocation9 + $0xc6c] sm:$0xf]  ;;  %v7662_v2 = vld [vmem:[#allocation9 + $0xc80] sm:$0xf0] }
 0x453   :  { %5293 = vmatmul.bf16.vlgmr.msrb.gmra.mxu0 %v9795_v5  ;;  %5306 = vmatmul.bf16.vlgmr.msrb.gmra.mxu1 %v9797_v37  ;;  %v7665_v48 = vor.u32 %v8827_v8, %v7662_v2  ;;  %v7860_v8 = vld [vmem:[#allocation9 + $0xdf0] sm:$0xf]  ;;  %v8879_v2 = vld [vmem:[#allocation9 + $0xe04] sm:$0xf0] }
 0x455   :  { %5368 = vmatpush.bf16.msrb.mxu2 %v8049_v55  ;;  %5381 = vmatpush.bf16.msrb.mxu3 %v8241_v10  ;;  %v7933_v55 = vor.u32 %v8897_v16, %v7932_v9  ;;  %v8869_v10 = vld [vmem:[#allocation9 + $0xdbc] sm:$0xf] }
 0x456   :  { %5338 = vmatpush.bf16.msra.mxu0 %v7761_v60  ;;  %5351 = vmatpush.bf16.msra.mxu1 %v7953_v34  ;;  %v7857_v60 = vor.u32 %v8875_v22, %v7854_v45  ;;  %v8821_v34 = vld [vmem:[#allocation9 + $0xc3c] sm:$0xf]  ;;  %v7833_v13 = vor.u32 %v8869_v10, %v7830_v59  ;;  %v7573_v22 = vor.u32 %v8807_v4, %v7572_v11  ;;  %v7356_v45 = vld [vmem:[#allocation9 + $0xa00] sm:$0xf]  ;;  %v8825_v59 = vld [vmem:[#allocation9 + $0xc54] sm:$0xf0] }
 0x457   :  { %v7357_v26 = vor.u32 %v8753_v47, %v7356_v45  ;;  %v7500_v45 = vld [vmem:[#allocation9 + $0xb20] sm:$0xf]  ;;  %v8789_v47 = vld [vmem:[#allocation9 + $0xb34] sm:$0xf0] }
 0x459   :  { %5369 = vmatpush.bf16.msrb.mxu2 %v8025_v21  ;;  %5382 = vmatpush.bf16.msrb.mxu3 %v8217_v1  ;;  %v8863_v21 = vld [vmem:[#allocation9 + $0xd8c] sm:$0xf]  ;;  %v7717_v1 = vor.u32 %v8843_v20, %v7716_v53  ;;  %v7836_v53 = vld [vmem:[#allocation9 + $0xdc0] sm:$0xf]  ;;  %v8873_v20 = vld [vmem:[#allocation9 + $0xdd4] sm:$0xf0] }
 0x45a   :  { %5339 = vmatpush.bf16.msra.mxu0 %v7737_v12  ;;  %5352 = vmatpush.bf16.msra.mxu1 %v7929_v56  ;;  %v9823_v12 = vpop.permute.xlu1 %5572  ;;  %v7641_v56 = vor.u32 %v8821_v34, %v7638_v49  ;;  %v7809_v51 = vor.u32 %v8863_v21, %v7806_v36  ;;  %v7644_v34 = vld [vmem:[#allocation9 + $0xc40] sm:$0xf]  ;;  %v7524_v21 = vld [vmem:[#allocation9 + $0xb50] sm:$0xf] }
 0x45b   :  { %v9030_v49 = vld [vmem:[#allocation10] sm:$0xff] }
 0x45d   :  { %5370 = vmatpush.bf16.msrb.mxu2 %v8001_v50  ;;  %5383 = vmatpush.bf16.msrb.mxu3 %v8193_v29  ;;  %v8885_v50 = vld [vmem:[#allocation9 + $0xe34] sm:$0xf0]  ;;  %v7617_v29 = vor.u32 %v8815_v3, %v7614_v46  ;;  %v7332_v3 = vld [vmem:[#allocation9 + $0x9d0] sm:$0xf]  ;;  %v8747_v46 = vld [vmem:[#allocation9 + $0x9e4] sm:$0xf0] }
 0x45e   :  { %5340 = vmatpush.bf16.msra.mxu0 %v7713_v41  ;;  %5353 = vmatpush.bf16.msra.mxu1 %v7905_v57  ;;  %v8837_v41 = vld [vmem:[#allocation9 + $0xcb4] sm:$0xf0]  ;;  %v7884_v57 = vld [vmem:[#allocation9 + $0xe20] sm:$0xf] }
 0x45f   :  { %v7693_v33 = vor.u32 %v8837_v41, %v7692_v44  ;;  %v7885_v0 = vor.u32 %v8885_v50, %v7884_v57  ;;  %v7812_v44 = vld [vmem:[#allocation9 + $0xd90] sm:$0xf]  ;;  %v8867_v41 = vld [vmem:[#allocation9 + $0xda4] sm:$0xf0]  ;;  %v8762_v57 = vld [vmem:[#allocation9 + $0xa64] sm:$0xf] }
 0x460   :  { %5371 = vmatmul.bf16.vlgmr.msrb.gmra.mxu2 %v9795_v5  ;;  %5384 = vmatmul.bf16.vlgmr.msrb.gmra.mxu3 %v9797_v37 }
 0x461   :  { %5415 = vmatpush.bf16.msra.mxu2 %v7789_v52  ;;  %5428 = vmatpush.bf16.msra.mxu3 %v7981_v31  ;;  %v9825_v23 = vpop.f32.mrf.mxu2  ;;  %v9827_v24 = vpop.f32.mrf.mxu3  ;;  %v7405_v52 = vor.u32 %v8765_v19, %v7404_v18  ;;  %v7597_v31 = vor.u32 %v8813_v30, %v7596_v63  ;;  %v8795_v18 = vld [vmem:[#allocation9 + $0xb64] sm:$0xf0]  ;;  %v7620_v19 = vld [vmem:[#allocation9 + $0xc10] sm:$0xf] }
 0x462   :  { %5341 = vmatpush.bf16.msra.mxu0 %v7689_v38  ;;  %5354 = vmatpush.bf16.msra.mxu1 %v7881_v43  ;;  %v7668_v38 = vld [vmem:[#allocation9 + $0xc70] sm:$0xf]  ;;  %v8831_v43 = vld [vmem:[#allocation9 + $0xc84] sm:$0xf0]  ;;  %v9833_v9 = vpop.permute.xlu1 %5588  ;;  %v9837_v30 = vpop.permute.xlu2 %5566 }
 0x463   :  { %v7669_v16 = vor.u32 %v8831_v43, %v7668_v38  ;;  %v8819_v63 = vld [vmem:[#allocation9 + $0xc24] sm:$0xf0]  ;;  %v7813_v38 = vor.u32 %v8867_v41, %v7812_v44  ;;  %v7308_v43 = vld [vmem:[#allocation9 + $0x9a0] sm:$0xf]  ;;  %v8729_v44 = vld [vmem:[#allocation9 + $0x954] sm:$0xf0] }
 0x464   :  { %v7621_v4 = vor.u32 %v8819_v63, %v7620_v19  ;;  %v7260_v63 = vld [vmem:[#allocation9 + $0x940] sm:$0xf] }
 0x465   :  { %5416 = vmatpush.bf16.msra.mxu2 %v7765_v15  ;;  %5429 = vmatpush.bf16.msra.mxu3 %v7957_v40  ;;  %v9831_v15 = vpop.permute.xlu0 %5582  ;;  %v7381_v40 = vor.u32 %v8759_v32, %v7380_v58  ;;  %v7525_v58 = vor.u32 %v8795_v18, %v7524_v21  ;;  %v9031_v32 = vld [vmem:[#allocation10 + $0x8] sm:$0xff]  ;;  %v7358_v21 = vld [vmem:[#allocation9 + $0xa18] sm:$0xf0] }
 0x466   :  { %5342 = vmatpush.bf16.msra.mxu0 %v7665_v48  ;;  %5355 = vmatpush.bf16.msra.mxu1 %v7857_v60  ;;  %v7861_v48 = vor.u32 %v8879_v2, %v7860_v8  ;;  %v8801_v60 = vld [vmem:[#allocation9 + $0xb94] sm:$0xf0] }
 0x467   :  { %v7549_v61 = vor.u32 %v8801_v60, %v7548_v14  ;;  %v8741_v8 = vld [vmem:[#allocation9 + $0x9b4] sm:$0xf0]  ;;  %v8756_v14 = vld [vmem:[#allocation9 + $0xa34] sm:$0xf]  ;;  %v7382_v60 = vld [vmem:[#allocation9 + $0xa48] sm:$0xf0] }
 0x469   :  { %5417 = vmatpush.bf16.msra.mxu2 %v7741_v54  ;;  %5430 = vmatpush.bf16.msra.mxu3 %v7933_v55  ;;  %v3631_v54 = vperm.slane %v9030_v49, 3  ;;  %v5114_v55 = vpop.f32.mrf.mxu2  ;;  %v5127_v10 = vpop.f32.mrf.mxu3  ;;  %v7574_v49 = vld [vmem:[#allocation9 + $0xbc8] sm:$0xf0] }
 0x46a   :  { %5343 = vmatpush.bf16.msra.mxu0 %v7641_v56  ;;  %5356 = vmatpush.bf16.msra.mxu1 %v7833_v13 }
 0x46b   :  { %v5086_v56 = vpop.f32.mrf.mxu0  ;;  %v5099_v13 = vpop.f32.mrf.mxu1 }
 0x46c   :  { %v5087_v36 = vadd.f32 %v5086_v56, %v3631_v54  ;;  %v7385_v56 = vor.u32 %v8756_v14, %v7382_v60  ;;  %v8771_v60 = vld [vmem:[#allocation9 + $0xaa4] sm:$0xf0] }
 0x46d   :  { %5418 = vmatpush.bf16.msra.mxu2 %v7717_v1  ;;  %5431 = vmatpush.bf16.msra.mxu3 %v7909_v7  ;;  %v7645_v1 = vor.u32 %v8825_v59, %v7644_v34  ;;  %v7837_v7 = vor.u32 %v8873_v20, %v7836_v53  ;;  %v9842_v2 = vpop.permute.xlu0 %5564  ;;  %v8804_v34 = vld [vmem:[#allocation9 + $0xbb4] sm:$0xf]  ;;  %v7309_v59 = vor.u32 %v8741_v8, %v7308_v43  ;;  %v7284_v20 = vld [vmem:[#allocation9 + $0x970] sm:$0xf] }
 0x46e   :  { %5344 = vmatpush.bf16.msra.mxu0 %v7617_v29  ;;  %5357 = vmatpush.bf16.msra.mxu1 %v7809_v51  ;;  %v5100_v50 = vadd.f32 %v5099_v13, %v5087_v36  ;;  %v7406_v29 = vld [vmem:[#allocation9 + $0xa78] sm:$0xf0]  ;;  %v8810_v51 = vld [vmem:[#allocation9 + $0xbe4] sm:$0xf]  ;;  %v7501_v53 = vor.u32 %v8789_v47, %v7500_v45  ;;  %v7577_v13 = vor.u32 %v8804_v34, %v7574_v49  ;;  %v9847_v36 = vpop.permute.xlu2 %5600  ;;  %v7428_v45 = vld [vmem:[#allocation9 + $0xa90] sm:$0xf] }
 0x46f   :  { %v8172_v34 = vld [vmem:[#allocation9 + $0x1060] sm:$0xf]  ;;  %v8957_v49 = vld [vmem:[#allocation9 + $0x1074] sm:$0xf0] }
 0x470   :  { %v5113_v11 = vadd.f32 %v9825_v23, %v5100_v50 }
 0x471   :  { %5419 = vmatpush.bf16.msra.mxu2 %v7693_v33  ;;  %5432 = vmatpush.bf16.msra.mxu3 %v7885_v0  ;;  %v3632_v33 = vperm.slane %v9031_v32, 3  ;;  %v9839_v0 = vpop.permute.xlu1 %5568  ;;  %v7334_v32 = vld [vmem:[#allocation9 + $0x9e8] sm:$0xf0] }
 0x472   :  { %5389 = vmatpush.bf16.msrb.mxu0 %v7405_v52  ;;  %5402 = vmatpush.bf16.msrb.mxu1 %v7597_v31  ;;  %v7598_v52 = vld [vmem:[#allocation9 + $0xbf8] sm:$0xf0]  ;;  %v7333_v31 = vor.u32 %v8747_v46, %v7332_v3  ;;  %v5126_v54 = vadd.f32 %v9827_v24, %v5113_v11  ;;  %v7476_v3 = vld [vmem:[#allocation9 + $0xaf0] sm:$0xf]  ;;  %v8783_v46 = vld [vmem:[#allocation9 + $0xb04] sm:$0xf0] }
 0x473   :  { %5345 = vmatmul.bf16.vlgmr.msra.gmra.mxu0 %v9775_v28  ;;  %5358 = vmatmul.bf16.vlgmr.msra.gmra.mxu1 %v9777_v17  ;;  %v5088_v55 = vpop.f32.mrf.mxu0  ;;  %v5101_v10 = vpop.f32.mrf.mxu1  ;;  %v8750_v24 = vld [vmem:[#allocation9 + $0xa04] sm:$0xf]  ;;  %v7477_v19 = vor.u32 %v8783_v46, %v7476_v3  ;;  %v7526_v11 = vld [vmem:[#allocation9 + $0xb68] sm:$0xf0]  ;;  %v8173_v46 = vor.u32 %v8957_v49, %v8172_v34 }
 0x474   :  { %v9005_v55 = vld [vmem:[#allocation9 + $0x11f4] sm:$0xf0]  ;;  %v8738_v10 = vld [vmem:[#allocation9 + $0x9a4] sm:$0xf] }
 0x475   :  { %5420 = vmatpush.bf16.msra.mxu2 %v7669_v16  ;;  %5433 = vmatpush.bf16.msra.mxu3 %v7861_v48  ;;  %v5164_v16 = vpop.f32.mrf.mxu2  ;;  %v5177_v48 = vpop.f32.mrf.mxu3 }
 0x476   :  { %5390 = vmatpush.bf16.msrb.mxu0 %v7381_v40  ;;  %5403 = vmatpush.bf16.msrb.mxu1 %v7573_v22  ;;  %v7409_v40 = vor.u32 %v8762_v57, %v7406_v29  ;;  %v7601_v22 = vor.u32 %v8810_v51, %v7598_v52  ;;  %v5165_v23 = vadd.f32 %v5164_v16, %v3632_v33  ;;  %v7452_v29 = vld [vmem:[#allocation9 + $0xac0] sm:$0xf]  ;;  %v8777_v51 = vld [vmem:[#allocation9 + $0xad4] sm:$0xf0]  ;;  %v8744_v52 = vld [vmem:[#allocation9 + $0x9d4] sm:$0xf]  ;;  %v9853_v47 = vpop.permute.xlu0 %5636 }
 0x477   :  { %v7361_v57 = vor.u32 %v8750_v24, %v7358_v21  ;;  %v8792_v33 = vld [vmem:[#allocation9 + $0xb54] sm:$0xf]  ;;  %v7337_v16 = vor.u32 %v8744_v52, %v7334_v32  ;;  %v8148_v21 = vld [vmem:[#allocation9 + $0x1030] sm:$0xf] }
 0x479   :  { %5421 = vmatpush.bf16.msra.mxu2 %v7645_v1  ;;  %5434 = vmatpush.bf16.msra.mxu3 %v7837_v7  ;;  %v8798_v1 = vld [vmem:[#allocation9 + $0xb84] sm:$0xf]  ;;  %v7550_v7 = vld [vmem:[#allocation9 + $0xb98] sm:$0xf0]  ;;  %v9851_v41 = vpop.permute.xlu1 %5602 }
 0x47a   :  { %5391 = vmatpush.bf16.msrb.mxu0 %v7357_v26  ;;  %5404 = vmatpush.bf16.msrb.mxu1 %v7549_v61  ;;  %v8735_v26 = vld [vmem:[#allocation9 + $0x984] sm:$0xf0]  ;;  %v9845_v61 = vadd.f32 %v5177_v48, %v5165_v23  ;;  %v7553_v50 = vor.u32 %v8798_v1, %v7550_v7  ;;  %v7529_v48 = vor.u32 %v8792_v33, %v7526_v11  ;;  %v8364_v23 = vld [vmem:[#allocation9 + $0x11e0] sm:$0xf] }
 0x47b   :  { %v7285_v18 = vor.u32 %v8735_v26, %v7284_v20  ;;  %v5138_v43 = vpop.f32.mrf.mxu0  ;;  %v5151_v8 = vpop.f32.mrf.mxu1  ;;  %v8786_v20 = vld [vmem:[#allocation9 + $0xb24] sm:$0xf]  ;;  %v7502_v26 = vld [vmem:[#allocation9 + $0xb38] sm:$0xf0]  ;;  %v8365_v24 = vor.u32 %v9005_v55, %v8364_v23  ;;  %v8951_v1 = vld [vmem:[#allocation9 + $0x1044] sm:$0xf0] }
 0x47c   :  { %v5139_v14 = vadd.f32 %v5138_v43, %v5126_v54  ;;  %v9859_v54 = vpop.permute.xlu2 %5616  ;;  %v8149_v32 = vor.u32 %v8951_v1, %v8148_v21  ;;  %v8124_v11 = vld [vmem:[#allocation9 + $0x1000] sm:$0xf]  ;;  %v8100_v23 = vld [vmem:[#allocation9 + $0xfd0] sm:$0xf]  ;;  %v8939_v55 = vld [vmem:[#allocation9 + $0xfe4] sm:$0xf0] }
 0x47d   :  { %5422 = vmatpush.bf16.msra.mxu2 %v7621_v4  ;;  %5435 = vmatpush.bf16.msra.mxu3 %v7813_v38  ;;  %v7261_v4 = vor.u32 %v8729_v44, %v7260_v63  ;;  %v7453_v38 = vor.u32 %v8777_v51, %v7452_v29  ;;  %v8999_v63 = vld [vmem:[#allocation9 + $0x11c4] sm:$0xf0]  ;;  %v8732_v44 = vld [vmem:[#allocation9 + $0x974] sm:$0xf]  ;;  %v7478_v29 = vld [vmem:[#allocation9 + $0xb08] sm:$0xf0] }
 0x47e   :  { %5392 = vmatpush.bf16.msrb.mxu0 %v7333_v31  ;;  %5405 = vmatpush.bf16.msrb.mxu1 %v7525_v58  ;;  %v5166_v31 = vpop.f32.mrf.mxu2  ;;  %v5179_v58 = vpop.f32.mrf.mxu3  ;;  %v7430_v21 = vld [vmem:[#allocation9 + $0xaa8] sm:$0xf0]  ;;  %v8954_v1 = vld [vmem:[#allocation9 + $0x1064] sm:$0xf] }
 0x480   :  { %5423 = vmatmul.bf16.vlgmr.msra.gmra.mxu2 %v9775_v28  ;;  %5436 = vmatmul.bf16.vlgmr.msra.gmra.mxu3 %v9777_v17 }
 0x481   :  { %5467 = vmatpush.bf16.msrb.mxu2 %v7409_v40  ;;  %5480 = vmatpush.bf16.msrb.mxu3 %v7601_v22  ;;  %v7236_v40 = vld [vmem:[#allocation9 + $0x910] sm:$0xf]  ;;  %v8723_v22 = vld [vmem:[#allocation9 + $0x924] sm:$0xf0]  ;;  %v9857_v3 = vpop.permute.xlu1 %5618 }
 0x482   :  { %5393 = vmatpush.bf16.msrb.mxu0 %v7309_v59  ;;  %5406 = vmatpush.bf16.msrb.mxu1 %v7501_v53  ;;  %v9855_v59 = vadd.f32 %v5151_v8, %v5139_v14  ;;  %v7310_v53 = vld [vmem:[#allocation9 + $0x9b8] sm:$0xf0]  ;;  %v8316_v8 = vld [vmem:[#allocation9 + $0x1180] sm:$0xf] }
 0x483   :  { %v7313_v7 = vor.u32 %v8738_v10, %v7310_v53  ;;  %v5140_v31 = vpop.f32.mrf.mxu0  ;;  %v5153_v58 = vpop.f32.mrf.mxu1  ;;  %v7262_v14 = vld [vmem:[#allocation9 + $0x958] sm:$0xf0]  ;;  %v8292_v10 = vld [vmem:[#allocation9 + $0x1150] sm:$0xf] }
 0x485   :  { %5468 = vmatpush.bf16.msrb.mxu2 %v7385_v56  ;;  %5481 = vmatpush.bf16.msrb.mxu3 %v7577_v13  ;;  %v7237_v56 = vor.u32 %v8723_v22, %v7236_v40  ;;  %v7429_v13 = vor.u32 %v8771_v60, %v7428_v45  ;;  %v8993_v40 = vld [vmem:[#allocation9 + $0x1194] sm:$0xf0]  ;;  %v8726_v22 = vld [vmem:[#allocation9 + $0x944] sm:$0xf]  ;;  %v9865_v45 = vpop.permute.xlu0 %5562 }
 0x486   :  { %5394 = vmatpush.bf16.msrb.mxu0 %v7285_v18  ;;  %5407 = vmatpush.bf16.msrb.mxu1 %v7477_v19  ;;  %v7505_v18 = vor.u32 %v8786_v20, %v7502_v26  ;;  %v8340_v19 = vld [vmem:[#allocation9 + $0x11b0] sm:$0xf]  ;;  %v9861_v51 = vpop.f32.mrf.mxu2  ;;  %v9863_v52 = vpop.f32.mrf.mxu3  ;;  %v8317_v49 = vor.u32 %v8993_v40, %v8316_v8  ;;  %v7265_v53 = vor.u32 %v8726_v22, %v7262_v14  ;;  %v8987_v26 = vld [vmem:[#allocation9 + $0x1164] sm:$0xf0]  ;;  %v8268_v8 = vld [vmem:[#allocation9 + $0x1120] sm:$0xf] }
 0x487   :  { %v8341_v33 = vor.u32 %v8999_v63, %v8340_v19  ;;  %v8174_v19 = vld [vmem:[#allocation9 + $0x1078] sm:$0xf0]  ;;  %v9002_v63 = vld [vmem:[#allocation9 + $0x11e4] sm:$0xf]  ;;  %v8293_v31 = vor.u32 %v8987_v26, %v8292_v10  ;;  %v8981_v40 = vld [vmem:[#allocation9 + $0x1134] sm:$0xf0] }
 0x488   :  { %v8948_v22 = vld [vmem:[#allocation9 + $0x1034] sm:$0xf]  ;;  %v8269_v10 = vor.u32 %v8981_v40, %v8268_v8  ;;  %v8004_v40 = vld [vmem:[#allocation9 + $0xf10] sm:$0xf] }
 0x489   :  { %5469 = vmatpush.bf16.msrb.mxu2 %v7361_v57  ;;  %5482 = vmatpush.bf16.msrb.mxu3 %v7553_v50  ;;  %v7286_v57 = vld [vmem:[#allocation9 + $0x988] sm:$0xf0]  ;;  %v8780_v50 = vld [vmem:[#allocation9 + $0xaf4] sm:$0xf]  ;;  %v9869_v60 = vpop.permute.xlu1 %5580 }
 0x48a   :  { %5395 = vmatpush.bf16.msrb.mxu0 %v7261_v4  ;;  %5408 = vmatpush.bf16.msrb.mxu1 %v7453_v38  ;;  %v8945_v4 = vld [vmem:[#allocation9 + $0x1014] sm:$0xf0]  ;;  %v7289_v38 = vor.u32 %v8732_v44, %v7286_v57  ;;  %v7481_v43 = vor.u32 %v8780_v50, %v7478_v29  ;;  %v8366_v44 = vld [vmem:[#allocation9 + $0x11f8] sm:$0xf0]  ;;  %v8101_v29 = vor.u32 %v8939_v55, %v8100_v23 }
 0x48b   :  { %v8125_v34 = vor.u32 %v8945_v4, %v8124_v11  ;;  %v8076_v11 = vld [vmem:[#allocation9 + $0xfa0] sm:$0xf]  ;;  %v8933_v4 = vld [vmem:[#allocation9 + $0xfb4] sm:$0xf0] }
 0x48c   :  { %v5190_v57 = vpop.f32.mrf.mxu0  ;;  %v5203_v50 = vpop.f32.mrf.mxu1  ;;  %v8077_v55 = vor.u32 %v8933_v4, %v8076_v11  ;;  %v8936_v11 = vld [vmem:[#allocation9 + $0xfd4] sm:$0xf] }
 0x48d   :  { %5470 = vmatpush.bf16.msrb.mxu2 %v7337_v16  ;;  %5483 = vmatpush.bf16.msrb.mxu3 %v7529_v48  ;;  %v8774_v16 = vld [vmem:[#allocation9 + $0xac4] sm:$0xf]  ;;  %v7454_v48 = vld [vmem:[#allocation9 + $0xad8] sm:$0xf0]  ;;  %v5191_v58 = vadd.f32 %v5190_v57, %v9845_v61  ;;  %v9876_v23 = vpop.permute.xlu0 %5634  ;;  %v8984_v4 = vld [vmem:[#allocation9 + $0x1154] sm:$0xf] }
 0x48e   :  { %5396 = vmatpush.bf16.msrb.mxu0 %v7237_v56  ;;  %5409 = vmatpush.bf16.msrb.mxu1 %v7429_v13  ;;  %v7457_v20 = vor.u32 %v8774_v16, %v7454_v48  ;;  %v8720_v56 = vld [vmem:[#allocation9 + $0x914] sm:$0xf]  ;;  %v7238_v13 = vld [vmem:[#allocation9 + $0x928] sm:$0xf0] }
 0x48f   :  { %v5204_v14 = vadd.f32 %v5203_v50, %v5191_v58  ;;  %v8150_v16 = vld [vmem:[#allocation9 + $0x1048] sm:$0xf0]  ;;  %v8996_v48 = vld [vmem:[#allocation9 + $0x11b4] sm:$0xf]  ;;  %v8028_v50 = vld [vmem:[#allocation9 + $0xf40] sm:$0xf] }
 0x490   :  { %v8153_v26 = vor.u32 %v8948_v22, %v8150_v16  ;;  %v8915_v22 = vld [vmem:[#allocation9 + $0xf24] sm:$0xf0] }
 0x491   :  { %5471 = vmatpush.bf16.msrb.mxu2 %v7313_v7  ;;  %5484 = vmatpush.bf16.msrb.mxu3 %v7505_v18  ;;  %v5218_v7 = vpop.f32.mrf.mxu2  ;;  %v5231_v18 = vpop.f32.mrf.mxu3  ;;  %v5217_v61 = vadd.f32 %v9861_v51, %v5204_v14  ;;  %v8196_v14 = vld [vmem:[#allocation9 + $0x1090] sm:$0xf] }
 0x492   :  { %5441 = vmatpush.bf16.msra.mxu0 %v8173_v46  ;;  %5454 = vmatpush.bf16.msra.mxu1 %v8365_v24  ;;  %v9871_v46 = vpop.permute.xlu2 %5598  ;;  %v8768_v24 = vld [vmem:[#allocation9 + $0xa94] sm:$0xf]  ;;  %v8126_v7 = vld [vmem:[#allocation9 + $0x1018] sm:$0xf0]  ;;  %v8990_v18 = vld [vmem:[#allocation9 + $0x1184] sm:$0xf] }
 0x493   :  { %5397 = vmatmul.bf16.vlgmr.msrb.gmra.mxu0 %v9784_v39  ;;  %5410 = vmatmul.bf16.vlgmr.msrb.gmra.mxu1 %v9786_v62 }
 0x494   :  { %v5192_v51 = vpop.f32.mrf.mxu0 }
 0x495   :  { %5472 = vmatpush.bf16.msrb.mxu2 %v7289_v38  ;;  %5485 = vmatpush.bf16.msrb.mxu3 %v7481_v43  ;;  %v8177_v38 = vor.u32 %v8954_v1, %v8174_v19  ;;  %v8369_v43 = vor.u32 %v9002_v63, %v8366_v44  ;;  %v9880_v1 = vadd.f32 %v9863_v52, %v5217_v61  ;;  %v8318_v19 = vld [vmem:[#allocation9 + $0x1198] sm:$0xf0]  ;;  %v5205_v63 = vpop.f32.mrf.mxu1  ;;  %v9888_v16 = vpop.permute.xlu0 %5560  ;;  %v8963_v61 = vld [vmem:[#allocation9 + $0x10a4] sm:$0xf0]  ;;  %v8852_v51 = vld [vmem:[#allocation9 + $0xd34] sm:$0xf] }
 0x496   :  { %5442 = vmatpush.bf16.msra.mxu0 %v8149_v32  ;;  %5455 = vmatpush.bf16.msra.mxu1 %v8341_v33  ;;  %v7241_v32 = vor.u32 %v8720_v56, %v7238_v13  ;;  %v7433_v33 = vor.u32 %v8768_v24, %v7430_v21  ;;  %v8244_v13 = vld [vmem:[#allocation9 + $0x10f0] sm:$0xf]  ;;  %v8975_v24 = vld [vmem:[#allocation9 + $0x1104] sm:$0xf0]  ;;  %v8942_v21 = vld [vmem:[#allocation9 + $0x1004] sm:$0xf]  ;;  %v8321_v58 = vor.u32 %v8990_v18, %v8318_v19 }
 0x497   :  { %v8245_v57 = vor.u32 %v8975_v24, %v8244_v13  ;;  %v8129_v52 = vor.u32 %v8942_v21, %v8126_v7  ;;  %v8978_v13 = vld [vmem:[#allocation9 + $0x1124] sm:$0xf]  ;;  %v8270_v24 = vld [vmem:[#allocation9 + $0x1138] sm:$0xf0]  ;;  %v8005_v21 = vor.u32 %v8915_v22, %v8004_v40  ;;  %v8197_v7 = vor.u32 %v8963_v61, %v8196_v14  ;;  %v7766_v63 = vld [vmem:[#allocation9 + $0xd48] sm:$0xf0] }
 0x498   :  { %v8846_v40 = vld [vmem:[#allocation9 + $0xd04] sm:$0xf]  ;;  %v7742_v22 = vld [vmem:[#allocation9 + $0xd18] sm:$0xf0] }
 0x499   :  { %5473 = vmatpush.bf16.msrb.mxu2 %v7265_v53  ;;  %5486 = vmatpush.bf16.msrb.mxu3 %v7457_v20  ;;  %v8052_v53 = vld [vmem:[#allocation9 + $0xf70] sm:$0xf]  ;;  %v8927_v20 = vld [vmem:[#allocation9 + $0xf84] sm:$0xf0]  ;;  %v7934_v61 = vld [vmem:[#allocation9 + $0xe98] sm:$0xf0] }
 0x49a   :  { %5443 = vmatpush.bf16.msra.mxu0 %v8125_v34  ;;  %5456 = vmatpush.bf16.msra.mxu1 %v8317_v49  ;;  %v8342_v34 = vld [vmem:[#allocation9 + $0x11c8] sm:$0xf0]  ;;  %v9874_v49 = vpop.permute.xlu1 %5652  ;;  %v8053_v44 = vor.u32 %v8927_v20, %v8052_v53  ;;  %v8906_v53 = vld [vmem:[#allocation9 + $0xee4] sm:$0xf]  ;;  %v7982_v20 = vld [vmem:[#allocation9 + $0xef8] sm:$0xf0] }
 0x49b   :  { %v8345_v56 = vor.u32 %v8996_v48, %v8342_v34  ;;  %v7985_v19 = vor.u32 %v8906_v53, %v7982_v20  ;;  %v8030_v53 = vld [vmem:[#allocation9 + $0xf58] sm:$0xf0]  ;;  %v8966_v20 = vld [vmem:[#allocation9 + $0x10c4] sm:$0xf] }
 0x49d   :  { %5474 = vmatpush.bf16.msrb.mxu2 %v7241_v32  ;;  %5487 = vmatpush.bf16.msrb.mxu3 %v7433_v33  ;;  %v8220_v32 = vld [vmem:[#allocation9 + $0x10c0] sm:$0xf]  ;;  %v8969_v33 = vld [vmem:[#allocation9 + $0x10d4] sm:$0xf0] }
 0x49e   :  { %5444 = vmatpush.bf16.msra.mxu0 %v8101_v29  ;;  %5457 = vmatpush.bf16.msra.mxu1 %v8293_v31  ;;  %v8921_v29 = vld [vmem:[#allocation9 + $0xf54] sm:$0xf0]  ;;  %v9884_v31 = vpop.permute.xlu2 %5614  ;;  %v8221_v8 = vor.u32 %v8969_v33, %v8220_v32  ;;  %v8924_v32 = vld [vmem:[#allocation9 + $0xf74] sm:$0xf] }
 0x4a0   :  { %5475 = vmatmul.bf16.vlgmr.msrb.gmra.mxu2 %v9784_v39  ;;  %5488 = vmatmul.bf16.vlgmr.msrb.gmra.mxu3 %v9786_v62  ;;  %v8102_v39 = vld [vmem:[#allocation9 + $0xfe8] sm:$0xf0] }
 0x4a1   :  { %5519 = vmatpush.bf16.msra.mxu2 %v8177_v38  ;;  %5532 = vmatpush.bf16.msra.mxu3 %v8369_v43  ;;  %v8294_v62 = vld [vmem:[#allocation9 + $0x1168] sm:$0xf0]  ;;  %v8029_v43 = vor.u32 %v8921_v29, %v8028_v50  ;;  %v8105_v48 = vor.u32 %v8936_v11, %v8102_v39  ;;  %v8972_v39 = vld [vmem:[#allocation9 + $0x10f4] sm:$0xf] }
 0x4a2   :  { %5445 = vmatpush.bf16.msra.mxu0 %v8077_v55  ;;  %5458 = vmatpush.bf16.msra.mxu1 %v8269_v10  ;;  %v9886_v38 = vpop.permute.xlu1 %5578  ;;  %v8297_v34 = vor.u32 %v8984_v4, %v8294_v62  ;;  %v8858_v55 = vld [vmem:[#allocation9 + $0xd64] sm:$0xf]  ;;  %v7790_v10 = vld [vmem:[#allocation9 + $0xd78] sm:$0xf0]  ;;  %v8054_v11 = vld [vmem:[#allocation9 + $0xf88] sm:$0xf0] }
 0x4a3   :  { %v7793_v18 = vor.u32 %v8858_v55, %v7790_v10  ;;  %v9890_v50 = vpop.f32.mrf.mxu2  ;;  %v9892_v29 = vpop.f32.mrf.mxu3  ;;  %v8246_v4 = vld [vmem:[#allocation9 + $0x1108] sm:$0xf0]  ;;  %v8057_v14 = vor.u32 %v8924_v32, %v8054_v11  ;;  %v8918_v55 = vld [vmem:[#allocation9 + $0xf44] sm:$0xf] }
 0x4a4   :  { %v9898_v10 = vpop.permute.xlu0 %5632  ;;  %v8198_v32 = vld [vmem:[#allocation9 + $0x10a8] sm:$0xf0] }
 0x4a5   :  { %5520 = vmatpush.bf16.msra.mxu2 %v8153_v26  ;;  %5533 = vmatpush.bf16.msra.mxu3 %v8345_v56  ;;  %v8930_v26 = vld [vmem:[#allocation9 + $0xfa4] sm:$0xf]  ;;  %v8078_v56 = vld [vmem:[#allocation9 + $0xfb8] sm:$0xf0] }
 0x4a6   :  { %5446 = vmatpush.bf16.msra.mxu0 %v8053_v44  ;;  %5459 = vmatpush.bf16.msra.mxu1 %v8245_v57  ;;  %v8081_v44 = vor.u32 %v8930_v26, %v8078_v56  ;;  %v8273_v57 = vor.u32 %v8978_v13, %v8270_v24  ;;  %v9894_v33 = vpop.permute.xlu2 %5596  ;;  %v8222_v26 = vld [vmem:[#allocation9 + $0x10d8] sm:$0xf0]  ;;  %v7745_v56 = vor.u32 %v8846_v40, %v7742_v22  ;;  %v8840_v24 = vld [vmem:[#allocation9 + $0xcd4] sm:$0xf] }
 0x4a9   :  { %5521 = vmatpush.bf16.msra.mxu2 %v8129_v52  ;;  %5534 = vmatpush.bf16.msra.mxu3 %v8321_v58  ;;  %v8900_v52 = vld [vmem:[#allocation9 + $0xeb4] sm:$0xf]  ;;  %v7958_v58 = vld [vmem:[#allocation9 + $0xec8] sm:$0xf0] }
 0x4aa   :  { %5447 = vmatpush.bf16.msra.mxu0 %v8029_v43  ;;  %5460 = vmatpush.bf16.msra.mxu1 %v8221_v8  ;;  %v9896_v62 = vpop.permute.xlu1 %5650  ;;  %v7769_v43 = vor.u32 %v8852_v51, %v7766_v63  ;;  %v7961_v8 = vor.u32 %v8900_v52, %v7958_v58  ;;  %v8888_v63 = vld [vmem:[#allocation9 + $0xe54] sm:$0xf]  ;;  %v8006_v52 = vld [vmem:[#allocation9 + $0xf28] sm:$0xf0] }
 0x4ab   :  { %v5283_v51 = vpop.f32.mrf.mxu3  ;;  %v8960_v58 = vld [vmem:[#allocation9 + $0x1094] sm:$0xf] }
 0x4ad   :  { %5522 = vmatpush.bf16.msra.mxu2 %v8105_v48  ;;  %5535 = vmatpush.bf16.msra.mxu3 %v8297_v34  ;;  %v8249_v48 = vor.u32 %v8972_v39, %v8246_v4  ;;  %v8894_v34 = vld [vmem:[#allocation9 + $0xe84] sm:$0xf] }
 0x4ae   :  { %5448 = vmatpush.bf16.msra.mxu0 %v8005_v21  ;;  %5461 = vmatpush.bf16.msra.mxu1 %v8197_v7  ;;  %v7937_v13 = vor.u32 %v8894_v34, %v7934_v61  ;;  %v7718_v21 = vld [vmem:[#allocation9 + $0xce8] sm:$0xf0]  ;;  %v8033_v7 = vor.u32 %v8918_v55, %v8030_v53  ;;  %v7694_v34 = vld [vmem:[#allocation9 + $0xcb8] sm:$0xf0]  ;;  %v8882_v61 = vld [vmem:[#allocation9 + $0xe24] sm:$0xf]  ;;  %v9908_v53 = vpop.permute.xlu0 %5558 }
 0x4af   :  { %v7886_v55 = vld [vmem:[#allocation9 + $0xe38] sm:$0xf0] }
 0x4b0   :  { %v5242_v39 = vpop.f32.mrf.mxu0  ;;  %v9904_v4 = vpop.f32.mrf.mxu1 }
 0x4b1   :  { %5523 = vmatpush.bf16.msra.mxu2 %v8081_v44  ;;  %5536 = vmatpush.bf16.msra.mxu3 %v8273_v57  ;;  %v7910_v44 = vld [vmem:[#allocation9 + $0xe68] sm:$0xf0]  ;;  %v8912_v57 = vld [vmem:[#allocation9 + $0xf14] sm:$0xf] }
 0x4b2   :  { %5493 = vmatpush.bf16.msrb.mxu0 %v7793_v18  ;;  %5506 = vmatpush.bf16.msrb.mxu1 %v7985_v19  ;;  %v8225_v18 = vor.u32 %v8966_v20, %v8222_v26  ;;  %v5270_v19 = vpop.f32.mrf.mxu2  ;;  %v9902_v11 = vpop.permute.xlu1 %5576  ;;  %v7913_v40 = vor.u32 %v8888_v63, %v7910_v44  ;;  %v8009_v22 = vor.u32 %v8912_v57, %v8006_v52  ;;  %v8822_v44 = vld [vmem:[#allocation9 + $0xc44] sm:$0xf] }
 0x4b3   :  { %5449 = vmatmul.bf16.vlgmr.msra.gmra.mxu0 %v9795_v5  ;;  %5462 = vmatmul.bf16.vlgmr.msra.gmra.mxu1 %v9797_v37  ;;  %v7889_v26 = vor.u32 %v8882_v61, %v7886_v55  ;;  %v8870_v52 = vld [vmem:[#allocation9 + $0xdc4] sm:$0xf] }
 0x4b5   :  { %5524 = vmatpush.bf16.msra.mxu2 %v8057_v14  ;;  %5537 = vmatpush.bf16.msra.mxu3 %v8249_v48  ;;  %v8201_v14 = vor.u32 %v8960_v58, %v8198_v32  ;;  %v8834_v48 = vld [vmem:[#allocation9 + $0xca4] sm:$0xf]  ;;  %v7838_v58 = vld [vmem:[#allocation9 + $0xdd8] sm:$0xf0] }
 0x4b6   :  { %5494 = vmatpush.bf16.msrb.mxu0 %v7769_v43  ;;  %5507 = vmatpush.bf16.msrb.mxu1 %v7961_v8  ;;  %v9906_v43 = vpop.permute.xlu2 %5612  ;;  %v7721_v8 = vor.u32 %v8840_v24, %v7718_v21  ;;  %v7697_v20 = vor.u32 %v8834_v48, %v7694_v34  ;;  %v8876_v24 = vld [vmem:[#allocation9 + $0xdf4] sm:$0xf]  ;;  %v7862_v21 = vld [vmem:[#allocation9 + $0xe08] sm:$0xf0] }
 0x4b7   :  { %v7865_v63 = vor.u32 %v8876_v24, %v7862_v21  ;;  %v7814_v48 = vld [vmem:[#allocation9 + $0xda8] sm:$0xf0] }
 0x4b8   :  { %v5257_v19 = vpop.f32.mrf.mxu1 }
 0x4b9   :  { %5525 = vmatpush.bf16.msra.mxu2 %v8033_v7  ;;  %5538 = vmatpush.bf16.msra.mxu3 %v8225_v18  ;;  %v5244_v18 = vpop.f32.mrf.mxu0 }
 0x4ba   :  { %5495 = vmatpush.bf16.msrb.mxu0 %v7745_v56  ;;  %5508 = vmatpush.bf16.msrb.mxu1 %v7937_v13  ;;  %v8828_v56 = vld [vmem:[#allocation9 + $0xc74] sm:$0xf]  ;;  %v7670_v13 = vld [vmem:[#allocation9 + $0xc88] sm:$0xf0]  ;;  %v9911_v7 = vpop.permute.xlu1 %5648 }
 0x4bb   :  { %v7673_v51 = vor.u32 %v8828_v56, %v7670_v13 }
 0x4bd   :  { %5526 = vmatpush.bf16.msra.mxu2 %v8009_v22  ;;  %5539 = vmatpush.bf16.msra.mxu3 %v8201_v14  ;;  %v7622_v22 = vld [vmem:[#allocation9 + $0xc28] sm:$0xf0]  ;;  %v8864_v14 = vld [vmem:[#allocation9 + $0xd94] sm:$0xf] }
 0x4be   :  { %5496 = vmatpush.bf16.msrb.mxu0 %v7721_v8  ;;  %5509 = vmatpush.bf16.msrb.mxu1 %v7913_v40  ;;  %v5595_v57 = vpop.permute.xlu2 %5594  ;;  %v7841_v8 = vor.u32 %v8870_v52, %v7838_v58  ;;  %v9918_v40 = vpop.permute.xlu0 %5630  ;;  %v7817_v61 = vor.u32 %v8864_v14, %v7814_v48  ;;  %v9034_v14 = vld [vmem:[#allocation10 + $0x20] sm:$0xff] }
 0x4bf   :  { %v3635_v48 = vperm.slane %v9034_v14, 3 }
 0x4c0   :  { %5527 = vmatmul.bf16.vlgmr.msra.gmra.mxu2 %v9795_v5  ;;  %5540 = vmatmul.bf16.vlgmr.msra.gmra.mxu3 %v9797_v37  ;;  %v8816_v37 = vld [vmem:[#allocation9 + $0xc14] sm:$0xf] }
 0x4c1   :  { %5728 = vmatpush.bf16.msrb.mxu2 %v9815_v6  ;;  %5741 = vmatpush.bf16.msrb.mxu3 %v9821_v27  ;;  %v7646_v6 = vld [vmem:[#allocation9 + $0xc58] sm:$0xf0]  ;;  %v9032_v27 = vld [vmem:[#allocation10 + $0x10] sm:$0xff] }
 0x4c2   :  { %5497 = vmatpush.bf16.msrb.mxu0 %v7697_v20  ;;  %5510 = vmatpush.bf16.msrb.mxu1 %v7889_v26  ;;  %v3633_v32 = vperm.slane %v9032_v27, 3  ;;  %v7649_v5 = vor.u32 %v8822_v44, %v7646_v6 }
 0x4c3   :  { %v9926_v55 = vpop.f32.mrf.mxu2  ;;  %v9928_v20 = vpop.f32.mrf.mxu3 }
 0x4c4   :  { %v5243_v34 = vadd.f32 %v5242_v39, %v3633_v32 }
 0x4c5   :  { %5729 = vmatpush.bf16.msrb.mxu2 %v9851_v41  ;;  %5742 = vmatpush.bf16.msrb.mxu3 %v9857_v3  ;;  %v9921_v41 = vpop.permute.xlu1 %5574  ;;  %v7625_v3 = vor.u32 %v8816_v37, %v7622_v22 }
 0x4c6   :  { %5498 = vmatpush.bf16.msrb.mxu0 %v7673_v51  ;;  %5511 = vmatpush.bf16.msrb.mxu1 %v7865_v63  ;;  %v5256_v26 = vadd.f32 %v9904_v4, %v5243_v34 }
 0x4c9   :  { %5730 = vmatpush.bf16.msrb.mxu2 %v9847_v36  ;;  %5743 = vmatpush.bf16.msrb.mxu3 %v9859_v54  ;;  %v5611_v36 = vpop.permute.xlu2 %5610 }
 0x4ca   :  { %5499 = vmatpush.bf16.msrb.mxu0 %v7649_v5  ;;  %5512 = vmatpush.bf16.msrb.mxu1 %v7841_v8 }
 0x4cb   :  { %v5335_v39 = vpop.f32.mrf.mxu3 }
 0x4cd   :  { %5731 = vmatpush.bf16.msrb.mxu2 %v9871_v46  ;;  %5744 = vmatpush.bf16.msrb.mxu3 %v9884_v31  ;;  %v9933_v54 = vpop.permute.xlu1 %5646  ;;  %v5609_v46 = vpop.permute.xlu0 %5608  ;;  %v5269_v31 = vadd.f32 %v9890_v50, %v5256_v26 }
 0x4ce   :  { %5500 = vmatpush.bf16.msrb.mxu0 %v7625_v3  ;;  %5513 = vmatpush.bf16.msrb.mxu1 %v7817_v61 }
 0x4d0   :  { %v5307_v4 = vpop.f32.mrf.mxu1 }
 0x4d1   :  { %5732 = vmatpush.bf16.msrb.mxu2 %v9894_v33  ;;  %5745 = vmatpush.bf16.msrb.mxu3 %v9906_v43  ;;  %v5294_v33 = vpop.f32.mrf.mxu0  ;;  %v5593_v43 = vpop.permute.xlu2 %5592 }
 0x4d2   :  { %5702 = vmatpush.bf16.msra.mxu0 %v9823_v12  ;;  %5715 = vmatpush.bf16.msra.mxu1 %v9833_v9  ;;  %v5322_v12 = vpop.f32.mrf.mxu2  ;;  %v5282_v9 = vadd.f32 %v9892_v29, %v5269_v31 }
 0x4d3   :  { %5501 = vmatmul.bf16.vlgmr.msrb.gmra.mxu0 %v9775_v28  ;;  %5514 = vmatmul.bf16.vlgmr.msrb.gmra.mxu1 %v9777_v17 }
 0x4d4   :  { %v5295_v28 = vadd.f32 %v5294_v33, %v5282_v9 }
 0x4d5   :  { %5733 = vmatpush.bf16.msrb.mxu2 %v5595_v57  ;;  %5746 = vmatpush.bf16.msrb.mxu3 %v5611_v36  ;;  %v5629_v17 = vpop.permute.xlu1 %5628  ;;  %v5591_v50 = vpop.permute.xlu0 %5590 }
 0x4d6   :  { %5703 = vmatpush.bf16.msra.mxu0 %v9813_v42  ;;  %5716 = vmatpush.bf16.msra.mxu1 %v9817_v35  ;;  %v5308_v42 = vadd.f32 %v5307_v4, %v5295_v28 }
 0x4d8   :  { %v5547_v35 = vmax.f32 %v5308_v42, 0.0  ;;  %v5309_v13 = vpop.f32.mrf.mxu1  ;;  %v9035_v42 = vld [vmem:[#allocation10 + $0x28] sm:$0xff] }
 0x4d9   :  { %5734 = vmatpush.bf16.msrb.mxu2 %v5593_v43  ;;  %5747 = vmatpush.bf16.msrb.mxu3 %v5609_v46  ;;  %v5296_v56 = vpop.f32.mrf.mxu0 }
 0x4da   :  { %5704 = vmatpush.bf16.msra.mxu0 %v9839_v0  ;;  %5717 = vmatpush.bf16.msra.mxu1 %v9829_v25  ;;  %v5553_v29 = vpack.c.bf16 %v5547_v35, %v5547_v35 }
 0x4dd   :  { %5735 = vmatpush.bf16.msrb.mxu2 %v5591_v50  ;;  %v5607_v25 = vpop.permute.xlu1 %5606  ;;  %v5643_v57 = vpop.permute.xlu0 %5642  ;;  %v3636_v50 = vperm.slane %v9035_v42, 3 }
 0x4de   :  { %5705 = vmatpush.bf16.msra.mxu0 %v9837_v30  ;;  %5718 = vmatpush.bf16.msra.mxu1 %v9831_v15  ;;  %v5545_v15 = vmax.f32 %v9855_v59, 0.0  ;;  %v5546_v30 = vmax.f32 %v9880_v1, 0.0 }
 0x4df   :  { %5748 = vmatpush.bf16.msrb.mxu3 %v5607_v25 }
 0x4e0   :  { %5736 = vmatmul.bf16.vlgmr.msrb.gmra.mxu2 %v5553_v29 }
 0x4e2   :  { %5706 = vmatpush.bf16.msra.mxu0 %v9842_v2  ;;  %5719 = vmatpush.bf16.msra.mxu1 %v9869_v60  ;;  %v9033_v2 = vld [vmem:[#allocation10 + $0x18] sm:$0xff]  ;;  %v5551_v60 = vpack.c.bf16 %v5545_v15, %v5545_v15 }
 0x4e3   :  { %v5372_v0 = vpop.f32.mrf.mxu2  ;;  %v5385_v24 = vpop.f32.mrf.mxu3  ;;  %v3634_v21 = vperm.slane %v9033_v2, 3 }
 0x4e5   :  { %v5321_v59 = vadd.f32 %v9926_v55, %v3634_v21  ;;  %v5625_v8 = vpop.permute.xlu1 %5624  ;;  %v5623_v37 = vpop.permute.xlu0 %5622 }
 0x4e6   :  { %5707 = vmatpush.bf16.msra.mxu0 %v9865_v45  ;;  %5720 = vmatpush.bf16.msra.mxu1 %v9886_v38  ;;  %v5552_v45 = vpack.c.bf16 %v5546_v30, %v5546_v30  ;;  %v5645_v38 = vpop.permute.xlu2 %5644 }
 0x4ea   :  { %5708 = vmatpush.bf16.msra.mxu0 %v9888_v16  ;;  %5721 = vmatpush.bf16.msra.mxu1 %v9902_v11  ;;  %v5334_v11 = vadd.f32 %v9928_v20, %v5321_v59 }
 0x4eb   :  { %v5374_v1 = vpop.f32.mrf.mxu2  ;;  %v5387_v16 = vpop.f32.mrf.mxu3 }
 0x4ec   :  { %v9036_v1 = vld [vmem:[#allocation10] sm:$0xff] }
 0x4ed   :  { %v5639_v33 = vpop.permute.xlu1 %5638  ;;  %v5557_v16 = vperm.slane %v9036_v1, 5 }
 0x4ee   :  { %5709 = vmatpush.bf16.msra.mxu0 %v9908_v53  ;;  %5722 = vmatpush.bf16.msra.mxu1 %v9921_v41  ;;  %v5627_v19 = vpop.permute.xlu2 %5626 }
 0x4f0   :  { %v5346_v53 = vpop.f32.mrf.mxu0  ;;  %v5359_v18 = vpop.f32.mrf.mxu1 }
 0x4f1   :  { %5710 = vmatmul.bf16.vlgmr.msra.gmra.mxu0 %v5551_v60  ;;  %5723 = vmatmul.bf16.vlgmr.msra.gmra.mxu1 %v5552_v45 }
 0x4f2   :  { %5754 = vmatpush.bf16.msrb.mxu0 %v9853_v47  ;;  %5767 = vmatpush.bf16.msrb.mxu1 %v9874_v49  ;;  %v5347_v47 = vadd.f32 %v5346_v53, %v5334_v11 }
 0x4f4   :  { %v5360_v49 = vadd.f32 %v5359_v18, %v5347_v47 }
 0x4f6   :  { %5755 = vmatpush.bf16.msrb.mxu0 %v9876_v23  ;;  %5768 = vmatpush.bf16.msrb.mxu1 %v9896_v62  ;;  %v5373_v23 = vadd.f32 %v5372_v0, %v5360_v49 }
 0x4f8   :  { %v5386_v51 = vadd.f32 %v5385_v24, %v5373_v23  ;;  %v5348_v62 = vpop.f32.mrf.mxu0  ;;  %v5361_v63 = vpop.f32.mrf.mxu1 }
 0x4fa   :  { %5756 = vmatpush.bf16.msrb.mxu0 %v9898_v10  ;;  %5769 = vmatpush.bf16.msrb.mxu1 %v9911_v7  ;;  %v5548_v44 = vmax.f32 %v5386_v51, 0.0  ;;  %v5641_v10 = vpop.permute.xlu2 %5640 }
 0x4fc   :  { %v5554_v6 = vpack.c.bf16 %v5548_v44, %v5548_v44 }
 0x4fe   :  { %5757 = vmatpush.bf16.msrb.mxu0 %v9918_v40  ;;  %5770 = vmatpush.bf16.msrb.mxu1 %v9933_v54 }
 0x4ff   :  { %5749 = vmatmul.bf16.vlgmr.msrb.gmra.mxu3 %v5554_v6 }
 0x502   :  { %5758 = vmatpush.bf16.msrb.mxu0 %v5629_v17  ;;  %5771 = vmatpush.bf16.msrb.mxu1 %v5645_v38 }
 0x503   :  { %v5424_v7 = vpop.f32.mrf.mxu2  ;;  %v5437_v52 = vpop.f32.mrf.mxu3 }
 0x506   :  { %5759 = vmatpush.bf16.msrb.mxu0 %v5627_v19  ;;  %5772 = vmatpush.bf16.msrb.mxu1 %v5643_v57 }
 0x50a   :  { %5773 = vmatpush.bf16.msrb.mxu1 %v5641_v10  ;;  %5760 = vmatpush.bf16.msrb.mxu0 %v5625_v8 }
 0x50b   :  { %v5426_v58 = vpop.f32.mrf.mxu2  ;;  %v5439_v27 = vpop.f32.mrf.mxu3 }
 0x50c   :  { %v5782_v58 = vpop.permute.xlu2 %5781  ;;  %v5786_v27 = vpop.permute.xlu0 %5785 }
 0x50e   :  { %5761 = vmatpush.bf16.msrb.mxu0 %v5623_v37  ;;  %5774 = vmatpush.bf16.msrb.mxu1 %v5639_v33 }
 0x510   :  { %v5398_v32 = vpop.f32.mrf.mxu0  ;;  %v5411_v5 = vpop.f32.mrf.mxu1 }
 0x511   :  { %v5399_v41 = vadd.f32 %v5398_v32, %v3635_v48 }
 0x513   :  { %v5412_v61 = vadd.f32 %v5411_v5, %v5399_v41 }
 0x515   :  { %v5425_v55 = vadd.f32 %v5424_v7, %v5412_v61 }
 0x517   :  { %v5438_v26 = vadd.f32 %v5437_v52, %v5425_v55 }
 0x518   :  { %v5400_v40 = vpop.f32.mrf.mxu0  ;;  %v5413_v22 = vpop.f32.mrf.mxu1 }
 0x523   :  { %v5476_v34 = vpop.f32.mrf.mxu2  ;;  %v5489_v3 = vpop.f32.mrf.mxu3 }
 0x524   :  { %v5477_v35 = vadd.f32 %v5476_v34, %v3636_v50 }
 0x526   :  { %v5490_v13 = vadd.f32 %v5489_v3, %v5477_v35 }
 0x52b   :  { %v5478_v20 = vpop.f32.mrf.mxu2  ;;  %v5491_v36 = vpop.f32.mrf.mxu3 }
 0x530   :  { %v5450_v54 = vpop.f32.mrf.mxu0  ;;  %v5463_v46 = vpop.f32.mrf.mxu1 }
 0x531   :  { %v5451_v31 = vadd.f32 %v5450_v54, %v5438_v26 }
 0x533   :  { %v5464_v12 = vadd.f32 %v5463_v46, %v5451_v31 }
 0x535   :  { %v5549_v39 = vmax.f32 %v5464_v12, 0.0 }
 0x537   :  { %v5555_v9 = vpack.c.bf16 %v5549_v39, %v5549_v39 }
 0x538   :  { %v5452_v4 = vpop.f32.mrf.mxu0  ;;  %v5465_v43 = vpop.f32.mrf.mxu1 }
 0x539   :  { %5762 = vmatmul.bf16.vlgmr.msrb.gmra.mxu0 %v5555_v9 }
 0x543   :  { %v5528_v28 = vpop.f32.mrf.mxu2  ;;  %v5541_v17 = vpop.f32.mrf.mxu3 }
 0x54b   :  { %v5530_v29 = vpop.f32.mrf.mxu2  ;;  %v5543_v56 = vpop.f32.mrf.mxu3 }
 0x550   :  { %v5502_v25 = vpop.f32.mrf.mxu0  ;;  %v5515_v15 = vpop.f32.mrf.mxu1 }
 0x551   :  { %v5503_v30 = vadd.f32 %v5502_v25, %v5490_v13 }
 0x553   :  { %v5516_v0 = vadd.f32 %v5515_v15, %v5503_v30 }
 0x555   :  { %v5529_v24 = vadd.f32 %v5528_v28, %v5516_v0 }
 0x557   :  { %v5542_v2 = vadd.f32 %v5541_v17, %v5529_v24 }
 0x558   :  { %v5504_v21 = vpop.f32.mrf.mxu0  ;;  %v5517_v60 = vpop.f32.mrf.mxu1 }
 0x559   :  { %v5550_v45 = vmax.f32 %v5542_v2, 0.0 }
 0x55b   :  { %v5556_v38 = vpack.c.bf16 %v5550_v45, %v5550_v45 }
 0x55d   :  { %5775 = vmatmul.bf16.vlgmr.msrb.gmra.mxu1 %v5556_v38 }
 0x563   :  { %v5737_v59 = vpop.f32.mrf.mxu2 }
 0x56b   :  { %v5739_v47 = vpop.f32.mrf.mxu2 }
 0x56e   :  { %v5711_v11 = vpop.f32.mrf.mxu0  ;;  %v5724_v53 = vpop.f32.mrf.mxu1 }
 0x56f   :  { %v5712_v18 = vadd.f32 %v5711_v11, %v5557_v16 }
 0x571   :  { %v5725_v49 = vadd.f32 %v5724_v53, %v5712_v18 }
 0x573   :  { %v5738_v19 = vadd.f32 %v5737_v59, %v5725_v49 }
 0x576   :  { %v5713_v23 = vpop.f32.mrf.mxu0  ;;  %v5726_v51 = vpop.f32.mrf.mxu1 }
 0x582   :  { %v5750_v62 = vpop.f32.mrf.mxu3 }
 0x583   :  { %v5751_v63 = vadd.f32 %v5750_v62, %v5738_v19 }
 0x58a   :  { %v5752_v44 = vpop.f32.mrf.mxu3 }
 0x5b6   :  { %v5763_v57 = vpop.f32.mrf.mxu0 }
 0x5b7   :  { %v5764_v10 = vadd.f32 %v5763_v57, %v5751_v63 }
 0x5be   :  { %v5765_v6 = vpop.f32.mrf.mxu0 }
 0x5da   :  { %v5776_v7 = vpop.f32.mrf.mxu1 }
 0x5db   :  { %v5777_v52 = vadd.f32 %v5776_v7, %v5764_v10 }
 0x5dd   :  { %v5788_v32 = vsel %vm224_vm1, %v5777_v52, %v5782_v58 }
 0x5de   :  { %v5790_v5 = vsel %vm5789_vm4, %v5788_v32, %v5786_v27 }
 0x5df   :  { %v5792_v8 = vsel %vm5791_vm5, %v5790_v5, 0.0 }
 0x5e0   :  { %5793 = vst [vmem:[%s9979_s8] sm:$0xff] %v5792_v8 }
 0x5e2   :  { %v5778_v37 = vpop.f32.mrf.mxu1 }
 0x5e3   :  { %5798 = vsyncpa [#allocation3], 1 }
 0x5e4   :  { %5799 = vsyncpa [#allocation5], 1 }
 0x5e5   :  { %5800 = vsyncpa [#allocation8], 1 }
 0x5e6   :  { %5801 = vsyncpa [#allocation11], 1 }

</bundles_post_ra>
